<compile_context>
chip_gen: v5e
topology: v5e:2x2
jax: 0.10.0
libtpu: 0.0.40
codegen_flags: <defaults>
</compile_context>

<pallas_src>
import functools

import jax
import jax.numpy as jnp
from jax import lax
from jax.experimental import pallas as pl
from jax.experimental.pallas import tpu as pltpu


# --------------------------- architecture constants ------------------------- #

_K, _STRIDE, _PAD = 5, 2, 2
_OC = (16, 64, 64)        # conv1 / conv2 / conv3 output channels
_NCLASS = 8               # fcone output features
_OCP = 128                # lane-dense padded output-channel width
_TILE_CAP = 256           # row-tile cap (conservative for v7x's 64 MiB VMEM)

# MXU operand dtype. Kept float32 so results match the f32 reference to 1e-4;
# set to jnp.bfloat16 on v6e/v7x (f32 accumulation retained) if ~1e-2 is OK.
_DTYPE = jnp.float32


def _round_up(x, m):
    return (x + m - 1) // m * m


def _pick_tile(m, cap=_TILE_CAP):
    """Largest row tile <= cap that divides m and is a multiple of 8 (else m)."""
    if m <= cap:
        return m
    for t in range(cap, 7, -8):
        if m % t == 0:
            return t
    return m


# ------------------------------- Pallas kernel ------------------------------ #

def _fused_matmul_kernel(a_ref, w_ref, b_ref, o_ref, *, taps, relu):
    """o = act(max_t(a[t] @ w) + b).

    a_ref: (taps, TILE_M, Kp)   -- taps = 4 pool taps (conv+pool) or 1
    w_ref: (Kp, 128)            -- zero-padded weight, resident across grid
    b_ref: (1, 128)             -- zero-padded bias
    o_ref: (TILE_M, 128)        -- lane-dense output block
    """
    w = w_ref[...]
    y = jnp.dot(a_ref[0], w, preferred_element_type=jnp.float32)
    for t in range(1, taps):
        y = jnp.maximum(y, jnp.dot(a_ref[t], w, preferred_element_type=jnp.float32))
    y = y + b_ref[...]
    if relu:
        y = jnp.maximum(y, 0.0)
    o_ref[...] = y.astype(o_ref.dtype)


def fused_matmul(patches, w, b, *, relu):
    """patches:(taps, M, Kp) @ w:(Kp, 128) + b, optional ReLU, max over taps."""
    taps, M, Kp = patches.shape
    OCp = w.shape[1]
    tile = _pick_tile(M)
    kernel = functools.partial(_fused_matmul_kernel, taps=taps, relu=relu)
    return pl.pallas_call(
        kernel,
        out_shape=jax.ShapeDtypeStruct((M, OCp), jnp.float32),
        grid=(M // tile,),
        in_specs=[
            pl.BlockSpec((taps, tile, Kp), lambda i: (0, i, 0)),
            pl.BlockSpec((Kp, OCp), lambda i: (0, 0)),
            pl.BlockSpec((1, OCp), lambda i: (0, 0)),
        ],
        out_specs=pl.BlockSpec((tile, OCp), lambda i: (i, 0)),
        compiler_params=pltpu.CompilerParams(
            dimension_semantics=("parallel",)),
    )(patches, w, b)


# --------------------------- layout plumbing (JAX) --------------------------- #

def _patches(x_nhwc, k, stride, pad, Kp, pool):
    """NHWC -> (taps, M, Kp) im2col patches, feature order (c, ki, kj).

    With pool=True the 4 taps of each 2x2 pool window are placed on the
    leading axis and M = N*PH*PW (pooled positions), so the kernel can fuse
    the max-pool as an elementwise max of 4 matmul results.
    """
    N, H, W, C = x_nhwc.shape
    OH = (H + 2 * pad - k) // stride + 1
    OW = (W + 2 * pad - k) // stride + 1
    xp = jnp.pad(x_nhwc, ((0, 0), (pad, pad), (pad, pad), (0, 0)))
    cols = []
    for ki in range(k):
        for kj in range(k):
            cols.append(xp[:, ki:ki + stride * OH:stride,
                           kj:kj + stride * OW:stride, :])     # (N, OH, OW, C)
    p = jnp.stack(cols, axis=-1)                                # (N, OH, OW, C, k*k)
    K = C * k * k
    p = p.reshape(N, OH, OW, K)                                 # idx = c*k*k + ki*k + kj
    if pool:
        PH, PW = OH // 2, OW // 2
        p = p.reshape(N, PH, 2, PW, 2, K)
        p = jnp.transpose(p, (2, 4, 0, 1, 3, 5)).reshape(4, N * PH * PW, K)
        out_hw = (PH, PW)
    else:
        p = p.reshape(1, N * OH * OW, K)
        out_hw = (OH, OW)
    if Kp > K:
        p = jnp.pad(p, ((0, 0), (0, 0), (0, Kp - K)))
    return p.astype(_DTYPE), out_hw


# ----------------------------- parameter handling ---------------------------- #

def init_params(key):
    k1, k2, k3, k4 = jax.random.split(key, 4)
    return {
        "w1": jax.random.normal(k1, (16, 3, 5, 5), jnp.float32) / jnp.sqrt(5 * 5 * 3.0),
        "b1": jnp.zeros((16,), jnp.float32),
        "w2": jax.random.normal(k2, (64, 16, 5, 5), jnp.float32) / jnp.sqrt(5 * 5 * 16.0),
        "b2": jnp.zeros((64,), jnp.float32),
        "w3": jax.random.normal(k3, (64, 64, 5, 5), jnp.float32) / jnp.sqrt(5 * 5 * 64.0),
        "b3": jnp.zeros((64,), jnp.float32),
        "wf": jax.random.normal(k4, (8, 256), jnp.float32) / jnp.sqrt(256.0),
        "bf": jnp.zeros((8,), jnp.float32),
    }


def prepare_params(params):
    """Hoist all weight reshapes/transposes/padding out of the forward path."""
    prepped = {}
    for idx in (1, 2, 3):
        w, b = params[f"w{idx}"], params[f"b{idx}"]
        OC, C, kh, kw = w.shape
        K = C * kh * kw
        Kp = _round_up(K, 128)
        wm = jnp.pad(w.reshape(OC, K).T, ((0, Kp - K), (0, _OCP - OC)))
        prepped[f"w{idx}"] = wm.astype(_DTYPE)                       # (Kp, 128)
        prepped[f"b{idx}"] = jnp.pad(b, (0, _OCP - OC)).reshape(1, _OCP)
    # fcone: in-features are the PyTorch flatten (c, h, w) of the (N,64,2,2)
    # conv3 output.  Reorder to the (h, w, c_pad) order of our lane-dense conv3
    # output so the activation needs no transpose in the forward path.
    wf = params["wf"].reshape(_NCLASS, _OC[2], 2, 2)                 # (f, c, h, w)
    wf = jnp.transpose(wf, (2, 3, 1, 0))                             # (h, w, c, f)
    wf = jnp.pad(wf, ((0, 0), (0, 0), (0, _OCP - _OC[2]), (0, _OCP - _NCLASS)))
    prepped["wf"] = wf.reshape(2 * 2 * _OCP, _OCP).astype(_DTYPE)    # (512, 128)
    prepped["bf"] = jnp.pad(params["bf"], (0, _OCP - _NCLASS)).reshape(1, _OCP)
    return prepped


# ------------------------------- model forward ------------------------------- #

def forward(prepped, x_nchw):
    N = x_nchw.shape[0]
    x = jnp.transpose(x_nchw, (0, 2, 3, 1)).astype(_DTYPE)           # NHWC

    # conv1 + ReLU + 2x2 max-pool (fused) ; Dropout(0.2) = identity (inference)
    p, (h, w) = _patches(x, _K, _STRIDE, _PAD, prepped["w1"].shape[0], pool=True)
    y = fused_matmul(p, prepped["w1"], prepped["b1"], relu=True)     # (N*16*16, 128)
    x = y.reshape(N, h, w, _OCP)[..., :_OC[0]].astype(_DTYPE)        # (N,16,16,16)

    # conv2 + ReLU + 2x2 max-pool (fused) ; Dropout(0.2) = identity (inference)
    p, (h, w) = _patches(x, _K, _STRIDE, _PAD, prepped["w2"].shape[0], pool=True)
    y = fused_matmul(p, prepped["w2"], prepped["b2"], relu=True)     # (N*4*4, 128)
    x = y.reshape(N, h, w, _OCP)[..., :_OC[1]].astype(_DTYPE)        # (N,4,4,64)

    # conv3 + ReLU (no pool)
    p, (h, w) = _patches(x, _K, _STRIDE, _PAD, prepped["w3"].shape[0], pool=False)
    y = fused_matmul(p, prepped["w3"], prepped["b3"], relu=True)     # (N*2*2, 128)

    # flatten + fcone (weight pre-reordered/padded; activation stays lane-dense)
    xf = y.reshape(1, N, h * w * _OCP).astype(_DTYPE)                # (1, N, 512)
    z = fused_matmul(xf, prepped["wf"], prepped["bf"], relu=False)   # (N, 128)
    return z[:, :_NCLASS]


# ----------------------------- pure-JAX reference ----------------------------- #

def _conv_ref(x, w, b, stride, pad):
    y = lax.conv_general_dilated(
        x, w, window_strides=(stride, stride),
        padding=((pad, pad), (pad, pad)),
        dimension_numbers=("NCHW", "OIHW", "NCHW"))
    return jnp.maximum(y + b[None, :, None, None], 0.0)


def _pool_ref(x):
    return lax.reduce_window(x, -jnp.inf, lax.max, (1, 1, 2, 2), (1, 1, 2, 2), "VALID")


def forward_ref(params, x):
    x = _pool_ref(_conv_ref(x, params["w1"], params["b1"], 2, 2))
    x = _pool_ref(_conv_ref(x, params["w2"], params["b2"], 2, 2))
    x = _conv_ref(x, params["w3"], params["b3"], 2, 2)
    x = x.reshape(x.shape[0], -1)
    return x @ params["wf"].T + params["bf"]


# ------------------------------------ main ------------------------------------ #

if __name__ == "__main__":
    key = jax.random.PRNGKey(0)
    pkey, xkey = jax.random.split(key)
    params = init_params(pkey)
    x = jax.random.normal(xkey, (2, 3, 64, 64), jnp.float32)   # (N, C, H, W)

    prepped = prepare_params(params)
    fwd = jax.jit(forward)

    out = jax.block_until_ready(fwd(prepped, x))
    ref = jax.block_until_ready(forward_ref(params, x))

    assert out.shape == (2, 8), out.shape
    assert jnp.allclose(out, ref, atol=1e-4, rtol=1e-4), (
        float(jnp.max(jnp.abs(out - ref))))
    print("KERNEL_OK")
</pallas_src>

<mosaic_0001>
module attributes {stable_mosaic.version = 11 : i64} {
  func.func @_fused_matmul_kernel(%arg0: i32, %arg1: memref<4x256x128xf32, #tpu.memory_space<vmem>>, %arg2: memref<128x128xf32, #tpu.memory_space<vmem>>, %arg3: memref<1x128xf32, #tpu.memory_space<vmem>>, %arg4: memref<256x128xf32, #tpu.memory_space<vmem>>) attributes {dimension_semantics = [#tpu.dimension_semantics<parallel>], iteration_bounds = array<i64: 2>, scalar_prefetch = 0 : i64, scratch_operands = 0 : i64, tpu.core_type = #tpu.core_type<tc>, window_params = [{transform_indices = @transform_0, window_bounds = array<i64: 4, 256, 128>}, {pipeline_mode = #tpu.pipeline_mode<synchronous>, transform_indices = @transform_1, window_bounds = array<i64: 128, 128>}, {pipeline_mode = #tpu.pipeline_mode<synchronous>, transform_indices = @transform_2, window_bounds = array<i64: 1, 128>}, {transform_indices = @transform_3, window_bounds = array<i64: 256, 128>}]} {
    %c0 = arith.constant 0 : index
    %c0_0 = arith.constant 0 : index
    %0 = vector.load %arg2[%c0, %c0_0] : memref<128x128xf32, #tpu.memory_space<vmem>>, vector<128x128xf32>
    %c0_1 = arith.constant 0 : index
    %c0_2 = arith.constant 0 : index
    %c0_3 = arith.constant 0 : index
    %1 = vector.load %arg1[%c0_1, %c0_2, %c0_3] : memref<4x256x128xf32, #tpu.memory_space<vmem>>, vector<1x256x128xf32>
    %2 = vector.shape_cast %1 : vector<1x256x128xf32> to vector<256x128xf32>
    %cst = arith.constant dense<0.000000e+00> : vector<256x128xf32>
    %3 = tpu.matmul %2, %0, %cst {dimension_numbers = #tpu.dot_dimension_numbers<[1], [0], [0], [1], [0, 0, 1, 1], [], []>} : vector<256x128xf32>, vector<128x128xf32>, vector<256x128xf32> -> vector<256x128xf32>
    %c1 = arith.constant 1 : index
    %c0_4 = arith.constant 0 : index
    %c0_5 = arith.constant 0 : index
    %4 = vector.load %arg1[%c1, %c0_4, %c0_5] : memref<4x256x128xf32, #tpu.memory_space<vmem>>, vector<1x256x128xf32>
    %5 = vector.shape_cast %4 : vector<1x256x128xf32> to vector<256x128xf32>
    %cst_6 = arith.constant dense<0.000000e+00> : vector<256x128xf32>
    %6 = tpu.matmul %5, %0, %cst_6 {dimension_numbers = #tpu.dot_dimension_numbers<[1], [0], [0], [1], [0, 0, 1, 1], [], []>} : vector<256x128xf32>, vector<128x128xf32>, vector<256x128xf32> -> vector<256x128xf32>
    %7 = arith.maximumf %3, %6 : vector<256x128xf32>
    %c2 = arith.constant 2 : index
    %c0_7 = arith.constant 0 : index
    %c0_8 = arith.constant 0 : index
    %8 = vector.load %arg1[%c2, %c0_7, %c0_8] : memref<4x256x128xf32, #tpu.memory_space<vmem>>, vector<1x256x128xf32>
    %9 = vector.shape_cast %8 : vector<1x256x128xf32> to vector<256x128xf32>
    %cst_9 = arith.constant dense<0.000000e+00> : vector<256x128xf32>
    %10 = tpu.matmul %9, %0, %cst_9 {dimension_numbers = #tpu.dot_dimension_numbers<[1], [0], [0], [1], [0, 0, 1, 1], [], []>} : vector<256x128xf32>, vector<128x128xf32>, vector<256x128xf32> -> vector<256x128xf32>
    %11 = arith.maximumf %7, %10 : vector<256x128xf32>
    %c3 = arith.constant 3 : index
    %c0_10 = arith.constant 0 : index
    %c0_11 = arith.constant 0 : index
    %12 = vector.load %arg1[%c3, %c0_10, %c0_11] : memref<4x256x128xf32, #tpu.memory_space<vmem>>, vector<1x256x128xf32>
    %13 = vector.shape_cast %12 : vector<1x256x128xf32> to vector<256x128xf32>
    %cst_12 = arith.constant dense<0.000000e+00> : vector<256x128xf32>
    %14 = tpu.matmul %13, %0, %cst_12 {dimension_numbers = #tpu.dot_dimension_numbers<[1], [0], [0], [1], [0, 0, 1, 1], [], []>} : vector<256x128xf32>, vector<128x128xf32>, vector<256x128xf32> -> vector<256x128xf32>
    %15 = arith.maximumf %11, %14 : vector<256x128xf32>
    %c0_13 = arith.constant 0 : index
    %c0_14 = arith.constant 0 : index
    %16 = vector.load %arg3[%c0_13, %c0_14] : memref<1x128xf32, #tpu.memory_space<vmem>>, vector<1x128xf32>
    %17 = vector.broadcast %16 : vector<1x128xf32> to vector<256x128xf32>
    %18 = arith.addf %15, %17 : vector<256x128xf32>
    %cst_15 = arith.constant 0.000000e+00 : f32
    %19 = vector.broadcast %cst_15 : f32 to vector<256x128xf32>
    %20 = arith.maximumf %18, %19 : vector<256x128xf32>
    %c0_16 = arith.constant 0 : index
    %c0_17 = arith.constant 0 : index
    %21 = vector.load %arg4[%c0_16, %c0_17] : memref<256x128xf32, #tpu.memory_space<vmem>>, vector<256x128xf32>
    tpu.vector_store %arg4[%c0_16, %c0_17], %20 {strides = array<i32>} : memref<256x128xf32, #tpu.memory_space<vmem>>, vector<256x128xf32>,
    return
  }
  func.func @transform_0(%arg0: i32) -> (i32, i32, i32) {
    %c0_i32 = arith.constant 0 : i32
    %c0_i32_0 = arith.constant 0 : i32
    %c0_i32_1 = arith.constant 0 : i32
    return %c0_i32, %arg0, %c0_i32_0 : i32, i32, i32
  }
  func.func @transform_1(%arg0: i32) -> (i32, i32) {
    %c0_i32 = arith.constant 0 : i32
    %c0_i32_0 = arith.constant 0 : i32
    %c0_i32_1 = arith.constant 0 : i32
    return %c0_i32, %c0_i32_0 : i32, i32
  }
  func.func @transform_2(%arg0: i32) -> (i32, i32) {
    %c0_i32 = arith.constant 0 : i32
    %c0_i32_0 = arith.constant 0 : i32
    %c0_i32_1 = arith.constant 0 : i32
    return %c0_i32, %c0_i32_0 : i32, i32
  }
  func.func @transform_3(%arg0: i32) -> (i32, i32) {
    %c0_i32 = arith.constant 0 : i32
    %c0_i32_0 = arith.constant 0 : i32
    return %arg0, %c0_i32 : i32, i32
  }
}

module attributes {stable_mosaic.version = 11 : i64} {
  func.func @_fused_matmul_kernel(%arg0: i32, %arg1: memref<4x32x512xf32, #tpu.memory_space<vmem>>, %arg2: memref<512x128xf32, #tpu.memory_space<vmem>>, %arg3: memref<1x128xf32, #tpu.memory_space<vmem>>, %arg4: memref<32x128xf32, #tpu.memory_space<vmem>>) attributes {dimension_semantics = [#tpu.dimension_semantics<parallel>], iteration_bounds = array<i64: 1>, scalar_prefetch = 0 : i64, scratch_operands = 0 : i64, tpu.core_type = #tpu.core_type<tc>, window_params = [{transform_indices = @transform_0, window_bounds = array<i64: 4, 32, 512>}, {pipeline_mode = #tpu.pipeline_mode<synchronous>, transform_indices = @transform_1, window_bounds = array<i64: 512, 128>}, {pipeline_mode = #tpu.pipeline_mode<synchronous>, transform_indices = @transform_2, window_bounds = array<i64: 1, 128>}, {transform_indices = @transform_3, window_bounds = array<i64: 32, 128>}]} {
    %c0 = arith.constant 0 : index
    %c0_0 = arith.constant 0 : index
    %0 = vector.load %arg2[%c0, %c0_0] : memref<512x128xf32, #tpu.memory_space<vmem>>, vector<512x128xf32>
    %c0_1 = arith.constant 0 : index
    %c0_2 = arith.constant 0 : index
    %c0_3 = arith.constant 0 : index
    %1 = vector.load %arg1[%c0_1, %c0_2, %c0_3] : memref<4x32x512xf32, #tpu.memory_space<vmem>>, vector<1x32x512xf32>
    %2 = vector.shape_cast %1 : vector<1x32x512xf32> to vector<32x512xf32>
    %cst = arith.constant dense<0.000000e+00> : vector<32x128xf32>
    %3 = tpu.matmul %2, %0, %cst {dimension_numbers = #tpu.dot_dimension_numbers<[1], [0], [0], [1], [0, 0, 1, 1], [], []>} : vector<32x512xf32>, vector<512x128xf32>, vector<32x128xf32> -> vector<32x128xf32>
    %c1 = arith.constant 1 : index
    %c0_4 = arith.constant 0 : index
    %c0_5 = arith.constant 0 : index
    %4 = vector.load %arg1[%c1, %c0_4, %c0_5] : memref<4x32x512xf32, #tpu.memory_space<vmem>>, vector<1x32x512xf32>
    %5 = vector.shape_cast %4 : vector<1x32x512xf32> to vector<32x512xf32>
    %cst_6 = arith.constant dense<0.000000e+00> : vector<32x128xf32>
    %6 = tpu.matmul %5, %0, %cst_6 {dimension_numbers = #tpu.dot_dimension_numbers<[1], [0], [0], [1], [0, 0, 1, 1], [], []>} : vector<32x512xf32>, vector<512x128xf32>, vector<32x128xf32> -> vector<32x128xf32>
    %7 = arith.maximumf %3, %6 : vector<32x128xf32>
    %c2 = arith.constant 2 : index
    %c0_7 = arith.constant 0 : index
    %c0_8 = arith.constant 0 : index
    %8 = vector.load %arg1[%c2, %c0_7, %c0_8] : memref<4x32x512xf32, #tpu.memory_space<vmem>>, vector<1x32x512xf32>
    %9 = vector.shape_cast %8 : vector<1x32x512xf32> to vector<32x512xf32>
    %cst_9 = arith.constant dense<0.000000e+00> : vector<32x128xf32>
    %10 = tpu.matmul %9, %0, %cst_9 {dimension_numbers = #tpu.dot_dimension_numbers<[1], [0], [0], [1], [0, 0, 1, 1], [], []>} : vector<32x512xf32>, vector<512x128xf32>, vector<32x128xf32> -> vector<32x128xf32>
    %11 = arith.maximumf %7, %10 : vector<32x128xf32>
    %c3 = arith.constant 3 : index
    %c0_10 = arith.constant 0 : index
    %c0_11 = arith.constant 0 : index
    %12 = vector.load %arg1[%c3, %c0_10, %c0_11] : memref<4x32x512xf32, #tpu.memory_space<vmem>>, vector<1x32x512xf32>
    %13 = vector.shape_cast %12 : vector<1x32x512xf32> to vector<32x512xf32>
    %cst_12 = arith.constant dense<0.000000e+00> : vector<32x128xf32>
    %14 = tpu.matmul %13, %0, %cst_12 {dimension_numbers = #tpu.dot_dimension_numbers<[1], [0], [0], [1], [0, 0, 1, 1], [], []>} : vector<32x512xf32>, vector<512x128xf32>, vector<32x128xf32> -> vector<32x128xf32>
    %15 = arith.maximumf %11, %14 : vector<32x128xf32>
    %c0_13 = arith.constant 0 : index
    %c0_14 = arith.constant 0 : index
    %16 = vector.load %arg3[%c0_13, %c0_14] : memref<1x128xf32, #tpu.memory_space<vmem>>, vector<1x128xf32>
    %17 = vector.broadcast %16 : vector<1x128xf32> to vector<32x128xf32>
    %18 = arith.addf %15, %17 : vector<32x128xf32>
    %cst_15 = arith.constant 0.000000e+00 : f32
    %19 = vector.broadcast %cst_15 : f32 to vector<32x128xf32>
    %20 = arith.maximumf %18, %19 : vector<32x128xf32>
    %c0_16 = arith.constant 0 : index
    %c0_17 = arith.constant 0 : index
    %21 = vector.load %arg4[%c0_16, %c0_17] : memref<32x128xf32, #tpu.memory_space<vmem>>, vector<32x128xf32>
    tpu.vector_store %arg4[%c0_16, %c0_17], %20 {strides = array<i32>} : memref<32x128xf32, #tpu.memory_space<vmem>>, vector<32x128xf32>,
    return
  }
  func.func @transform_0(%arg0: i32) -> (i32, i32, i32) {
    %c0_i32 = arith.constant 0 : i32
    %c0_i32_0 = arith.constant 0 : i32
    %c0_i32_1 = arith.constant 0 : i32
    return %c0_i32, %arg0, %c0_i32_0 : i32, i32, i32
  }
  func.func @transform_1(%arg0: i32) -> (i32, i32) {
    %c0_i32 = arith.constant 0 : i32
    %c0_i32_0 = arith.constant 0 : i32
    %c0_i32_1 = arith.constant 0 : i32
    return %c0_i32, %c0_i32_0 : i32, i32
  }
  func.func @transform_2(%arg0: i32) -> (i32, i32) {
    %c0_i32 = arith.constant 0 : i32
    %c0_i32_0 = arith.constant 0 : i32
    %c0_i32_1 = arith.constant 0 : i32
    return %c0_i32, %c0_i32_0 : i32, i32
  }
  func.func @transform_3(%arg0: i32) -> (i32, i32) {
    %c0_i32 = arith.constant 0 : i32
    %c0_i32_0 = arith.constant 0 : i32
    return %arg0, %c0_i32 : i32, i32
  }
}

module attributes {stable_mosaic.version = 11 : i64} {
  func.func @_fused_matmul_kernel(%arg0: i32, %arg1: memref<1x8x1664xf32, #tpu.memory_space<vmem>>, %arg2: memref<1664x128xf32, #tpu.memory_space<vmem>>, %arg3: memref<1x128xf32, #tpu.memory_space<vmem>>, %arg4: memref<8x128xf32, #tpu.memory_space<vmem>>) attributes {dimension_semantics = [#tpu.dimension_semantics<parallel>], iteration_bounds = array<i64: 1>, scalar_prefetch = 0 : i64, scratch_operands = 0 : i64, tpu.core_type = #tpu.core_type<tc>, window_params = [{transform_indices = @transform_0, window_bounds = array<i64: 1, 8, 1664>}, {pipeline_mode = #tpu.pipeline_mode<synchronous>, transform_indices = @transform_1, window_bounds = array<i64: 1664, 128>}, {pipeline_mode = #tpu.pipeline_mode<synchronous>, transform_indices = @transform_2, window_bounds = array<i64: 1, 128>}, {transform_indices = @transform_3, window_bounds = array<i64: 8, 128>}]} {
    %c0 = arith.constant 0 : index
    %c0_0 = arith.constant 0 : index
    %0 = vector.load %arg2[%c0, %c0_0] : memref<1664x128xf32, #tpu.memory_space<vmem>>, vector<1664x128xf32>
    %c0_1 = arith.constant 0 : index
    %c0_2 = arith.constant 0 : index
    %c0_3 = arith.constant 0 : index
    %1 = vector.load %arg1[%c0_1, %c0_2, %c0_3] : memref<1x8x1664xf32, #tpu.memory_space<vmem>>, vector<1x8x1664xf32>
    %2 = vector.shape_cast %1 : vector<1x8x1664xf32> to vector<8x1664xf32>
    %cst = arith.constant dense<0.000000e+00> : vector<8x128xf32>
    %3 = tpu.matmul %2, %0, %cst {dimension_numbers = #tpu.dot_dimension_numbers<[1], [0], [0], [1], [0, 0, 1, 1], [], []>} : vector<8x1664xf32>, vector<1664x128xf32>, vector<8x128xf32> -> vector<8x128xf32>
    %c0_4 = arith.constant 0 : index
    %c0_5 = arith.constant 0 : index
    %4 = vector.load %arg3[%c0_4, %c0_5] : memref<1x128xf32, #tpu.memory_space<vmem>>, vector<1x128xf32>
    %5 = vector.broadcast %4 : vector<1x128xf32> to vector<8x128xf32>
    %6 = arith.addf %3, %5 : vector<8x128xf32>
    %cst_6 = arith.constant 0.000000e+00 : f32
    %7 = vector.broadcast %cst_6 : f32 to vector<8x128xf32>
    %8 = arith.maximumf %6, %7 : vector<8x128xf32>
    %c0_7 = arith.constant 0 : index
    %c0_8 = arith.constant 0 : index
    %9 = vector.load %arg4[%c0_7, %c0_8] : memref<8x128xf32, #tpu.memory_space<vmem>>, vector<8x128xf32>
    tpu.vector_store %arg4[%c0_7, %c0_8], %8 {strides = array<i32>} : memref<8x128xf32, #tpu.memory_space<vmem>>, vector<8x128xf32>,
    return
  }
  func.func @transform_0(%arg0: i32) -> (i32, i32, i32) {
    %c0_i32 = arith.constant 0 : i32
    %c0_i32_0 = arith.constant 0 : i32
    %c0_i32_1 = arith.constant 0 : i32
    return %c0_i32, %arg0, %c0_i32_0 : i32, i32, i32
  }
  func.func @transform_1(%arg0: i32) -> (i32, i32) {
    %c0_i32 = arith.constant 0 : i32
    %c0_i32_0 = arith.constant 0 : i32
    %c0_i32_1 = arith.constant 0 : i32
    return %c0_i32, %c0_i32_0 : i32, i32
  }
  func.func @transform_2(%arg0: i32) -> (i32, i32) {
    %c0_i32 = arith.constant 0 : i32
    %c0_i32_0 = arith.constant 0 : i32
    %c0_i32_1 = arith.constant 0 : i32
    return %c0_i32, %c0_i32_0 : i32, i32
  }
  func.func @transform_3(%arg0: i32) -> (i32, i32) {
    %c0_i32 = arith.constant 0 : i32
    %c0_i32_0 = arith.constant 0 : i32
    return %arg0, %c0_i32 : i32, i32
  }
}

module attributes {stable_mosaic.version = 11 : i64} {
  func.func @_fused_matmul_kernel(%arg0: i32, %arg1: memref<1x2x512xf32, #tpu.memory_space<vmem>>, %arg2: memref<512x128xf32, #tpu.memory_space<vmem>>, %arg3: memref<1x128xf32, #tpu.memory_space<vmem>>, %arg4: memref<2x128xf32, #tpu.memory_space<vmem>>) attributes {dimension_semantics = [#tpu.dimension_semantics<parallel>], iteration_bounds = array<i64: 1>, scalar_prefetch = 0 : i64, scratch_operands = 0 : i64, tpu.core_type = #tpu.core_type<tc>, window_params = [{transform_indices = @transform_0, window_bounds = array<i64: 1, 2, 512>}, {pipeline_mode = #tpu.pipeline_mode<synchronous>, transform_indices = @transform_1, window_bounds = array<i64: 512, 128>}, {pipeline_mode = #tpu.pipeline_mode<synchronous>, transform_indices = @transform_2, window_bounds = array<i64: 1, 128>}, {transform_indices = @transform_3, window_bounds = array<i64: 2, 128>}]} {
    %c0 = arith.constant 0 : index
    %c0_0 = arith.constant 0 : index
    %0 = vector.load %arg2[%c0, %c0_0] : memref<512x128xf32, #tpu.memory_space<vmem>>, vector<512x128xf32>
    %c0_1 = arith.constant 0 : index
    %c0_2 = arith.constant 0 : index
    %c0_3 = arith.constant 0 : index
    %1 = vector.load %arg1[%c0_1, %c0_2, %c0_3] : memref<1x2x512xf32, #tpu.memory_space<vmem>>, vector<1x2x512xf32>
    %2 = vector.shape_cast %1 : vector<1x2x512xf32> to vector<2x512xf32>
    %cst = arith.constant dense<0.000000e+00> : vector<2x128xf32>
    %3 = tpu.matmul %2, %0, %cst {dimension_numbers = #tpu.dot_dimension_numbers<[1], [0], [0], [1], [0, 0, 1, 1], [], []>} : vector<2x512xf32>, vector<512x128xf32>, vector<2x128xf32> -> vector<2x128xf32>
    %c0_4 = arith.constant 0 : index
    %c0_5 = arith.constant 0 : index
    %4 = vector.load %arg3[%c0_4, %c0_5] : memref<1x128xf32, #tpu.memory_space<vmem>>, vector<1x128xf32>
    %5 = vector.broadcast %4 : vector<1x128xf32> to vector<2x128xf32>
    %6 = arith.addf %3, %5 : vector<2x128xf32>
    %c0_6 = arith.constant 0 : index
    %c0_7 = arith.constant 0 : index
    %7 = vector.load %arg4[%c0_6, %c0_7] : memref<2x128xf32, #tpu.memory_space<vmem>>, vector<2x128xf32>
    tpu.vector_store %arg4[%c0_6, %c0_7], %6 {strides = array<i32>} : memref<2x128xf32, #tpu.memory_space<vmem>>, vector<2x128xf32>,
    return
  }
  func.func @transform_0(%arg0: i32) -> (i32, i32, i32) {
    %c0_i32 = arith.constant 0 : i32
    %c0_i32_0 = arith.constant 0 : i32
    %c0_i32_1 = arith.constant 0 : i32
    return %c0_i32, %arg0, %c0_i32_0 : i32, i32, i32
  }
  func.func @transform_1(%arg0: i32) -> (i32, i32) {
    %c0_i32 = arith.constant 0 : i32
    %c0_i32_0 = arith.constant 0 : i32
    %c0_i32_1 = arith.constant 0 : i32
    return %c0_i32, %c0_i32_0 : i32, i32
  }
  func.func @transform_2(%arg0: i32) -> (i32, i32) {
    %c0_i32 = arith.constant 0 : i32
    %c0_i32_0 = arith.constant 0 : i32
    %c0_i32_1 = arith.constant 0 : i32
    return %c0_i32, %c0_i32_0 : i32, i32
  }
  func.func @transform_3(%arg0: i32) -> (i32, i32) {
    %c0_i32 = arith.constant 0 : i32
    %c0_i32_0 = arith.constant 0 : i32
    return %arg0, %c0_i32 : i32, i32
  }
}

</mosaic_0001>

<bundles_post_ra>
// kernel: forward.4
= control target key start
LH: loop header
LB: loop body
LE: loop exit
PB: predicated region body
PF: predicated region fallthrough
CT: control target
= control target key end

     0   :  { %s1753_s12 = smov 0   ;;  %s1755_s13 = smov 0   ;;  %s2314_s0 = inlined_call_operand.vmem [shape: f32[4,512,128], index: 0, kind: input, shape index: {}]   ;;  %s2315_s1 = inlined_call_operand.vmem [shape: f32[128,128], index: 1, kind: input, shape index: {}]   ;;  %s2316_s2 = inlined_call_operand.vmem [shape: f32[1,128], index: 2, kind: input, shape index: {}]   ;;  %s2317_s3 = inlined_call_operand.vmem [shape: f32[512,128], index: 3, kind: output, shape index: {}]  }
   0x1   :  { %s1757_s14 = smov 0  }
   0x2 LB: > { %s1574_s15 = sadd.s32 4294967295, %s1731_s14   ;;  %s1770_s16 = sadd.s32 1, %s1731_s14   ;;  %s1731_s14 = sphi %s1757_s14, %s2320_s14   ;;  %s1727_s13 = sphi %s1755_s13, %s2319_s13   ;;  %s1723_s12 = sphi %s1753_s12, %s2318_s12  }
   0x3   : > { %s17_s17 = ssub.s32 %s1731_s14, %s1770_s16  ;;  %s20_s18 = sadd.s32 1, %s1727_s13 }
   0x4   : > { %p18_p0 = scmp.eq.s32.totalorder %s17_s17, 0  ;;  %p27_p1 = scmp.ne.s32.totalorder %s1727_s13, %s1723_s12 }
   0x5   : > { %p28_p2 = scmp.eq.s32.totalorder %s1731_s14, 0  ;;  %p1577_p4 = scmp.ge.s32.totalorder %s1731_s14, 2 }
   0x6   : > { %s1779_s19 = scalar_select %p18_p0, %s1727_s13, %s20_s18  }
   0x7   : > { %p29_p3 = por %p28_p2, %p27_p1  ;;  %127 = sbr.rel (%p1577_p4) target bundleno = 144 (0x90), region = 24 }
   0xc   : > { %130 = sbr.rel (!%p29_p3) target bundleno = 144 (0x90), region = 28  ;;  %s132_s20 = sand.u32 (%p29_p3), 1, %s1727_s13  }
   0xd   : > { %s1683_s21 = sshll.u32 (%p29_p3), %s1731_s14, 8  ;;  %s1578_s22 = sshll.u32 (%p29_p3), %s132_s20, 10 }
   0xe   : > { %s1787_s25 = scalar_lea.vmem (%p29_p3), %s2314_s0, %s1683_s21  ;;  %s1792_s26 = scalar_lea.vmem (%p29_p3), [#allocation2], %s1578_s22 }
   0xf   : > { %v420_v0 = vld [vmem:[%s1787_s25] sm:$0xff] (%p29_p3)  ;;  %v422_v1 = vld [vmem:[%s1787_s25 + $0x8] sm:$0xff] (%p29_p3)  ;;  %v424_v2 = vld [vmem:[%s1787_s25 + $0x10] sm:$0xff] (%p29_p3) }
  0x10   : > { %421 = vst [vmem:[%s1792_s26] sm:$0xff] (%p29_p3), %v420_v0  ;;  %v426_v3 = vld [vmem:[%s1787_s25 + $0x18] sm:$0xff] (%p29_p3)  ;;  %v428_v4 = vld [vmem:[%s1787_s25 + $0x20] sm:$0xff] (%p29_p3)  ;;  %v430_v5 = vld [vmem:[%s1787_s25 + $0x28] sm:$0xff] (%p29_p3) }
  0x11   : > { %423 = vst [vmem:[%s1792_s26 + $0x8] sm:$0xff] %v422_v1  ;;  %v432_v6 = vld [vmem:[%s1787_s25 + $0x30] sm:$0xff]  ;;  %v434_v7 = vld [vmem:[%s1787_s25 + $0x38] sm:$0xff]  ;;  %v436_v8 = vld [vmem:[%s1787_s25 + $0x40] sm:$0xff] }
  0x12   : > { %425 = vst [vmem:[%s1792_s26 + $0x10] sm:$0xff] %v424_v2  ;;  %v438_v9 = vld [vmem:[%s1787_s25 + $0x48] sm:$0xff]  ;;  %v440_v10 = vld [vmem:[%s1787_s25 + $0x50] sm:$0xff]  ;;  %v442_v11 = vld [vmem:[%s1787_s25 + $0x58] sm:$0xff] }
  0x13   : > { %427 = vst [vmem:[%s1792_s26 + $0x18] sm:$0xff] %v426_v3  ;;  %v444_v12 = vld [vmem:[%s1787_s25 + $0x60] sm:$0xff]  ;;  %v446_v13 = vld [vmem:[%s1787_s25 + $0x68] sm:$0xff]  ;;  %v448_v14 = vld [vmem:[%s1787_s25 + $0x70] sm:$0xff] }
  0x14   : > { %429 = vst [vmem:[%s1792_s26 + $0x20] sm:$0xff] %v428_v4  ;;  %v450_v15 = vld [vmem:[%s1787_s25 + $0x78] sm:$0xff]  ;;  %v452_v16 = vld [vmem:[%s1787_s25 + $0x80] sm:$0xff]  ;;  %v454_v17 = vld [vmem:[%s1787_s25 + $0x88] sm:$0xff] }
  0x15   : > { %431 = vst [vmem:[%s1792_s26 + $0x28] sm:$0xff] %v430_v5  ;;  %v456_v18 = vld [vmem:[%s1787_s25 + $0x90] sm:$0xff]  ;;  %v458_v19 = vld [vmem:[%s1787_s25 + $0x98] sm:$0xff]  ;;  %v460_v20 = vld [vmem:[%s1787_s25 + $0xa0] sm:$0xff] }
  0x16   : > { %433 = vst [vmem:[%s1792_s26 + $0x30] sm:$0xff] %v432_v6  ;;  %v462_v21 = vld [vmem:[%s1787_s25 + $0xa8] sm:$0xff]  ;;  %v464_v22 = vld [vmem:[%s1787_s25 + $0xb0] sm:$0xff]  ;;  %v466_v23 = vld [vmem:[%s1787_s25 + $0xb8] sm:$0xff] }
  0x17   : > { %435 = vst [vmem:[%s1792_s26 + $0x38] sm:$0xff] %v434_v7  ;;  %v468_v24 = vld [vmem:[%s1787_s25 + $0xc0] sm:$0xff]  ;;  %v470_v25 = vld [vmem:[%s1787_s25 + $0xc8] sm:$0xff]  ;;  %v472_v26 = vld [vmem:[%s1787_s25 + $0xd0] sm:$0xff] }
  0x18   : > { %437 = vst [vmem:[%s1792_s26 + $0x40] sm:$0xff] %v436_v8  ;;  %v474_v27 = vld [vmem:[%s1787_s25 + $0xd8] sm:$0xff]  ;;  %v476_v28 = vld [vmem:[%s1787_s25 + $0xe0] sm:$0xff]  ;;  %v478_v29 = vld [vmem:[%s1787_s25 + $0xe8] sm:$0xff] }
  0x19   : > { %439 = vst [vmem:[%s1792_s26 + $0x48] sm:$0xff] %v438_v9  ;;  %v480_v30 = vld [vmem:[%s1787_s25 + $0xf0] sm:$0xff]  ;;  %v482_v31 = vld [vmem:[%s1787_s25 + $0xf8] sm:$0xff]  ;;  %v484_v32 = vld [vmem:[%s1787_s25 + $0x200] sm:$0xff] }
  0x1a   : > { %441 = vst [vmem:[%s1792_s26 + $0x50] sm:$0xff] %v440_v10  ;;  %v486_v33 = vld [vmem:[%s1787_s25 + $0x208] sm:$0xff]  ;;  %v488_v34 = vld [vmem:[%s1787_s25 + $0x210] sm:$0xff]  ;;  %v490_v35 = vld [vmem:[%s1787_s25 + $0x218] sm:$0xff] }
  0x1b   : > { %443 = vst [vmem:[%s1792_s26 + $0x58] sm:$0xff] %v442_v11  ;;  %v492_v36 = vld [vmem:[%s1787_s25 + $0x220] sm:$0xff]  ;;  %v494_v37 = vld [vmem:[%s1787_s25 + $0x228] sm:$0xff]  ;;  %v496_v38 = vld [vmem:[%s1787_s25 + $0x230] sm:$0xff] }
  0x1c   : > { %445 = vst [vmem:[%s1792_s26 + $0x60] sm:$0xff] %v444_v12  ;;  %v498_v39 = vld [vmem:[%s1787_s25 + $0x238] sm:$0xff]  ;;  %v500_v40 = vld [vmem:[%s1787_s25 + $0x240] sm:$0xff]  ;;  %v502_v41 = vld [vmem:[%s1787_s25 + $0x248] sm:$0xff] }
  0x1d   : > { %447 = vst [vmem:[%s1792_s26 + $0x68] sm:$0xff] %v446_v13  ;;  %v504_v42 = vld [vmem:[%s1787_s25 + $0x250] sm:$0xff]  ;;  %v506_v43 = vld [vmem:[%s1787_s25 + $0x258] sm:$0xff]  ;;  %v508_v44 = vld [vmem:[%s1787_s25 + $0x260] sm:$0xff] }
  0x1e   : > { %449 = vst [vmem:[%s1792_s26 + $0x70] sm:$0xff] %v448_v14  ;;  %v510_v45 = vld [vmem:[%s1787_s25 + $0x268] sm:$0xff]  ;;  %v512_v46 = vld [vmem:[%s1787_s25 + $0x270] sm:$0xff]  ;;  %v514_v47 = vld [vmem:[%s1787_s25 + $0x278] sm:$0xff] }
  0x1f   : > { %451 = vst [vmem:[%s1792_s26 + $0x78] sm:$0xff] %v450_v15  ;;  %v516_v48 = vld [vmem:[%s1787_s25 + $0x280] sm:$0xff]  ;;  %v518_v49 = vld [vmem:[%s1787_s25 + $0x288] sm:$0xff]  ;;  %v520_v50 = vld [vmem:[%s1787_s25 + $0x290] sm:$0xff] }
  0x20   : > { %453 = vst [vmem:[%s1792_s26 + $0x80] sm:$0xff] %v452_v16  ;;  %v522_v51 = vld [vmem:[%s1787_s25 + $0x298] sm:$0xff]  ;;  %v524_v52 = vld [vmem:[%s1787_s25 + $0x2a0] sm:$0xff]  ;;  %v526_v53 = vld [vmem:[%s1787_s25 + $0x2a8] sm:$0xff] }
  0x21   : > { %455 = vst [vmem:[%s1792_s26 + $0x88] sm:$0xff] %v454_v17  ;;  %v528_v54 = vld [vmem:[%s1787_s25 + $0x2b0] sm:$0xff]  ;;  %v530_v55 = vld [vmem:[%s1787_s25 + $0x2b8] sm:$0xff]  ;;  %v532_v56 = vld [vmem:[%s1787_s25 + $0x2c0] sm:$0xff] }
  0x22   : > { %457 = vst [vmem:[%s1792_s26 + $0x90] sm:$0xff] %v456_v18  ;;  %v534_v57 = vld [vmem:[%s1787_s25 + $0x2c8] sm:$0xff]  ;;  %v536_v58 = vld [vmem:[%s1787_s25 + $0x2d0] sm:$0xff]  ;;  %v538_v59 = vld [vmem:[%s1787_s25 + $0x2d8] sm:$0xff] }
  0x23   : > { %459 = vst [vmem:[%s1792_s26 + $0x98] sm:$0xff] %v458_v19  ;;  %v540_v60 = vld [vmem:[%s1787_s25 + $0x2e0] sm:$0xff]  ;;  %v542_v61 = vld [vmem:[%s1787_s25 + $0x2e8] sm:$0xff]  ;;  %v544_v62 = vld [vmem:[%s1787_s25 + $0x2f0] sm:$0xff] }
  0x24   : > { %461 = vst [vmem:[%s1792_s26 + $0xa0] sm:$0xff] %v460_v20  ;;  %v546_v63 = vld [vmem:[%s1787_s25 + $0x2f8] sm:$0xff]  ;;  %v548_v0 = vld [vmem:[%s1787_s25 + $0x400] sm:$0xff]  ;;  %v550_v1 = vld [vmem:[%s1787_s25 + $0x408] sm:$0xff] }
  0x25   : > { %463 = vst [vmem:[%s1792_s26 + $0xa8] sm:$0xff] %v462_v21  ;;  %v552_v2 = vld [vmem:[%s1787_s25 + $0x410] sm:$0xff]  ;;  %v554_v3 = vld [vmem:[%s1787_s25 + $0x418] sm:$0xff]  ;;  %v556_v4 = vld [vmem:[%s1787_s25 + $0x420] sm:$0xff] }
  0x26   : > { %465 = vst [vmem:[%s1792_s26 + $0xb0] sm:$0xff] %v464_v22  ;;  %v558_v5 = vld [vmem:[%s1787_s25 + $0x428] sm:$0xff]  ;;  %v560_v6 = vld [vmem:[%s1787_s25 + $0x430] sm:$0xff]  ;;  %v562_v7 = vld [vmem:[%s1787_s25 + $0x438] sm:$0xff] }
  0x27   : > { %467 = vst [vmem:[%s1792_s26 + $0xb8] sm:$0xff] %v466_v23  ;;  %v564_v8 = vld [vmem:[%s1787_s25 + $0x440] sm:$0xff]  ;;  %v566_v9 = vld [vmem:[%s1787_s25 + $0x448] sm:$0xff]  ;;  %v568_v10 = vld [vmem:[%s1787_s25 + $0x450] sm:$0xff] }
  0x28   : > { %469 = vst [vmem:[%s1792_s26 + $0xc0] sm:$0xff] %v468_v24  ;;  %v570_v11 = vld [vmem:[%s1787_s25 + $0x458] sm:$0xff]  ;;  %v572_v12 = vld [vmem:[%s1787_s25 + $0x460] sm:$0xff]  ;;  %v574_v13 = vld [vmem:[%s1787_s25 + $0x468] sm:$0xff] }
  0x29   : > { %471 = vst [vmem:[%s1792_s26 + $0xc8] sm:$0xff] %v470_v25  ;;  %v576_v14 = vld [vmem:[%s1787_s25 + $0x470] sm:$0xff]  ;;  %v578_v15 = vld [vmem:[%s1787_s25 + $0x478] sm:$0xff]  ;;  %v580_v16 = vld [vmem:[%s1787_s25 + $0x480] sm:$0xff] }
  0x2a   : > { %473 = vst [vmem:[%s1792_s26 + $0xd0] sm:$0xff] %v472_v26  ;;  %v582_v17 = vld [vmem:[%s1787_s25 + $0x488] sm:$0xff]  ;;  %v584_v18 = vld [vmem:[%s1787_s25 + $0x490] sm:$0xff]  ;;  %v586_v19 = vld [vmem:[%s1787_s25 + $0x498] sm:$0xff] }
  0x2b   : > { %475 = vst [vmem:[%s1792_s26 + $0xd8] sm:$0xff] %v474_v27  ;;  %v588_v20 = vld [vmem:[%s1787_s25 + $0x4a0] sm:$0xff]  ;;  %v590_v21 = vld [vmem:[%s1787_s25 + $0x4a8] sm:$0xff]  ;;  %v592_v22 = vld [vmem:[%s1787_s25 + $0x4b0] sm:$0xff] }
  0x2c   : > { %477 = vst [vmem:[%s1792_s26 + $0xe0] sm:$0xff] %v476_v28  ;;  %v594_v23 = vld [vmem:[%s1787_s25 + $0x4b8] sm:$0xff]  ;;  %v596_v24 = vld [vmem:[%s1787_s25 + $0x4c0] sm:$0xff]  ;;  %v598_v25 = vld [vmem:[%s1787_s25 + $0x4c8] sm:$0xff] }
  0x2d   : > { %479 = vst [vmem:[%s1792_s26 + $0xe8] sm:$0xff] %v478_v29  ;;  %v600_v26 = vld [vmem:[%s1787_s25 + $0x4d0] sm:$0xff]  ;;  %v602_v27 = vld [vmem:[%s1787_s25 + $0x4d8] sm:$0xff]  ;;  %v604_v28 = vld [vmem:[%s1787_s25 + $0x4e0] sm:$0xff] }
  0x2e   : > { %481 = vst [vmem:[%s1792_s26 + $0xf0] sm:$0xff] %v480_v30  ;;  %v606_v29 = vld [vmem:[%s1787_s25 + $0x4e8] sm:$0xff]  ;;  %v608_v30 = vld [vmem:[%s1787_s25 + $0x4f0] sm:$0xff] }
  0x2f   : > { %483 = vst [vmem:[%s1792_s26 + $0xf8] sm:$0xff] %v482_v31  ;;  %v610_v31 = vld [vmem:[%s1787_s25 + $0x4f8] sm:$0xff] }
  0x30   : > { %485 = vst [vmem:[%s1792_s26 + $0x100] sm:$0xff] %v484_v32  ;;  %v612_v32 = vld [vmem:[%s1787_s25 + $0x600] sm:$0xff] }
  0x31   : > { %487 = vst [vmem:[%s1792_s26 + $0x108] sm:$0xff] %v486_v33  ;;  %v614_v33 = vld [vmem:[%s1787_s25 + $0x608] sm:$0xff] }
  0x32   : > { %489 = vst [vmem:[%s1792_s26 + $0x110] sm:$0xff] %v488_v34  ;;  %v616_v34 = vld [vmem:[%s1787_s25 + $0x610] sm:$0xff] }
  0x33   : > { %491 = vst [vmem:[%s1792_s26 + $0x118] sm:$0xff] %v490_v35  ;;  %v618_v35 = vld [vmem:[%s1787_s25 + $0x618] sm:$0xff] }
  0x34   : > { %493 = vst [vmem:[%s1792_s26 + $0x120] sm:$0xff] %v492_v36  ;;  %v620_v36 = vld [vmem:[%s1787_s25 + $0x620] sm:$0xff] }
  0x35   : > { %495 = vst [vmem:[%s1792_s26 + $0x128] sm:$0xff] %v494_v37  ;;  %v622_v37 = vld [vmem:[%s1787_s25 + $0x628] sm:$0xff] }
  0x36   : > { %497 = vst [vmem:[%s1792_s26 + $0x130] sm:$0xff] %v496_v38  ;;  %v624_v38 = vld [vmem:[%s1787_s25 + $0x630] sm:$0xff] }
  0x37   : > { %499 = vst [vmem:[%s1792_s26 + $0x138] sm:$0xff] %v498_v39  ;;  %v626_v39 = vld [vmem:[%s1787_s25 + $0x638] sm:$0xff] }
  0x38   : > { %501 = vst [vmem:[%s1792_s26 + $0x140] sm:$0xff] %v500_v40  ;;  %v628_v40 = vld [vmem:[%s1787_s25 + $0x640] sm:$0xff] }
  0x39   : > { %503 = vst [vmem:[%s1792_s26 + $0x148] sm:$0xff] %v502_v41  ;;  %v630_v41 = vld [vmem:[%s1787_s25 + $0x648] sm:$0xff] }
  0x3a   : > { %505 = vst [vmem:[%s1792_s26 + $0x150] sm:$0xff] %v504_v42  ;;  %v632_v42 = vld [vmem:[%s1787_s25 + $0x650] sm:$0xff] }
  0x3b   : > { %507 = vst [vmem:[%s1792_s26 + $0x158] sm:$0xff] %v506_v43  ;;  %v634_v43 = vld [vmem:[%s1787_s25 + $0x658] sm:$0xff] }
  0x3c   : > { %509 = vst [vmem:[%s1792_s26 + $0x160] sm:$0xff] %v508_v44  ;;  %v636_v44 = vld [vmem:[%s1787_s25 + $0x660] sm:$0xff] }
  0x3d   : > { %511 = vst [vmem:[%s1792_s26 + $0x168] sm:$0xff] %v510_v45  ;;  %v638_v45 = vld [vmem:[%s1787_s25 + $0x668] sm:$0xff] }
  0x3e   : > { %513 = vst [vmem:[%s1792_s26 + $0x170] sm:$0xff] %v512_v46  ;;  %v640_v46 = vld [vmem:[%s1787_s25 + $0x670] sm:$0xff] }
  0x3f   : > { %515 = vst [vmem:[%s1792_s26 + $0x178] sm:$0xff] %v514_v47  ;;  %v642_v47 = vld [vmem:[%s1787_s25 + $0x678] sm:$0xff] }
  0x40   : > { %517 = vst [vmem:[%s1792_s26 + $0x180] sm:$0xff] %v516_v48  ;;  %v644_v48 = vld [vmem:[%s1787_s25 + $0x680] sm:$0xff] }
  0x41   : > { %519 = vst [vmem:[%s1792_s26 + $0x188] sm:$0xff] %v518_v49  ;;  %v646_v49 = vld [vmem:[%s1787_s25 + $0x688] sm:$0xff] }
  0x42   : > { %521 = vst [vmem:[%s1792_s26 + $0x190] sm:$0xff] %v520_v50  ;;  %v648_v50 = vld [vmem:[%s1787_s25 + $0x690] sm:$0xff] }
  0x43   : > { %523 = vst [vmem:[%s1792_s26 + $0x198] sm:$0xff] %v522_v51  ;;  %v650_v51 = vld [vmem:[%s1787_s25 + $0x698] sm:$0xff] }
  0x44   : > { %525 = vst [vmem:[%s1792_s26 + $0x1a0] sm:$0xff] %v524_v52  ;;  %v652_v52 = vld [vmem:[%s1787_s25 + $0x6a0] sm:$0xff] }
  0x45   : > { %527 = vst [vmem:[%s1792_s26 + $0x1a8] sm:$0xff] %v526_v53  ;;  %v654_v53 = vld [vmem:[%s1787_s25 + $0x6a8] sm:$0xff] }
  0x46   : > { %529 = vst [vmem:[%s1792_s26 + $0x1b0] sm:$0xff] %v528_v54  ;;  %v656_v54 = vld [vmem:[%s1787_s25 + $0x6b0] sm:$0xff] }
  0x47   : > { %531 = vst [vmem:[%s1792_s26 + $0x1b8] sm:$0xff] %v530_v55  ;;  %v658_v55 = vld [vmem:[%s1787_s25 + $0x6b8] sm:$0xff] }
  0x48   : > { %533 = vst [vmem:[%s1792_s26 + $0x1c0] sm:$0xff] %v532_v56  ;;  %v660_v56 = vld [vmem:[%s1787_s25 + $0x6c0] sm:$0xff] }
  0x49   : > { %535 = vst [vmem:[%s1792_s26 + $0x1c8] sm:$0xff] %v534_v57  ;;  %v662_v57 = vld [vmem:[%s1787_s25 + $0x6c8] sm:$0xff] }
  0x4a   : > { %537 = vst [vmem:[%s1792_s26 + $0x1d0] sm:$0xff] %v536_v58  ;;  %v664_v58 = vld [vmem:[%s1787_s25 + $0x6d0] sm:$0xff] }
  0x4b   : > { %539 = vst [vmem:[%s1792_s26 + $0x1d8] sm:$0xff] %v538_v59  ;;  %v666_v59 = vld [vmem:[%s1787_s25 + $0x6d8] sm:$0xff] }
  0x4c   : > { %541 = vst [vmem:[%s1792_s26 + $0x1e0] sm:$0xff] %v540_v60  ;;  %v668_v60 = vld [vmem:[%s1787_s25 + $0x6e0] sm:$0xff] }
  0x4d   : > { %543 = vst [vmem:[%s1792_s26 + $0x1e8] sm:$0xff] %v542_v61  ;;  %v670_v61 = vld [vmem:[%s1787_s25 + $0x6e8] sm:$0xff] }
  0x4e   : > { %545 = vst [vmem:[%s1792_s26 + $0x1f0] sm:$0xff] %v544_v62  ;;  %v672_v62 = vld [vmem:[%s1787_s25 + $0x6f0] sm:$0xff] }
  0x4f   : > { %547 = vst [vmem:[%s1792_s26 + $0x1f8] sm:$0xff] %v546_v63  ;;  %v674_v63 = vld [vmem:[%s1787_s25 + $0x6f8] sm:$0xff] }
  0x50   : > { %549 = vst [vmem:[%s1792_s26 + $0x200] sm:$0xff] %v548_v0 }
  0x51   : > { %551 = vst [vmem:[%s1792_s26 + $0x208] sm:$0xff] %v550_v1 }
  0x52   : > { %553 = vst [vmem:[%s1792_s26 + $0x210] sm:$0xff] %v552_v2 }
  0x53   : > { %555 = vst [vmem:[%s1792_s26 + $0x218] sm:$0xff] %v554_v3 }
  0x54   : > { %557 = vst [vmem:[%s1792_s26 + $0x220] sm:$0xff] %v556_v4 }
  0x55   : > { %559 = vst [vmem:[%s1792_s26 + $0x228] sm:$0xff] %v558_v5 }
  0x56   : > { %561 = vst [vmem:[%s1792_s26 + $0x230] sm:$0xff] %v560_v6 }
  0x57   : > { %563 = vst [vmem:[%s1792_s26 + $0x238] sm:$0xff] %v562_v7 }
  0x58   : > { %565 = vst [vmem:[%s1792_s26 + $0x240] sm:$0xff] %v564_v8 }
  0x59   : > { %567 = vst [vmem:[%s1792_s26 + $0x248] sm:$0xff] %v566_v9 }
  0x5a   : > { %569 = vst [vmem:[%s1792_s26 + $0x250] sm:$0xff] %v568_v10 }
  0x5b   : > { %571 = vst [vmem:[%s1792_s26 + $0x258] sm:$0xff] %v570_v11 }
  0x5c   : > { %573 = vst [vmem:[%s1792_s26 + $0x260] sm:$0xff] %v572_v12 }
  0x5d   : > { %575 = vst [vmem:[%s1792_s26 + $0x268] sm:$0xff] %v574_v13 }
  0x5e   : > { %577 = vst [vmem:[%s1792_s26 + $0x270] sm:$0xff] %v576_v14 }
  0x5f   : > { %579 = vst [vmem:[%s1792_s26 + $0x278] sm:$0xff] %v578_v15 }
  0x60   : > { %581 = vst [vmem:[%s1792_s26 + $0x280] sm:$0xff] %v580_v16 }
  0x61   : > { %583 = vst [vmem:[%s1792_s26 + $0x288] sm:$0xff] %v582_v17 }
  0x62   : > { %585 = vst [vmem:[%s1792_s26 + $0x290] sm:$0xff] %v584_v18 }
  0x63   : > { %587 = vst [vmem:[%s1792_s26 + $0x298] sm:$0xff] %v586_v19 }
  0x64   : > { %589 = vst [vmem:[%s1792_s26 + $0x2a0] sm:$0xff] %v588_v20 }
  0x65   : > { %591 = vst [vmem:[%s1792_s26 + $0x2a8] sm:$0xff] %v590_v21 }
  0x66   : > { %593 = vst [vmem:[%s1792_s26 + $0x2b0] sm:$0xff] %v592_v22 }
  0x67   : > { %595 = vst [vmem:[%s1792_s26 + $0x2b8] sm:$0xff] %v594_v23 }
  0x68   : > { %597 = vst [vmem:[%s1792_s26 + $0x2c0] sm:$0xff] %v596_v24 }
  0x69   : > { %599 = vst [vmem:[%s1792_s26 + $0x2c8] sm:$0xff] %v598_v25 }
  0x6a   : > { %601 = vst [vmem:[%s1792_s26 + $0x2d0] sm:$0xff] %v600_v26 }
  0x6b   : > { %603 = vst [vmem:[%s1792_s26 + $0x2d8] sm:$0xff] %v602_v27 }
  0x6c   : > { %605 = vst [vmem:[%s1792_s26 + $0x2e0] sm:$0xff] %v604_v28 }
  0x6d   : > { %607 = vst [vmem:[%s1792_s26 + $0x2e8] sm:$0xff] %v606_v29 }
  0x6e   : > { %609 = vst [vmem:[%s1792_s26 + $0x2f0] sm:$0xff] %v608_v30 }
  0x6f   : > { %611 = vst [vmem:[%s1792_s26 + $0x2f8] sm:$0xff] %v610_v31 }
  0x70   : > { %613 = vst [vmem:[%s1792_s26 + $0x300] sm:$0xff] %v612_v32 }
  0x71   : > { %615 = vst [vmem:[%s1792_s26 + $0x308] sm:$0xff] %v614_v33 }
  0x72   : > { %617 = vst [vmem:[%s1792_s26 + $0x310] sm:$0xff] %v616_v34 }
  0x73   : > { %619 = vst [vmem:[%s1792_s26 + $0x318] sm:$0xff] %v618_v35 }
  0x74   : > { %621 = vst [vmem:[%s1792_s26 + $0x320] sm:$0xff] %v620_v36 }
  0x75   : > { %623 = vst [vmem:[%s1792_s26 + $0x328] sm:$0xff] %v622_v37 }
  0x76   : > { %625 = vst [vmem:[%s1792_s26 + $0x330] sm:$0xff] %v624_v38 }
  0x77   : > { %627 = vst [vmem:[%s1792_s26 + $0x338] sm:$0xff] %v626_v39 }
  0x78   : > { %629 = vst [vmem:[%s1792_s26 + $0x340] sm:$0xff] %v628_v40 }
  0x79   : > { %631 = vst [vmem:[%s1792_s26 + $0x348] sm:$0xff] %v630_v41 }
  0x7a   : > { %633 = vst [vmem:[%s1792_s26 + $0x350] sm:$0xff] %v632_v42 }
  0x7b   : > { %635 = vst [vmem:[%s1792_s26 + $0x358] sm:$0xff] %v634_v43 }
  0x7c   : > { %637 = vst [vmem:[%s1792_s26 + $0x360] sm:$0xff] %v636_v44 }
  0x7d   : > { %639 = vst [vmem:[%s1792_s26 + $0x368] sm:$0xff] %v638_v45 }
  0x7e   : > { %641 = vst [vmem:[%s1792_s26 + $0x370] sm:$0xff] %v640_v46 }
  0x7f   : > { %643 = vst [vmem:[%s1792_s26 + $0x378] sm:$0xff] %v642_v47 }
  0x80   : > { %645 = vst [vmem:[%s1792_s26 + $0x380] sm:$0xff] %v644_v48 }
  0x81   : > { %647 = vst [vmem:[%s1792_s26 + $0x388] sm:$0xff] %v646_v49 }
  0x82   : > { %649 = vst [vmem:[%s1792_s26 + $0x390] sm:$0xff] %v648_v50 }
  0x83   : > { %651 = vst [vmem:[%s1792_s26 + $0x398] sm:$0xff] %v650_v51 }
  0x84   : > { %653 = vst [vmem:[%s1792_s26 + $0x3a0] sm:$0xff] %v652_v52 }
  0x85   : > { %655 = vst [vmem:[%s1792_s26 + $0x3a8] sm:$0xff] %v654_v53 }
  0x86   : > { %657 = vst [vmem:[%s1792_s26 + $0x3b0] sm:$0xff] %v656_v54 }
  0x87   : > { %659 = vst [vmem:[%s1792_s26 + $0x3b8] sm:$0xff] %v658_v55 }
  0x88   : > { %661 = vst [vmem:[%s1792_s26 + $0x3c0] sm:$0xff] %v660_v56 }
  0x89   : > { %663 = vst [vmem:[%s1792_s26 + $0x3c8] sm:$0xff] %v662_v57 }
  0x8a   : > { %665 = vst [vmem:[%s1792_s26 + $0x3d0] sm:$0xff] %v664_v58 }
  0x8b   : > { %667 = vst [vmem:[%s1792_s26 + $0x3d8] sm:$0xff] %v666_v59 }
  0x8c   : > { %669 = vst [vmem:[%s1792_s26 + $0x3e0] sm:$0xff] %v668_v60 }
  0x8d   : > { %671 = vst [vmem:[%s1792_s26 + $0x3e8] sm:$0xff] %v670_v61 }
  0x8e   : > { %673 = vst [vmem:[%s1792_s26 + $0x3f0] sm:$0xff] %v672_v62 }
  0x8f   : > { %675 = vst [vmem:[%s1792_s26 + $0x3f8] sm:$0xff] %v674_v63 }
  0x90 PF: > { %p1581_p5 = scmp.ge.s32.totalorder %s1731_s14, 1  ;;  %p680_p6 = scmp.lt.s32.totalorder %s1731_s14, 3 }
  0x92   : > { %p681_p7 = pnand %p1581_p5, %p680_p6 }
  0x93   : > { %s687_s30 = sand.u32 (!%p681_p7), 1, %s1723_s12   ;;  %s1583_s18 = sshll.u32 (!%p681_p7), %s1574_s15, 5 }
  0x94   : > { %684 = sbr.rel (%p681_p7) target bundleno = 574 (0x23e), region = 66  ;;  %s1582_s6 = sshll.u32 (!%p681_p7), %s687_s30, 10 }
  0x95   : > { %s2098_s17 = scalar_lea.vmem (!%p681_p7), [#allocation2], %s1582_s6  ;;  %p712_p8 = scmp.lt.s32.totalorder (!%p681_p7), %s1583_s18, 63 }
  0x99   : > { %v732_v0 = vld [vmem:[%s2315_s1 + $0x78] sm:$0xff]  ;;  %v731_v1 = vld [vmem:[%s2315_s1 + $0x70] sm:$0xff]  ;;  %v730_v2 = vld [vmem:[%s2315_s1 + $0x68] sm:$0xff]  ;;  %s2322_s18 = smov (!%p712_p8, %s1583_s18), 63 }
  0x9a   : > { %1089 = vmatpush.msra.mxu2 %v732_v0  ;;  %1267 = vmatpush.msra.mxu3 %v732_v0  ;;  %v729_v3 = vld [vmem:[%s2315_s1 + $0x60] sm:$0xff]  ;;  %v728_v4 = vld [vmem:[%s2315_s1 + $0x58] sm:$0xff]  ;;  %v727_v5 = vld [vmem:[%s2315_s1 + $0x50] sm:$0xff]  ;;  %s1584_s20 = sshll.u32 %s2322_s18, 3 }
  0x9b   : > { %765 = vmatpush.msra.mxu0 %v732_v0  ;;  %911 = vmatpush.msra.mxu1 %v732_v0  ;;  %v726_v6 = vld [vmem:[%s2315_s1 + $0x48] sm:$0xff]  ;;  %v725_v7 = vld [vmem:[%s2315_s1 + $0x40] sm:$0xff]  ;;  %v724_v8 = vld [vmem:[%s2315_s1 + $0x38] sm:$0xff]  ;;  %s2183_s23 = scalar_lea.vmem %s2317_s3, %s1584_s20 }
  0x9c   : > { %1090 = vmatpush.msra.mxu2 %v731_v1  ;;  %1268 = vmatpush.msra.mxu3 %v731_v1  ;;  %v723_v9 = vld [vmem:[%s2315_s1 + $0x30] sm:$0xff]  ;;  %v722_v10 = vld [vmem:[%s2315_s1 + $0x28] sm:$0xff]  ;;  %v721_v11 = vld [vmem:[%s2315_s1 + $0x20] sm:$0xff] }
  0x9d   : > { %766 = vmatpush.msra.mxu0 %v731_v1  ;;  %912 = vmatpush.msra.mxu1 %v731_v1  ;;  %v720_v12 = vld [vmem:[%s2315_s1 + $0x18] sm:$0xff]  ;;  %v719_v13 = vld [vmem:[%s2315_s1 + $0x10] sm:$0xff]  ;;  %v718_v14 = vld [vmem:[%s2315_s1 + $0x8] sm:$0xff] }
  0x9e   : > { %1091 = vmatpush.msra.mxu2 %v730_v2  ;;  %1269 = vmatpush.msra.mxu3 %v730_v2  ;;  %v717_v15 = vld [vmem:[%s2315_s1] sm:$0xff]  ;;  %v1618_v20 = vld [vmem:[%s2098_s17 + $0x208] sm:$0xff]  ;;  %v1619_v24 = vld [vmem:[%s2098_s17 + $0x210] sm:$0xff] }
  0x9f   : > { %767 = vmatpush.msra.mxu0 %v730_v2  ;;  %913 = vmatpush.msra.mxu1 %v730_v2  ;;  %v1617_v16 = vld [vmem:[%s2098_s17 + $0x200] sm:$0xff]  ;;  %v1650_v21 = vld [vmem:[%s2098_s17 + $0x308] sm:$0xff]  ;;  %v1651_v25 = vld [vmem:[%s2098_s17 + $0x310] sm:$0xff] }
  0xa0   : > { %1092 = vmatpush.msra.mxu2 %v729_v3  ;;  %1270 = vmatpush.msra.mxu3 %v729_v3  ;;  %v1649_v17 = vld [vmem:[%s2098_s17 + $0x300] sm:$0xff]  ;;  %v734_v22 = vld [vmem:[%s2098_s17 + $0x8] sm:$0xff]  ;;  %v735_v26 = vld [vmem:[%s2098_s17 + $0x10] sm:$0xff] }
  0xa1   : > { %768 = vmatpush.msra.mxu0 %v729_v3  ;;  %914 = vmatpush.msra.mxu1 %v729_v3  ;;  %v733_v18 = vld [vmem:[%s2098_s17] sm:$0xff]  ;;  %v1586_v23 = vld [vmem:[%s2098_s17 + $0x108] sm:$0xff]  ;;  %v1587_v27 = vld [vmem:[%s2098_s17 + $0x110] sm:$0xff] }
  0xa2   : > { %1093 = vmatpush.msra.mxu2 %v728_v4  ;;  %1271 = vmatpush.msra.mxu3 %v728_v4  ;;  %v1585_v19 = vld [vmem:[%s2098_s17 + $0x100] sm:$0xff]  ;;  %v1620_v28 = vld [vmem:[%s2098_s17 + $0x218] sm:$0xff]  ;;  %v1622_v36 = vld [vmem:[%s2098_s17 + $0x228] sm:$0xff] }
  0xa3   : > { %769 = vmatpush.msra.mxu0 %v728_v4  ;;  %915 = vmatpush.msra.mxu1 %v728_v4  ;;  %v1652_v29 = vld [vmem:[%s2098_s17 + $0x318] sm:$0xff]  ;;  %v1621_v32 = vld [vmem:[%s2098_s17 + $0x220] sm:$0xff]  ;;  %v1654_v37 = vld [vmem:[%s2098_s17 + $0x328] sm:$0xff] }
  0xa4   : > { %1094 = vmatpush.msra.mxu2 %v727_v5  ;;  %1272 = vmatpush.msra.mxu3 %v727_v5  ;;  %v736_v30 = vld [vmem:[%s2098_s17 + $0x18] sm:$0xff]  ;;  %v1653_v33 = vld [vmem:[%s2098_s17 + $0x320] sm:$0xff]  ;;  %v738_v38 = vld [vmem:[%s2098_s17 + $0x28] sm:$0xff] }
  0xa5   : > { %770 = vmatpush.msra.mxu0 %v727_v5  ;;  %916 = vmatpush.msra.mxu1 %v727_v5  ;;  %v1588_v31 = vld [vmem:[%s2098_s17 + $0x118] sm:$0xff]  ;;  %v737_v34 = vld [vmem:[%s2098_s17 + $0x20] sm:$0xff]  ;;  %v1590_v39 = vld [vmem:[%s2098_s17 + $0x128] sm:$0xff] }
  0xa6   : > { %1095 = vmatpush.msra.mxu2 %v726_v6  ;;  %1273 = vmatpush.msra.mxu3 %v726_v6  ;;  %v1589_v35 = vld [vmem:[%s2098_s17 + $0x120] sm:$0xff]  ;;  %v1623_v40 = vld [vmem:[%s2098_s17 + $0x230] sm:$0xff]  ;;  %v1624_v44 = vld [vmem:[%s2098_s17 + $0x238] sm:$0xff] }
  0xa7   : > { %771 = vmatpush.msra.mxu0 %v726_v6  ;;  %917 = vmatpush.msra.mxu1 %v726_v6  ;;  %v1655_v41 = vld [vmem:[%s2098_s17 + $0x330] sm:$0xff]  ;;  %v1656_v45 = vld [vmem:[%s2098_s17 + $0x338] sm:$0xff]  ;;  %v1625_v48 = vld [vmem:[%s2098_s17 + $0x240] sm:$0xff] }
  0xa8   : > { %1096 = vmatpush.msra.mxu2 %v725_v7  ;;  %1274 = vmatpush.msra.mxu3 %v725_v7  ;;  %v739_v42 = vld [vmem:[%s2098_s17 + $0x30] sm:$0xff]  ;;  %v740_v46 = vld [vmem:[%s2098_s17 + $0x38] sm:$0xff]  ;;  %v1657_v49 = vld [vmem:[%s2098_s17 + $0x340] sm:$0xff] }
  0xa9   : > { %772 = vmatpush.msra.mxu0 %v725_v7  ;;  %918 = vmatpush.msra.mxu1 %v725_v7  ;;  %v1591_v43 = vld [vmem:[%s2098_s17 + $0x130] sm:$0xff]  ;;  %v1592_v47 = vld [vmem:[%s2098_s17 + $0x138] sm:$0xff]  ;;  %v741_v50 = vld [vmem:[%s2098_s17 + $0x40] sm:$0xff] }
  0xaa   : > { %1097 = vmatpush.msra.mxu2 %v724_v8  ;;  %1275 = vmatpush.msra.mxu3 %v724_v8  ;;  %v1593_v51 = vld [vmem:[%s2098_s17 + $0x140] sm:$0xff]  ;;  %v1626_v52 = vld [vmem:[%s2098_s17 + $0x248] sm:$0xff]  ;;  %v1627_v56 = vld [vmem:[%s2098_s17 + $0x250] sm:$0xff] }
  0xab   : > { %773 = vmatpush.msra.mxu0 %v724_v8  ;;  %919 = vmatpush.msra.mxu1 %v724_v8  ;;  %v1658_v53 = vld [vmem:[%s2098_s17 + $0x348] sm:$0xff]  ;;  %v1659_v57 = vld [vmem:[%s2098_s17 + $0x350] sm:$0xff]  ;;  %v1628_v60 = vld [vmem:[%s2098_s17 + $0x258] sm:$0xff] }
  0xac   : > { %1098 = vmatpush.msra.mxu2 %v723_v9  ;;  %1276 = vmatpush.msra.mxu3 %v723_v9  ;;  %v742_v54 = vld [vmem:[%s2098_s17 + $0x48] sm:$0xff]  ;;  %v743_v58 = vld [vmem:[%s2098_s17 + $0x50] sm:$0xff]  ;;  %v1660_v61 = vld [vmem:[%s2098_s17 + $0x358] sm:$0xff] }
  0xad   : > { %774 = vmatpush.msra.mxu0 %v723_v9  ;;  %920 = vmatpush.msra.mxu1 %v723_v9  ;;  %v1594_v55 = vld [vmem:[%s2098_s17 + $0x148] sm:$0xff]  ;;  %v1595_v59 = vld [vmem:[%s2098_s17 + $0x150] sm:$0xff]  ;;  %v744_v62 = vld [vmem:[%s2098_s17 + $0x58] sm:$0xff] }
  0xae   : > { %1099 = vmatpush.msra.mxu2 %v722_v10  ;;  %1277 = vmatpush.msra.mxu3 %v722_v10  ;;  %v1596_v63 = vld [vmem:[%s2098_s17 + $0x158] sm:$0xff]  ;;  %v1629_v0 = vld [vmem:[%s2098_s17 + $0x260] sm:$0xff]  ;;  %v1630_v4 = vld [vmem:[%s2098_s17 + $0x268] sm:$0xff] }
  0xaf   : > { %775 = vmatpush.msra.mxu0 %v722_v10  ;;  %921 = vmatpush.msra.mxu1 %v722_v10  ;;  %v1661_v1 = vld [vmem:[%s2098_s17 + $0x360] sm:$0xff]  ;;  %v1662_v5 = vld [vmem:[%s2098_s17 + $0x368] sm:$0xff]  ;;  %v1631_v8 = vld [vmem:[%s2098_s17 + $0x270] sm:$0xff] }
  0xb0   : > { %1100 = vmatpush.msra.mxu2 %v721_v11  ;;  %1278 = vmatpush.msra.mxu3 %v721_v11  ;;  %v745_v2 = vld [vmem:[%s2098_s17 + $0x60] sm:$0xff]  ;;  %v746_v6 = vld [vmem:[%s2098_s17 + $0x68] sm:$0xff]  ;;  %v1663_v9 = vld [vmem:[%s2098_s17 + $0x370] sm:$0xff] }
  0xb1   : > { %776 = vmatpush.msra.mxu0 %v721_v11  ;;  %922 = vmatpush.msra.mxu1 %v721_v11  ;;  %v1597_v3 = vld [vmem:[%s2098_s17 + $0x160] sm:$0xff]  ;;  %v1598_v7 = vld [vmem:[%s2098_s17 + $0x168] sm:$0xff]  ;;  %v747_v10 = vld [vmem:[%s2098_s17 + $0x70] sm:$0xff] }
  0xb2   : > { %1101 = vmatpush.msra.mxu2 %v720_v12  ;;  %1279 = vmatpush.msra.mxu3 %v720_v12  ;;  %v1599_v11 = vld [vmem:[%s2098_s17 + $0x170] sm:$0xff] }
  0xb3   : > { %777 = vmatpush.msra.mxu0 %v720_v12  ;;  %923 = vmatpush.msra.mxu1 %v720_v12  ;;  %v1632_v12 = vld [vmem:[%s2098_s17 + $0x278] sm:$0xff] }
  0xb4   : > { %1102 = vmatpush.msra.mxu2 %v719_v13  ;;  %1280 = vmatpush.msra.mxu3 %v719_v13 }
  0xb5   : > { %778 = vmatpush.msra.mxu0 %v719_v13  ;;  %924 = vmatpush.msra.mxu1 %v719_v13  ;;  %v1664_v13 = vld [vmem:[%s2098_s17 + $0x378] sm:$0xff] }
  0xb6   : > { %1103 = vmatpush.msra.mxu2 %v718_v14  ;;  %1281 = vmatpush.msra.mxu3 %v718_v14 }
  0xb7   : > { %779 = vmatpush.msra.mxu0 %v718_v14  ;;  %925 = vmatpush.msra.mxu1 %v718_v14  ;;  %v748_v14 = vld [vmem:[%s2098_s17 + $0x78] sm:$0xff] }
  0xb8   : > { %1104 = vmatpush.msra.mxu2 %v717_v15  ;;  %1282 = vmatpush.msra.mxu3 %v717_v15 }
  0xb9   : > { %1105 = vmatmul.f32.vlgmr.msra.gmra.mxu2 %v1617_v16  ;;  %1283 = vmatmul.f32.vlgmr.msra.gmra.mxu3 %v1649_v17  ;;  %v1633_v16 = vld [vmem:[%s2098_s17 + $0x280] sm:$0xff] }
  0xba   : > { %780 = vmatpush.msra.mxu0 %v717_v15  ;;  %926 = vmatpush.msra.mxu1 %v717_v15  ;;  %v1600_v15 = vld [vmem:[%s2098_s17 + $0x178] sm:$0xff]  ;;  %v1665_v17 = vld [vmem:[%s2098_s17 + $0x380] sm:$0xff] }
  0xbb   : > { %781 = vmatmul.f32.vlgmr.msra.gmra.mxu0 %v733_v18  ;;  %927 = vmatmul.f32.vlgmr.msra.gmra.mxu1 %v1585_v19 }
  0xc1   : > { %1108 = vmatmul.f32.gmra.mxu2 %v1618_v20  ;;  %1286 = vmatmul.f32.gmra.mxu3 %v1650_v21  ;;  %v749_v20 = vld [vmem:[%s2098_s17 + $0x80] sm:$0xff] }
  0xc2   : > { %v1601_v21 = vld [vmem:[%s2098_s17 + $0x180] sm:$0xff] }
  0xc3   : > { %784 = vmatmul.f32.gmra.mxu0 %v734_v22  ;;  %930 = vmatmul.f32.gmra.mxu1 %v1586_v23 }
  0xc9   : > { %1111 = vmatmul.f32.gmra.mxu2 %v1619_v24  ;;  %1289 = vmatmul.f32.gmra.mxu3 %v1651_v25 }
  0xcb   : > { %787 = vmatmul.f32.gmra.mxu0 %v735_v26  ;;  %933 = vmatmul.f32.gmra.mxu1 %v1587_v27  ;;  %v2173_v26 = vld [vmem:[%s2316_s2] ss:$0 sm:$0xff]  ;;  %v1634_v27 = vld [vmem:[%s2098_s17 + $0x288] sm:$0xff] }
  0xd1   : > { %1114 = vmatmul.f32.gmra.mxu2 %v1620_v28  ;;  %1292 = vmatmul.f32.gmra.mxu3 %v1652_v29  ;;  %v1666_v28 = vld [vmem:[%s2098_s17 + $0x388] sm:$0xff] }
  0xd3   : > { %790 = vmatmul.f32.gmra.mxu0 %v736_v30  ;;  %936 = vmatmul.f32.gmra.mxu1 %v1588_v31 }
  0xd9   : > { %1117 = vmatmul.f32.gmra.mxu2 %v1621_v32  ;;  %1295 = vmatmul.f32.gmra.mxu3 %v1653_v33  ;;  %v750_v32 = vld [vmem:[%s2098_s17 + $0x88] sm:$0xff] }
  0xda   : > { %v1602_v33 = vld [vmem:[%s2098_s17 + $0x188] sm:$0xff] }
  0xdb   : > { %793 = vmatmul.f32.gmra.mxu0 %v737_v34  ;;  %939 = vmatmul.f32.gmra.mxu1 %v1589_v35 }
  0xe1   : > { %1120 = vmatmul.f32.gmra.mxu2 %v1622_v36  ;;  %1298 = vmatmul.f32.gmra.mxu3 %v1654_v37 }
  0xe3   : > { %796 = vmatmul.f32.gmra.mxu0 %v738_v38  ;;  %942 = vmatmul.f32.gmra.mxu1 %v1590_v39 }
  0xe9   : > { %1123 = vmatmul.f32.gmra.mxu2 %v1623_v40  ;;  %1301 = vmatmul.f32.gmra.mxu3 %v1655_v41  ;;  %v1635_v40 = vld [vmem:[%s2098_s17 + $0x290] sm:$0xff] }
  0xea   : > { %v1667_v41 = vld [vmem:[%s2098_s17 + $0x390] sm:$0xff] }
  0xeb   : > { %799 = vmatmul.f32.gmra.mxu0 %v739_v42  ;;  %945 = vmatmul.f32.gmra.mxu1 %v1591_v43 }
  0xf1   : > { %1126 = vmatmul.f32.gmra.mxu2 %v1624_v44  ;;  %1304 = vmatmul.f32.gmra.mxu3 %v1656_v45  ;;  %v751_v45 = vld [vmem:[%s2098_s17 + $0x90] sm:$0xff] }
  0xf3   : > { %802 = vmatmul.f32.gmra.mxu0 %v740_v46  ;;  %948 = vmatmul.f32.gmra.mxu1 %v1592_v47  ;;  %v1603_v46 = vld [vmem:[%s2098_s17 + $0x190] sm:$0xff] }
  0xf9   : > { %1129 = vmatmul.f32.gmra.mxu2 %v1625_v48  ;;  %1307 = vmatmul.f32.gmra.mxu3 %v1657_v49 }
  0xfb   : > { %805 = vmatmul.f32.gmra.mxu0 %v741_v50  ;;  %951 = vmatmul.f32.gmra.mxu1 %v1593_v51 }
 0x101   : > { %1132 = vmatmul.f32.gmra.mxu2 %v1626_v52  ;;  %1310 = vmatmul.f32.gmra.mxu3 %v1658_v53  ;;  %v1636_v53 = vld [vmem:[%s2098_s17 + $0x298] sm:$0xff] }
 0x103   : > { %808 = vmatmul.f32.gmra.mxu0 %v742_v54  ;;  %954 = vmatmul.f32.gmra.mxu1 %v1594_v55  ;;  %v1668_v54 = vld [vmem:[%s2098_s17 + $0x398] sm:$0xff] }
 0x109   : > { %1135 = vmatmul.f32.gmra.mxu2 %v1627_v56  ;;  %1313 = vmatmul.f32.gmra.mxu3 %v1659_v57 }
 0x10b   : > { %811 = vmatmul.f32.gmra.mxu0 %v743_v58  ;;  %957 = vmatmul.f32.gmra.mxu1 %v1595_v59  ;;  %v752_v58 = vld [vmem:[%s2098_s17 + $0x98] sm:$0xff] }
 0x10c   : > { %v1604_v59 = vld [vmem:[%s2098_s17 + $0x198] sm:$0xff] }
 0x111   : > { %1138 = vmatmul.f32.gmra.mxu2 %v1628_v60  ;;  %1316 = vmatmul.f32.gmra.mxu3 %v1660_v61 }
 0x113   : > { %814 = vmatmul.f32.gmra.mxu0 %v744_v62  ;;  %960 = vmatmul.f32.gmra.mxu1 %v1596_v63 }
 0x119   : > { %1141 = vmatmul.f32.gmra.mxu2 %v1629_v0  ;;  %1319 = vmatmul.f32.gmra.mxu3 %v1661_v1 }
 0x11b   : > { %817 = vmatmul.f32.gmra.mxu0 %v745_v2  ;;  %963 = vmatmul.f32.gmra.mxu1 %v1597_v3  ;;  %v1637_v2 = vld [vmem:[%s2098_s17 + $0x2a0] sm:$0xff] }
 0x11c   : > { %v1669_v3 = vld [vmem:[%s2098_s17 + $0x3a0] sm:$0xff] }
 0x121   : > { %1144 = vmatmul.f32.gmra.mxu2 %v1630_v4  ;;  %1322 = vmatmul.f32.gmra.mxu3 %v1662_v5 }
 0x123   : > { %820 = vmatmul.f32.gmra.mxu0 %v746_v6  ;;  %966 = vmatmul.f32.gmra.mxu1 %v1598_v7  ;;  %v753_v7 = vld [vmem:[%s2098_s17 + $0xa0] sm:$0xff] }
 0x129   : > { %1147 = vmatmul.f32.gmra.mxu2 %v1631_v8  ;;  %1325 = vmatmul.f32.gmra.mxu3 %v1663_v9  ;;  %v1605_v8 = vld [vmem:[%s2098_s17 + $0x1a0] sm:$0xff] }
 0x12b   : > { %823 = vmatmul.f32.gmra.mxu0 %v747_v10  ;;  %969 = vmatmul.f32.gmra.mxu1 %v1599_v11 }
 0x131   : > { %1150 = vmatmul.f32.gmra.mxu2 %v1632_v12  ;;  %1328 = vmatmul.f32.gmra.mxu3 %v1664_v13 }
 0x133   : > { %826 = vmatmul.f32.gmra.mxu0 %v748_v14  ;;  %972 = vmatmul.f32.gmra.mxu1 %v1600_v15  ;;  %v1638_v15 = vld [vmem:[%s2098_s17 + $0x2a8] sm:$0xff] }
 0x138   : > { %v782_v18 = vpop.f32.mrf.mxu0  ;;  %v928_v19 = vpop.f32.mrf.mxu1 }
 0x139   : > { %1153 = vmatmul.f32.gmra.mxu2 %v1633_v16  ;;  %v1024_v22 = vmax.f32 %v782_v18, %v928_v19  ;;  %1331 = vmatmul.f32.gmra.mxu3 %v1665_v17  ;;  %v1670_v16 = vld [vmem:[%s2098_s17 + $0x3a8] sm:$0xff] }
 0x13b   : > { %829 = vmatmul.f32.gmra.mxu0 %v749_v20  ;;  %975 = vmatmul.f32.gmra.mxu1 %v1601_v21  ;;  %v754_v20 = vld [vmem:[%s2098_s17 + $0xa8] sm:$0xff] }
 0x13c   : > { %v1106_v23 = vpop.f32.mrf.mxu2  ;;  %v1284_v24 = vpop.f32.mrf.mxu3  ;;  %v1606_v21 = vld [vmem:[%s2098_s17 + $0x1a8] sm:$0xff] }
 0x13d   : > { %v1202_v25 = vmax.f32 %v1024_v22, %v1106_v23 }
 0x13f   : > { %v1380_v29 = vmax.f32 %v1202_v25, %v1284_v24 }
 0x140   : > { %v785_v30 = vpop.f32.mrf.mxu0  ;;  %v931_v31 = vpop.f32.mrf.mxu1 }
 0x141   : > { %v1416_v34 = vadd.f32 %v2173_v26, %v1380_v29  ;;  %1156 = vmatmul.f32.gmra.mxu2 %v1634_v27  ;;  %v1025_v35 = vmax.f32 %v785_v30, %v931_v31  ;;  %1334 = vmatmul.f32.gmra.mxu3 %v1666_v28  ;;  %v1639_v29 = vld [vmem:[%s2098_s17 + $0x2b0] sm:$0xff] }
 0x142   : > { %v1671_v30 = vld [vmem:[%s2098_s17 + $0x3b0] sm:$0xff] }
 0x143   : > { %v1448_v36 = vmax.f32 %v1416_v34, 0.0  ;;  %832 = vmatmul.f32.gmra.mxu0 %v750_v32  ;;  %978 = vmatmul.f32.gmra.mxu1 %v1602_v33  ;;  %v755_v34 = vld [vmem:[%s2098_s17 + $0xb0] sm:$0xff] }
 0x144   : > { %v1109_v37 = vpop.f32.mrf.mxu2  ;;  %v1287_v38 = vpop.f32.mrf.mxu3 }
 0x145   : > { %1480 = vst [vmem:[%s2183_s23] sm:$0xff] %v1448_v36  ;;  %v1203_v39 = vmax.f32 %v1025_v35, %v1109_v37  ;;  %v1607_v35 = vld [vmem:[%s2098_s17 + $0x1b0] sm:$0xff] }
 0x147   : > { %v1381_v42 = vmax.f32 %v1203_v39, %v1287_v38 }
 0x148   : > { %v788_v43 = vpop.f32.mrf.mxu0  ;;  %v934_v44 = vpop.f32.mrf.mxu1 }
 0x149   : > { %v1417_v47 = vadd.f32 %v2173_v26, %v1381_v42  ;;  %1159 = vmatmul.f32.gmra.mxu2 %v1635_v40  ;;  %v1026_v48 = vmax.f32 %v788_v43, %v934_v44  ;;  %1337 = vmatmul.f32.gmra.mxu3 %v1667_v41  ;;  %v1640_v42 = vld [vmem:[%s2098_s17 + $0x2b8] sm:$0xff] }
 0x14a   : > { %v1672_v43 = vld [vmem:[%s2098_s17 + $0x3b8] sm:$0xff] }
 0x14b   : > { %v1449_v49 = vmax.f32 %v1417_v47, 0.0  ;;  %835 = vmatmul.f32.gmra.mxu0 %v751_v45  ;;  %981 = vmatmul.f32.gmra.mxu1 %v1603_v46  ;;  %v756_v47 = vld [vmem:[%s2098_s17 + $0xb8] sm:$0xff] }
 0x14c   : > { %v1112_v50 = vpop.f32.mrf.mxu2  ;;  %v1290_v51 = vpop.f32.mrf.mxu3 }
 0x14d   : > { %1481 = vst [vmem:[%s2183_s23 + $0x8] sm:$0xff] %v1449_v49  ;;  %v1204_v52 = vmax.f32 %v1026_v48, %v1112_v50  ;;  %v1608_v48 = vld [vmem:[%s2098_s17 + $0x1b8] sm:$0xff] }
 0x14f   : > { %v1382_v55 = vmax.f32 %v1204_v52, %v1290_v51 }
 0x150   : > { %v791_v56 = vpop.f32.mrf.mxu0  ;;  %v937_v57 = vpop.f32.mrf.mxu1 }
 0x151   : > { %v1418_v60 = vadd.f32 %v2173_v26, %v1382_v55  ;;  %1162 = vmatmul.f32.gmra.mxu2 %v1636_v53  ;;  %v1027_v61 = vmax.f32 %v791_v56, %v937_v57  ;;  %1340 = vmatmul.f32.gmra.mxu3 %v1668_v54  ;;  %v1641_v55 = vld [vmem:[%s2098_s17 + $0x2c0] sm:$0xff] }
 0x152   : > { %v1673_v56 = vld [vmem:[%s2098_s17 + $0x3c0] sm:$0xff] }
 0x153   : > { %v1450_v62 = vmax.f32 %v1418_v60, 0.0  ;;  %838 = vmatmul.f32.gmra.mxu0 %v752_v58  ;;  %984 = vmatmul.f32.gmra.mxu1 %v1604_v59  ;;  %v757_v60 = vld [vmem:[%s2098_s17 + $0xc0] sm:$0xff] }
 0x154   : > { %v1115_v63 = vpop.f32.mrf.mxu2  ;;  %v1293_v0 = vpop.f32.mrf.mxu3 }
 0x155   : > { %1482 = vst [vmem:[%s2183_s23 + $0x10] sm:$0xff] %v1450_v62  ;;  %v1205_v1 = vmax.f32 %v1027_v61, %v1115_v63  ;;  %v1609_v61 = vld [vmem:[%s2098_s17 + $0x1c0] sm:$0xff] }
 0x157   : > { %v1383_v4 = vmax.f32 %v1205_v1, %v1293_v0 }
 0x158   : > { %v794_v5 = vpop.f32.mrf.mxu0  ;;  %v940_v6 = vpop.f32.mrf.mxu1 }
 0x159   : > { %v1419_v9 = vadd.f32 %v2173_v26, %v1383_v4  ;;  %1165 = vmatmul.f32.gmra.mxu2 %v1637_v2  ;;  %v1028_v10 = vmax.f32 %v794_v5, %v940_v6  ;;  %1343 = vmatmul.f32.gmra.mxu3 %v1669_v3  ;;  %v1642_v4 = vld [vmem:[%s2098_s17 + $0x2c8] sm:$0xff] }
 0x15a   : > { %v1674_v5 = vld [vmem:[%s2098_s17 + $0x3c8] sm:$0xff] }
 0x15b   : > { %v1451_v11 = vmax.f32 %v1419_v9, 0.0  ;;  %841 = vmatmul.f32.gmra.mxu0 %v753_v7  ;;  %987 = vmatmul.f32.gmra.mxu1 %v1605_v8  ;;  %v758_v9 = vld [vmem:[%s2098_s17 + $0xc8] sm:$0xff] }
 0x15c   : > { %v1118_v12 = vpop.f32.mrf.mxu2  ;;  %v1296_v13 = vpop.f32.mrf.mxu3 }
 0x15d   : > { %1483 = vst [vmem:[%s2183_s23 + $0x18] sm:$0xff] %v1451_v11  ;;  %v1206_v14 = vmax.f32 %v1028_v10, %v1118_v12  ;;  %v1610_v10 = vld [vmem:[%s2098_s17 + $0x1c8] sm:$0xff] }
 0x15f   : > { %v1384_v17 = vmax.f32 %v1206_v14, %v1296_v13 }
 0x160   : > { %v797_v18 = vpop.f32.mrf.mxu0  ;;  %v943_v19 = vpop.f32.mrf.mxu1 }
 0x161   : > { %v1420_v22 = vadd.f32 %v2173_v26, %v1384_v17  ;;  %1168 = vmatmul.f32.gmra.mxu2 %v1638_v15  ;;  %v1029_v23 = vmax.f32 %v797_v18, %v943_v19  ;;  %1346 = vmatmul.f32.gmra.mxu3 %v1670_v16  ;;  %v1643_v17 = vld [vmem:[%s2098_s17 + $0x2d0] sm:$0xff] }
 0x162   : > { %v1675_v18 = vld [vmem:[%s2098_s17 + $0x3d0] sm:$0xff] }
 0x163   : > { %v1452_v24 = vmax.f32 %v1420_v22, 0.0  ;;  %844 = vmatmul.f32.gmra.mxu0 %v754_v20  ;;  %990 = vmatmul.f32.gmra.mxu1 %v1606_v21  ;;  %v759_v22 = vld [vmem:[%s2098_s17 + $0xd0] sm:$0xff] }
 0x164   : > { %v1121_v25 = vpop.f32.mrf.mxu2  ;;  %v1299_v27 = vpop.f32.mrf.mxu3 }
 0x165   : > { %1484 = vst [vmem:[%s2183_s23 + $0x20] sm:$0xff] %v1452_v24  ;;  %v1207_v28 = vmax.f32 %v1029_v23, %v1121_v25  ;;  %v1611_v23 = vld [vmem:[%s2098_s17 + $0x1d0] sm:$0xff] }
 0x167   : > { %v1385_v31 = vmax.f32 %v1207_v28, %v1299_v27 }
 0x168   : > { %v800_v32 = vpop.f32.mrf.mxu0  ;;  %v946_v33 = vpop.f32.mrf.mxu1 }
 0x169   : > { %v1421_v36 = vadd.f32 %v2173_v26, %v1385_v31  ;;  %1171 = vmatmul.f32.gmra.mxu2 %v1639_v29  ;;  %v1030_v37 = vmax.f32 %v800_v32, %v946_v33  ;;  %1349 = vmatmul.f32.gmra.mxu3 %v1671_v30  ;;  %v1644_v31 = vld [vmem:[%s2098_s17 + $0x2d8] sm:$0xff] }
 0x16a   : > { %v1676_v32 = vld [vmem:[%s2098_s17 + $0x3d8] sm:$0xff] }
 0x16b   : > { %v1453_v38 = vmax.f32 %v1421_v36, 0.0  ;;  %847 = vmatmul.f32.gmra.mxu0 %v755_v34  ;;  %993 = vmatmul.f32.gmra.mxu1 %v1607_v35  ;;  %v760_v36 = vld [vmem:[%s2098_s17 + $0xd8] sm:$0xff] }
 0x16c   : > { %v1124_v39 = vpop.f32.mrf.mxu2  ;;  %v1302_v40 = vpop.f32.mrf.mxu3 }
 0x16d   : > { %1485 = vst [vmem:[%s2183_s23 + $0x28] sm:$0xff] %v1453_v38  ;;  %v1208_v41 = vmax.f32 %v1030_v37, %v1124_v39  ;;  %v1612_v37 = vld [vmem:[%s2098_s17 + $0x1d8] sm:$0xff] }
 0x16f   : > { %v1386_v44 = vmax.f32 %v1208_v41, %v1302_v40 }
 0x170   : > { %v803_v45 = vpop.f32.mrf.mxu0  ;;  %v949_v46 = vpop.f32.mrf.mxu1 }
 0x171   : > { %v1422_v49 = vadd.f32 %v2173_v26, %v1386_v44  ;;  %1174 = vmatmul.f32.gmra.mxu2 %v1640_v42  ;;  %v1031_v50 = vmax.f32 %v803_v45, %v949_v46  ;;  %1352 = vmatmul.f32.gmra.mxu3 %v1672_v43  ;;  %v1645_v44 = vld [vmem:[%s2098_s17 + $0x2e0] sm:$0xff] }
 0x172   : > { %v1677_v45 = vld [vmem:[%s2098_s17 + $0x3e0] sm:$0xff] }
 0x173   : > { %v1454_v51 = vmax.f32 %v1422_v49, 0.0  ;;  %850 = vmatmul.f32.gmra.mxu0 %v756_v47  ;;  %996 = vmatmul.f32.gmra.mxu1 %v1608_v48  ;;  %v761_v49 = vld [vmem:[%s2098_s17 + $0xe0] sm:$0xff] }
 0x174   : > { %v1127_v52 = vpop.f32.mrf.mxu2  ;;  %v1305_v53 = vpop.f32.mrf.mxu3 }
 0x175   : > { %1486 = vst [vmem:[%s2183_s23 + $0x30] sm:$0xff] %v1454_v51  ;;  %v1209_v54 = vmax.f32 %v1031_v50, %v1127_v52  ;;  %v1613_v50 = vld [vmem:[%s2098_s17 + $0x1e0] sm:$0xff] }
 0x177   : > { %v1387_v57 = vmax.f32 %v1209_v54, %v1305_v53 }
 0x178   : > { %v806_v58 = vpop.f32.mrf.mxu0  ;;  %v952_v59 = vpop.f32.mrf.mxu1 }
 0x179   : > { %v1423_v62 = vadd.f32 %v2173_v26, %v1387_v57  ;;  %1177 = vmatmul.f32.gmra.mxu2 %v1641_v55  ;;  %v1032_v63 = vmax.f32 %v806_v58, %v952_v59  ;;  %1355 = vmatmul.f32.gmra.mxu3 %v1673_v56  ;;  %v1646_v57 = vld [vmem:[%s2098_s17 + $0x2e8] sm:$0xff] }
 0x17a   : > { %v1678_v58 = vld [vmem:[%s2098_s17 + $0x3e8] sm:$0xff] }
 0x17b   : > { %v1455_v0 = vmax.f32 %v1423_v62, 0.0  ;;  %853 = vmatmul.f32.gmra.mxu0 %v757_v60  ;;  %999 = vmatmul.f32.gmra.mxu1 %v1609_v61  ;;  %v762_v62 = vld [vmem:[%s2098_s17 + $0xe8] sm:$0xff] }
 0x17c   : > { %v1130_v1 = vpop.f32.mrf.mxu2  ;;  %v1308_v2 = vpop.f32.mrf.mxu3 }
 0x17d   : > { %1487 = vst [vmem:[%s2183_s23 + $0x38] sm:$0xff] %v1455_v0  ;;  %v1210_v3 = vmax.f32 %v1032_v63, %v1130_v1  ;;  %v1614_v63 = vld [vmem:[%s2098_s17 + $0x1e8] sm:$0xff] }
 0x17f   : > { %v1388_v6 = vmax.f32 %v1210_v3, %v1308_v2 }
 0x180   : > { %v809_v7 = vpop.f32.mrf.mxu0  ;;  %v955_v8 = vpop.f32.mrf.mxu1 }
 0x181   : > { %v1424_v11 = vadd.f32 %v2173_v26, %v1388_v6  ;;  %1180 = vmatmul.f32.gmra.mxu2 %v1642_v4  ;;  %v1033_v12 = vmax.f32 %v809_v7, %v955_v8  ;;  %1358 = vmatmul.f32.gmra.mxu3 %v1674_v5  ;;  %v1647_v6 = vld [vmem:[%s2098_s17 + $0x2f0] sm:$0xff] }
 0x182   : > { %v1679_v7 = vld [vmem:[%s2098_s17 + $0x3f0] sm:$0xff] }
 0x183   : > { %v1456_v13 = vmax.f32 %v1424_v11, 0.0  ;;  %856 = vmatmul.f32.gmra.mxu0 %v758_v9  ;;  %1002 = vmatmul.f32.gmra.mxu1 %v1610_v10  ;;  %v763_v11 = vld [vmem:[%s2098_s17 + $0xf0] sm:$0xff] }
 0x184   : > { %v1133_v14 = vpop.f32.mrf.mxu2  ;;  %v1311_v15 = vpop.f32.mrf.mxu3 }
 0x185   : > { %1488 = vst [vmem:[%s2183_s23 + $0x40] sm:$0xff] %v1456_v13  ;;  %v1211_v16 = vmax.f32 %v1033_v12, %v1133_v14  ;;  %v1615_v12 = vld [vmem:[%s2098_s17 + $0x1f0] sm:$0xff] }
 0x187   : > { %v1389_v19 = vmax.f32 %v1211_v16, %v1311_v15 }
 0x188   : > { %v812_v20 = vpop.f32.mrf.mxu0  ;;  %v958_v21 = vpop.f32.mrf.mxu1 }
 0x189   : > { %v1425_v24 = vadd.f32 %v2173_v26, %v1389_v19  ;;  %1183 = vmatmul.f32.gmra.mxu2 %v1643_v17  ;;  %v1034_v25 = vmax.f32 %v812_v20, %v958_v21  ;;  %1361 = vmatmul.f32.gmra.mxu3 %v1675_v18  ;;  %v1648_v19 = vld [vmem:[%s2098_s17 + $0x2f8] sm:$0xff] }
 0x18a   : > { %v1680_v20 = vld [vmem:[%s2098_s17 + $0x3f8] sm:$0xff] }
 0x18b   : > { %v1457_v27 = vmax.f32 %v1425_v24, 0.0  ;;  %859 = vmatmul.f32.gmra.mxu0 %v759_v22  ;;  %1005 = vmatmul.f32.gmra.mxu1 %v1611_v23  ;;  %v764_v24 = vld [vmem:[%s2098_s17 + $0xf8] sm:$0xff] }
 0x18c   : > { %v1136_v28 = vpop.f32.mrf.mxu2  ;;  %v1314_v29 = vpop.f32.mrf.mxu3 }
 0x18d   : > { %1489 = vst [vmem:[%s2183_s23 + $0x48] sm:$0xff] %v1457_v27  ;;  %v1212_v30 = vmax.f32 %v1034_v25, %v1136_v28  ;;  %v1616_v25 = vld [vmem:[%s2098_s17 + $0x1f8] sm:$0xff] }
 0x18f   : > { %v1390_v33 = vmax.f32 %v1212_v30, %v1314_v29 }
 0x190   : > { %v815_v34 = vpop.f32.mrf.mxu0  ;;  %v961_v35 = vpop.f32.mrf.mxu1 }
 0x191   : > { %v1426_v38 = vadd.f32 %v2173_v26, %v1390_v33  ;;  %1186 = vmatmul.f32.gmra.mxu2 %v1644_v31  ;;  %v1035_v39 = vmax.f32 %v815_v34, %v961_v35  ;;  %1364 = vmatmul.f32.gmra.mxu3 %v1676_v32 }
 0x193   : > { %v1458_v40 = vmax.f32 %v1426_v38, 0.0  ;;  %862 = vmatmul.f32.gmra.mxu0 %v760_v36  ;;  %1008 = vmatmul.f32.gmra.mxu1 %v1612_v37 }
 0x194   : > { %v1139_v41 = vpop.f32.mrf.mxu2  ;;  %v1317_v42 = vpop.f32.mrf.mxu3 }
 0x195   : > { %1490 = vst [vmem:[%s2183_s23 + $0x50] sm:$0xff] %v1458_v40  ;;  %v1213_v43 = vmax.f32 %v1035_v39, %v1139_v41 }
 0x197   : > { %v1391_v46 = vmax.f32 %v1213_v43, %v1317_v42 }
 0x198   : > { %v818_v47 = vpop.f32.mrf.mxu0  ;;  %v964_v48 = vpop.f32.mrf.mxu1 }
 0x199   : > { %v1427_v51 = vadd.f32 %v2173_v26, %v1391_v46  ;;  %1189 = vmatmul.f32.gmra.mxu2 %v1645_v44  ;;  %v1036_v52 = vmax.f32 %v818_v47, %v964_v48  ;;  %1367 = vmatmul.f32.gmra.mxu3 %v1677_v45 }
 0x19b   : > { %v1459_v53 = vmax.f32 %v1427_v51, 0.0  ;;  %865 = vmatmul.f32.gmra.mxu0 %v761_v49  ;;  %1011 = vmatmul.f32.gmra.mxu1 %v1613_v50 }
 0x19c   : > { %v1142_v54 = vpop.f32.mrf.mxu2  ;;  %v1320_v55 = vpop.f32.mrf.mxu3 }
 0x19d   : > { %1491 = vst [vmem:[%s2183_s23 + $0x58] sm:$0xff] %v1459_v53  ;;  %v1214_v56 = vmax.f32 %v1036_v52, %v1142_v54 }
 0x19f   : > { %v1392_v59 = vmax.f32 %v1214_v56, %v1320_v55 }
 0x1a0   : > { %v821_v60 = vpop.f32.mrf.mxu0  ;;  %v967_v61 = vpop.f32.mrf.mxu1 }
 0x1a1   : > { %v1428_v0 = vadd.f32 %v2173_v26, %v1392_v59  ;;  %1192 = vmatmul.f32.gmra.mxu2 %v1646_v57  ;;  %v1037_v1 = vmax.f32 %v821_v60, %v967_v61  ;;  %1370 = vmatmul.f32.gmra.mxu3 %v1678_v58 }
 0x1a3   : > { %v1460_v2 = vmax.f32 %v1428_v0, 0.0  ;;  %868 = vmatmul.f32.gmra.mxu0 %v762_v62  ;;  %1014 = vmatmul.f32.gmra.mxu1 %v1614_v63 }
 0x1a4   : > { %v1145_v3 = vpop.f32.mrf.mxu2  ;;  %v1323_v4 = vpop.f32.mrf.mxu3 }
 0x1a5   : > { %1492 = vst [vmem:[%s2183_s23 + $0x60] sm:$0xff] %v1460_v2  ;;  %v1215_v5 = vmax.f32 %v1037_v1, %v1145_v3 }
 0x1a7   : > { %v1393_v8 = vmax.f32 %v1215_v5, %v1323_v4 }
 0x1a8   : > { %v824_v9 = vpop.f32.mrf.mxu0  ;;  %v970_v10 = vpop.f32.mrf.mxu1 }
 0x1a9   : > { %v1429_v13 = vadd.f32 %v2173_v26, %v1393_v8  ;;  %1195 = vmatmul.f32.gmra.mxu2 %v1647_v6  ;;  %v1038_v14 = vmax.f32 %v824_v9, %v970_v10  ;;  %1373 = vmatmul.f32.gmra.mxu3 %v1679_v7 }
 0x1ab   : > { %v1461_v15 = vmax.f32 %v1429_v13, 0.0  ;;  %871 = vmatmul.f32.gmra.mxu0 %v763_v11  ;;  %1017 = vmatmul.f32.gmra.mxu1 %v1615_v12 }
 0x1ac   : > { %v1148_v16 = vpop.f32.mrf.mxu2  ;;  %v1326_v17 = vpop.f32.mrf.mxu3 }
 0x1ad   : > { %1493 = vst [vmem:[%s2183_s23 + $0x68] sm:$0xff] %v1461_v15  ;;  %v1216_v18 = vmax.f32 %v1038_v14, %v1148_v16 }
 0x1af   : > { %v1394_v21 = vmax.f32 %v1216_v18, %v1326_v17 }
 0x1b0   : > { %v827_v22 = vpop.f32.mrf.mxu0  ;;  %v973_v23 = vpop.f32.mrf.mxu1 }
 0x1b1   : > { %v1430_v27 = vadd.f32 %v2173_v26, %v1394_v21  ;;  %1198 = vmatmul.f32.gmra.mxu2 %v1648_v19  ;;  %v1039_v28 = vmax.f32 %v827_v22, %v973_v23  ;;  %1376 = vmatmul.f32.gmra.mxu3 %v1680_v20 }
 0x1b3   : > { %v1462_v29 = vmax.f32 %v1430_v27, 0.0  ;;  %874 = vmatmul.f32.gmra.mxu0 %v764_v24  ;;  %1020 = vmatmul.f32.gmra.mxu1 %v1616_v25 }
 0x1b4   : > { %v1151_v30 = vpop.f32.mrf.mxu2  ;;  %v1329_v31 = vpop.f32.mrf.mxu3 }
 0x1b5   : > { %1494 = vst [vmem:[%s2183_s23 + $0x70] sm:$0xff] %v1462_v29  ;;  %v1217_v32 = vmax.f32 %v1039_v28, %v1151_v30 }
 0x1b7   : > { %v1395_v33 = vmax.f32 %v1217_v32, %v1329_v31 }
 0x1b8   : > { %v830_v34 = vpop.f32.mrf.mxu0  ;;  %v976_v35 = vpop.f32.mrf.mxu1 }
 0x1b9   : > { %v1431_v36 = vadd.f32 %v2173_v26, %v1395_v33  ;;  %v1040_v37 = vmax.f32 %v830_v34, %v976_v35 }
 0x1bb   : > { %v1463_v38 = vmax.f32 %v1431_v36, 0.0 }
 0x1bc   : > { %v1154_v39 = vpop.f32.mrf.mxu2  ;;  %v1332_v40 = vpop.f32.mrf.mxu3 }
 0x1bd   : > { %1495 = vst [vmem:[%s2183_s23 + $0x78] sm:$0xff] %v1463_v38  ;;  %v1218_v41 = vmax.f32 %v1040_v37, %v1154_v39 }
 0x1bf   : > { %v1396_v42 = vmax.f32 %v1218_v41, %v1332_v40 }
 0x1c0   : > { %v833_v43 = vpop.f32.mrf.mxu0  ;;  %v979_v44 = vpop.f32.mrf.mxu1 }
 0x1c1   : > { %v1432_v45 = vadd.f32 %v2173_v26, %v1396_v42  ;;  %v1041_v46 = vmax.f32 %v833_v43, %v979_v44 }
 0x1c3   : > { %v1464_v47 = vmax.f32 %v1432_v45, 0.0 }
 0x1c4   : > { %v1157_v48 = vpop.f32.mrf.mxu2  ;;  %v1335_v49 = vpop.f32.mrf.mxu3 }
 0x1c5   : > { %1496 = vst [vmem:[%s2183_s23 + $0x80] sm:$0xff] %v1464_v47  ;;  %v1219_v50 = vmax.f32 %v1041_v46, %v1157_v48 }
 0x1c7   : > { %v1397_v51 = vmax.f32 %v1219_v50, %v1335_v49 }
 0x1c8   : > { %v836_v52 = vpop.f32.mrf.mxu0  ;;  %v982_v53 = vpop.f32.mrf.mxu1 }
 0x1c9   : > { %v1433_v54 = vadd.f32 %v2173_v26, %v1397_v51  ;;  %v1042_v55 = vmax.f32 %v836_v52, %v982_v53 }
 0x1cb   : > { %v1465_v56 = vmax.f32 %v1433_v54, 0.0 }
 0x1cc   : > { %v1160_v57 = vpop.f32.mrf.mxu2  ;;  %v1338_v58 = vpop.f32.mrf.mxu3 }
 0x1cd   : > { %1497 = vst [vmem:[%s2183_s23 + $0x88] sm:$0xff] %v1465_v56  ;;  %v1220_v59 = vmax.f32 %v1042_v55, %v1160_v57 }
 0x1cf   : > { %v1398_v60 = vmax.f32 %v1220_v59, %v1338_v58 }
 0x1d0   : > { %v839_v61 = vpop.f32.mrf.mxu0  ;;  %v985_v62 = vpop.f32.mrf.mxu1 }
 0x1d1   : > { %v1434_v63 = vadd.f32 %v2173_v26, %v1398_v60  ;;  %v1043_v0 = vmax.f32 %v839_v61, %v985_v62 }
 0x1d3   : > { %v1466_v1 = vmax.f32 %v1434_v63, 0.0 }
 0x1d4   : > { %v1163_v2 = vpop.f32.mrf.mxu2  ;;  %v1341_v3 = vpop.f32.mrf.mxu3 }
 0x1d5   : > { %1498 = vst [vmem:[%s2183_s23 + $0x90] sm:$0xff] %v1466_v1  ;;  %v1221_v4 = vmax.f32 %v1043_v0, %v1163_v2 }
 0x1d7   : > { %v1399_v5 = vmax.f32 %v1221_v4, %v1341_v3 }
 0x1d8   : > { %v842_v6 = vpop.f32.mrf.mxu0  ;;  %v988_v7 = vpop.f32.mrf.mxu1 }
 0x1d9   : > { %v1435_v8 = vadd.f32 %v2173_v26, %v1399_v5  ;;  %v1044_v9 = vmax.f32 %v842_v6, %v988_v7 }
 0x1db   : > { %v1467_v10 = vmax.f32 %v1435_v8, 0.0 }
 0x1dc   : > { %v1166_v11 = vpop.f32.mrf.mxu2  ;;  %v1344_v12 = vpop.f32.mrf.mxu3 }
 0x1dd   : > { %1499 = vst [vmem:[%s2183_s23 + $0x98] sm:$0xff] %v1467_v10  ;;  %v1222_v13 = vmax.f32 %v1044_v9, %v1166_v11 }
 0x1df   : > { %v1400_v14 = vmax.f32 %v1222_v13, %v1344_v12 }
 0x1e0   : > { %v845_v15 = vpop.f32.mrf.mxu0  ;;  %v991_v16 = vpop.f32.mrf.mxu1 }
 0x1e1   : > { %v1436_v17 = vadd.f32 %v2173_v26, %v1400_v14  ;;  %v1045_v18 = vmax.f32 %v845_v15, %v991_v16 }
 0x1e3   : > { %v1468_v19 = vmax.f32 %v1436_v17, 0.0 }
 0x1e4   : > { %v1169_v20 = vpop.f32.mrf.mxu2  ;;  %v1347_v21 = vpop.f32.mrf.mxu3 }
 0x1e5   : > { %1500 = vst [vmem:[%s2183_s23 + $0xa0] sm:$0xff] %v1468_v19  ;;  %v1223_v22 = vmax.f32 %v1045_v18, %v1169_v20 }
 0x1e7   : > { %v1401_v23 = vmax.f32 %v1223_v22, %v1347_v21 }
 0x1e8   : > { %v848_v24 = vpop.f32.mrf.mxu0  ;;  %v994_v25 = vpop.f32.mrf.mxu1 }
 0x1e9   : > { %v1437_v27 = vadd.f32 %v2173_v26, %v1401_v23  ;;  %v1046_v28 = vmax.f32 %v848_v24, %v994_v25 }
 0x1eb   : > { %v1469_v29 = vmax.f32 %v1437_v27, 0.0 }
 0x1ec   : > { %v1172_v30 = vpop.f32.mrf.mxu2  ;;  %v1350_v31 = vpop.f32.mrf.mxu3 }
 0x1ed   : > { %1501 = vst [vmem:[%s2183_s23 + $0xa8] sm:$0xff] %v1469_v29  ;;  %v1224_v32 = vmax.f32 %v1046_v28, %v1172_v30 }
 0x1ef   : > { %v1402_v33 = vmax.f32 %v1224_v32, %v1350_v31 }
 0x1f0   : > { %v851_v34 = vpop.f32.mrf.mxu0  ;;  %v997_v35 = vpop.f32.mrf.mxu1 }
 0x1f1   : > { %v1438_v36 = vadd.f32 %v2173_v26, %v1402_v33  ;;  %v1047_v37 = vmax.f32 %v851_v34, %v997_v35 }
 0x1f3   : > { %v1470_v38 = vmax.f32 %v1438_v36, 0.0 }
 0x1f4   : > { %v1175_v39 = vpop.f32.mrf.mxu2  ;;  %v1353_v40 = vpop.f32.mrf.mxu3 }
 0x1f5   : > { %1502 = vst [vmem:[%s2183_s23 + $0xb0] sm:$0xff] %v1470_v38  ;;  %v1225_v41 = vmax.f32 %v1047_v37, %v1175_v39 }
 0x1f7   : > { %v1403_v42 = vmax.f32 %v1225_v41, %v1353_v40 }
 0x1f8   : > { %v854_v43 = vpop.f32.mrf.mxu0  ;;  %v1000_v44 = vpop.f32.mrf.mxu1 }
 0x1f9   : > { %v1439_v45 = vadd.f32 %v2173_v26, %v1403_v42  ;;  %v1048_v46 = vmax.f32 %v854_v43, %v1000_v44 }
 0x1fb   : > { %v1471_v47 = vmax.f32 %v1439_v45, 0.0 }
 0x1fc   : > { %v1178_v48 = vpop.f32.mrf.mxu2  ;;  %v1356_v49 = vpop.f32.mrf.mxu3 }
 0x1fd   : > { %1503 = vst [vmem:[%s2183_s23 + $0xb8] sm:$0xff] %v1471_v47  ;;  %v1226_v50 = vmax.f32 %v1048_v46, %v1178_v48 }
 0x1ff   : > { %v1404_v51 = vmax.f32 %v1226_v50, %v1356_v49 }
 0x200   : > { %v857_v52 = vpop.f32.mrf.mxu0  ;;  %v1003_v53 = vpop.f32.mrf.mxu1 }
 0x201   : > { %v1440_v54 = vadd.f32 %v2173_v26, %v1404_v51  ;;  %v1049_v55 = vmax.f32 %v857_v52, %v1003_v53 }
 0x203   : > { %v1472_v56 = vmax.f32 %v1440_v54, 0.0 }
 0x204   : > { %v1181_v57 = vpop.f32.mrf.mxu2  ;;  %v1359_v58 = vpop.f32.mrf.mxu3 }
 0x205   : > { %1504 = vst [vmem:[%s2183_s23 + $0xc0] sm:$0xff] %v1472_v56  ;;  %v1227_v59 = vmax.f32 %v1049_v55, %v1181_v57 }
 0x207   : > { %v1405_v60 = vmax.f32 %v1227_v59, %v1359_v58 }
 0x208   : > { %v860_v61 = vpop.f32.mrf.mxu0  ;;  %v1006_v62 = vpop.f32.mrf.mxu1 }
 0x209   : > { %v1441_v63 = vadd.f32 %v2173_v26, %v1405_v60  ;;  %v1050_v0 = vmax.f32 %v860_v61, %v1006_v62 }
 0x20b   : > { %v1473_v1 = vmax.f32 %v1441_v63, 0.0 }
 0x20c   : > { %v1184_v2 = vpop.f32.mrf.mxu2  ;;  %v1362_v3 = vpop.f32.mrf.mxu3 }
 0x20d   : > { %1505 = vst [vmem:[%s2183_s23 + $0xc8] sm:$0xff] %v1473_v1  ;;  %v1228_v4 = vmax.f32 %v1050_v0, %v1184_v2 }
 0x20f   : > { %v1406_v5 = vmax.f32 %v1228_v4, %v1362_v3 }
 0x210   : > { %v863_v6 = vpop.f32.mrf.mxu0  ;;  %v1009_v7 = vpop.f32.mrf.mxu1 }
 0x211   : > { %v1442_v8 = vadd.f32 %v2173_v26, %v1406_v5  ;;  %v1051_v9 = vmax.f32 %v863_v6, %v1009_v7 }
 0x213   : > { %v1474_v10 = vmax.f32 %v1442_v8, 0.0 }
 0x214   : > { %v1187_v11 = vpop.f32.mrf.mxu2  ;;  %v1365_v12 = vpop.f32.mrf.mxu3 }
 0x215   : > { %1506 = vst [vmem:[%s2183_s23 + $0xd0] sm:$0xff] %v1474_v10  ;;  %v1229_v13 = vmax.f32 %v1051_v9, %v1187_v11 }
 0x217   : > { %v1407_v14 = vmax.f32 %v1229_v13, %v1365_v12 }
 0x218   : > { %v866_v15 = vpop.f32.mrf.mxu0  ;;  %v1012_v16 = vpop.f32.mrf.mxu1 }
 0x219   : > { %v1443_v17 = vadd.f32 %v2173_v26, %v1407_v14  ;;  %v1052_v18 = vmax.f32 %v866_v15, %v1012_v16 }
 0x21b   : > { %v1475_v19 = vmax.f32 %v1443_v17, 0.0 }
 0x21c   : > { %v1190_v20 = vpop.f32.mrf.mxu2  ;;  %v1368_v21 = vpop.f32.mrf.mxu3 }
 0x21d   : > { %1507 = vst [vmem:[%s2183_s23 + $0xd8] sm:$0xff] %v1475_v19  ;;  %v1230_v22 = vmax.f32 %v1052_v18, %v1190_v20 }
 0x21f   : > { %v1408_v23 = vmax.f32 %v1230_v22, %v1368_v21 }
 0x220   : > { %v869_v24 = vpop.f32.mrf.mxu0  ;;  %v1015_v25 = vpop.f32.mrf.mxu1 }
 0x221   : > { %v1444_v27 = vadd.f32 %v2173_v26, %v1408_v23  ;;  %v1053_v28 = vmax.f32 %v869_v24, %v1015_v25 }
 0x223   : > { %v1476_v29 = vmax.f32 %v1444_v27, 0.0 }
 0x224   : > { %v1193_v30 = vpop.f32.mrf.mxu2  ;;  %v1371_v31 = vpop.f32.mrf.mxu3 }
 0x225   : > { %1508 = vst [vmem:[%s2183_s23 + $0xe0] sm:$0xff] %v1476_v29  ;;  %v1231_v32 = vmax.f32 %v1053_v28, %v1193_v30 }
 0x227   : > { %v1409_v33 = vmax.f32 %v1231_v32, %v1371_v31 }
 0x228   : > { %v872_v34 = vpop.f32.mrf.mxu0  ;;  %v1018_v35 = vpop.f32.mrf.mxu1 }
 0x229   : > { %v1445_v36 = vadd.f32 %v2173_v26, %v1409_v33  ;;  %v1054_v37 = vmax.f32 %v872_v34, %v1018_v35 }
 0x22b   : > { %v1477_v38 = vmax.f32 %v1445_v36, 0.0 }
 0x22c   : > { %v1196_v39 = vpop.f32.mrf.mxu2  ;;  %v1374_v40 = vpop.f32.mrf.mxu3 }
 0x22d   : > { %1509 = vst [vmem:[%s2183_s23 + $0xe8] sm:$0xff] %v1477_v38  ;;  %v1232_v41 = vmax.f32 %v1054_v37, %v1196_v39 }
 0x22f   : > { %v1410_v42 = vmax.f32 %v1232_v41, %v1374_v40 }
 0x230   : > { %v875_v43 = vpop.f32.mrf.mxu0  ;;  %v1021_v44 = vpop.f32.mrf.mxu1 }
 0x231   : > { %v1446_v45 = vadd.f32 %v2173_v26, %v1410_v42  ;;  %v1055_v46 = vmax.f32 %v875_v43, %v1021_v44 }
 0x233   : > { %v1478_v47 = vmax.f32 %v1446_v45, 0.0 }
 0x234   : > { %v1199_v48 = vpop.f32.mrf.mxu2  ;;  %v1377_v49 = vpop.f32.mrf.mxu3 }
 0x235   : > { %1510 = vst [vmem:[%s2183_s23 + $0xf0] sm:$0xff] %v1478_v47  ;;  %v1233_v50 = vmax.f32 %v1055_v46, %v1199_v48 }
 0x237   : > { %v1411_v51 = vmax.f32 %v1233_v50, %v1377_v49 }
 0x239   : > { %v1447_v52 = vadd.f32 %v2173_v26, %v1411_v51 }
 0x23b   : > { %v1479_v53 = vmax.f32 %v1447_v52, 0.0 }
 0x23d   : > { %1511 = vst [vmem:[%s2183_s23 + $0xf8] sm:$0xff] %v1479_v53 }
 0x23e PF: > { %p10_p9 = scmp.ge.s32.totalorder %s1770_s16, 4   ;;  %s2318_s12 = smov %s1727_s13 }
 0x23f   : > { %s2319_s13 = smov %s1779_s19  ;;  %s2320_s14 = smov %s1770_s16 }
 0x240   :  { %12 = sbr.rel (!%p10_p9) target bundleno = 2 (0x2), region = 108 }

// kernel: forward.5
= control target key start
LH: loop header
LB: loop body
LE: loop exit
PB: predicated region body
PF: predicated region fallthrough
CT: control target
= control target key end

     0   :  { %s1514_s1 = inlined_call_operand.vmem [shape: f32[512,128], index: 1, kind: input, shape index: {}]   ;;  %s1515_s0 = inlined_call_operand.vmem [shape: f32[4,32,512], index: 0, kind: input, shape index: {}]   ;;  %s1516_s2 = inlined_call_operand.vmem [shape: f32[1,128], index: 2, kind: input, shape index: {}]   ;;  %s1517_s3 = inlined_call_operand.vmem [shape: f32[32,128], index: 3, kind: output, shape index: {}]  }
   0x1   :  { %v713_v0 = vld [vmem:[%s1514_s1 + $0x178] sm:$0xff]  ;;  %v718_v1 = vld [vmem:[%s1514_s1 + $0x170] sm:$0xff]  ;;  %v740_v5 = vld [vmem:[%s1514_s1 + $0x168] sm:$0xff] }
   0x2   :  { %v723_v2 = vld [vmem:[%s1514_s1 + $0x1f8] sm:$0xff]  ;;  %152 = vmatpush.msra.mxu2 %v713_v0  ;;  %v747_v6 = vld [vmem:[%s1514_s1 + $0x1f0] sm:$0xff]  ;;  %v764_v9 = vld [vmem:[%s1514_s1 + $0x1e8] sm:$0xff] }
   0x3   :  { %181 = vmatpush.msra.mxu3 %v723_v2  ;;  %v730_v3 = vld [vmem:[%s1514_s1 + $0x78] sm:$0xff]  ;;  %v752_v7 = vld [vmem:[%s1514_s1 + $0x70] sm:$0xff]  ;;  %v769_v10 = vld [vmem:[%s1514_s1 + $0x68] sm:$0xff] }
   0x4   :  { %v735_v4 = vld [vmem:[%s1514_s1 + $0xf8] sm:$0xff]  ;;  %94 = vmatpush.msra.mxu0 %v730_v3  ;;  %v757_v8 = vld [vmem:[%s1514_s1 + $0xf0] sm:$0xff]  ;;  %153 = vmatpush.msra.mxu2 %v718_v1  ;;  %v776_v11 = vld [vmem:[%s1514_s1 + $0x160] sm:$0xff] }
   0x5   :  { %123 = vmatpush.msra.mxu1 %v735_v4  ;;  %182 = vmatpush.msra.mxu3 %v747_v6  ;;  %v781_v12 = vld [vmem:[%s1514_s1 + $0xe8] sm:$0xff]  ;;  %v786_v13 = vld [vmem:[%s1514_s1 + $0x1e0] sm:$0xff]  ;;  %v805_v16 = vld [vmem:[%s1514_s1 + $0x158] sm:$0xff] }
   0x6   :  { %95 = vmatpush.msra.mxu0 %v752_v7  ;;  %154 = vmatpush.msra.mxu2 %v740_v5  ;;  %v793_v14 = vld [vmem:[%s1514_s1 + $0x60] sm:$0xff]  ;;  %v810_v17 = vld [vmem:[%s1514_s1 + $0x1d8] sm:$0xff]  ;;  %v829_v20 = vld [vmem:[%s1514_s1 + $0x150] sm:$0xff] }
   0x7   :  { %124 = vmatpush.msra.mxu1 %v757_v8  ;;  %183 = vmatpush.msra.mxu3 %v764_v9  ;;  %v798_v15 = vld [vmem:[%s1514_s1 + $0xe0] sm:$0xff]  ;;  %v817_v18 = vld [vmem:[%s1514_s1 + $0x58] sm:$0xff]  ;;  %v834_v21 = vld [vmem:[%s1514_s1 + $0x1d0] sm:$0xff] }
   0x8   :  { %96 = vmatpush.msra.mxu0 %v769_v10  ;;  %155 = vmatpush.msra.mxu2 %v776_v11  ;;  %v822_v19 = vld [vmem:[%s1514_s1 + $0xd8] sm:$0xff]  ;;  %v841_v22 = vld [vmem:[%s1514_s1 + $0x50] sm:$0xff]  ;;  %v853_v24 = vld [vmem:[%s1514_s1 + $0x148] sm:$0xff] }
   0x9   :  { %125 = vmatpush.msra.mxu1 %v781_v12  ;;  %184 = vmatpush.msra.mxu3 %v786_v13  ;;  %v846_v23 = vld [vmem:[%s1514_s1 + $0xd0] sm:$0xff]  ;;  %v858_v25 = vld [vmem:[%s1514_s1 + $0x1c8] sm:$0xff]  ;;  %v877_v28 = vld [vmem:[%s1514_s1 + $0x140] sm:$0xff] }
   0xa   :  { %97 = vmatpush.msra.mxu0 %v793_v14  ;;  %156 = vmatpush.msra.mxu2 %v805_v16  ;;  %v865_v26 = vld [vmem:[%s1514_s1 + $0x48] sm:$0xff]  ;;  %v882_v29 = vld [vmem:[%s1514_s1 + $0x1c0] sm:$0xff]  ;;  %v901_v32 = vld [vmem:[%s1514_s1 + $0x138] sm:$0xff] }
   0xb   :  { %126 = vmatpush.msra.mxu1 %v798_v15  ;;  %185 = vmatpush.msra.mxu3 %v810_v17  ;;  %v870_v27 = vld [vmem:[%s1514_s1 + $0xc8] sm:$0xff]  ;;  %v889_v30 = vld [vmem:[%s1514_s1 + $0x40] sm:$0xff]  ;;  %v906_v33 = vld [vmem:[%s1514_s1 + $0x1b8] sm:$0xff] }
   0xc   :  { %98 = vmatpush.msra.mxu0 %v817_v18  ;;  %157 = vmatpush.msra.mxu2 %v829_v20  ;;  %v894_v31 = vld [vmem:[%s1514_s1 + $0xc0] sm:$0xff]  ;;  %v913_v34 = vld [vmem:[%s1514_s1 + $0x38] sm:$0xff]  ;;  %v925_v36 = vld [vmem:[%s1514_s1 + $0x130] sm:$0xff] }
   0xd   :  { %127 = vmatpush.msra.mxu1 %v822_v19  ;;  %186 = vmatpush.msra.mxu3 %v834_v21  ;;  %v918_v35 = vld [vmem:[%s1514_s1 + $0xb8] sm:$0xff]  ;;  %v930_v37 = vld [vmem:[%s1514_s1 + $0x1b0] sm:$0xff]  ;;  %v949_v40 = vld [vmem:[%s1514_s1 + $0x128] sm:$0xff] }
   0xe   :  { %99 = vmatpush.msra.mxu0 %v841_v22  ;;  %158 = vmatpush.msra.mxu2 %v853_v24  ;;  %v937_v38 = vld [vmem:[%s1514_s1 + $0x30] sm:$0xff]  ;;  %v954_v41 = vld [vmem:[%s1514_s1 + $0x1a8] sm:$0xff]  ;;  %v973_v44 = vld [vmem:[%s1514_s1 + $0x120] sm:$0xff] }
   0xf   :  { %128 = vmatpush.msra.mxu1 %v846_v23  ;;  %187 = vmatpush.msra.mxu3 %v858_v25  ;;  %v942_v39 = vld [vmem:[%s1514_s1 + $0xb0] sm:$0xff]  ;;  %v961_v42 = vld [vmem:[%s1514_s1 + $0x28] sm:$0xff]  ;;  %v978_v45 = vld [vmem:[%s1514_s1 + $0x1a0] sm:$0xff] }
  0x10   :  { %100 = vmatpush.msra.mxu0 %v865_v26  ;;  %159 = vmatpush.msra.mxu2 %v877_v28  ;;  %v966_v43 = vld [vmem:[%s1514_s1 + $0xa8] sm:$0xff]  ;;  %v985_v46 = vld [vmem:[%s1514_s1 + $0x20] sm:$0xff]  ;;  %v997_v48 = vld [vmem:[%s1514_s1 + $0x118] sm:$0xff] }
  0x11   :  { %129 = vmatpush.msra.mxu1 %v870_v27  ;;  %188 = vmatpush.msra.mxu3 %v882_v29  ;;  %1535 = vst [vmem:[#allocation2_spill] sm:$0xff] %v985_v46  ;;  %v990_v47 = vld [vmem:[%s1514_s1 + $0xa0] sm:$0xff]  ;;  %v1002_v49 = vld [vmem:[%s1514_s1 + $0x198] sm:$0xff]  ;;  %v1021_v52 = vld [vmem:[%s1514_s1 + $0x110] sm:$0xff] }
  0x12   :  { %101 = vmatpush.msra.mxu0 %v889_v30  ;;  %160 = vmatpush.msra.mxu2 %v901_v32  ;;  %1536 = vst [vmem:[#allocation3_spill] sm:$0xff] %v990_v47  ;;  %v1009_v50 = vld [vmem:[%s1514_s1 + $0x18] sm:$0xff]  ;;  %v1026_v53 = vld [vmem:[%s1514_s1 + $0x190] sm:$0xff]  ;;  %v1045_v56 = vld [vmem:[%s1514_s1 + $0x108] sm:$0xff] }
  0x13   :  { %130 = vmatpush.msra.mxu1 %v894_v31  ;;  %189 = vmatpush.msra.mxu3 %v906_v33  ;;  %v1014_v51 = vld [vmem:[%s1514_s1 + $0x98] sm:$0xff]  ;;  %1537 = vst [vmem:[#allocation4_spill] sm:$0xff] %v1026_v53  ;;  %v1033_v54 = vld [vmem:[%s1514_s1 + $0x10] sm:$0xff]  ;;  %v1050_v57 = vld [vmem:[%s1514_s1 + $0x188] sm:$0xff] }
  0x14   :  { %102 = vmatpush.msra.mxu0 %v913_v34  ;;  %161 = vmatpush.msra.mxu2 %v925_v36  ;;  %1538 = vst [vmem:[#allocation5_spill] sm:$0xff] %v1033_v54  ;;  %v1038_v55 = vld [vmem:[%s1514_s1 + $0x90] sm:$0xff]  ;;  %v1057_v58 = vld [vmem:[%s1514_s1 + $0x8] sm:$0xff]  ;;  %v1069_v60 = vld [vmem:[%s1514_s1 + $0x100] sm:$0xff] }
  0x15   :  { %131 = vmatpush.msra.mxu1 %v918_v35  ;;  %190 = vmatpush.msra.mxu3 %v930_v37  ;;  %1539 = vst [vmem:[#allocation6_spill] sm:$0xff] %v1038_v55  ;;  %v1062_v59 = vld [vmem:[%s1514_s1 + $0x88] sm:$0xff]  ;;  %v1074_v61 = vld [vmem:[%s1514_s1 + $0x180] sm:$0xff]  ;;  %v80_v62 = vld [vmem:[%s1515_s0 + $0x10] sm:$0xff] }
  0x16   :  { %103 = vmatpush.msra.mxu0 %v937_v38  ;;  %162 = vmatpush.msra.mxu2 %v949_v40  ;;  %1540 = vst [vmem:[#allocation7_spill] sm:$0xff] %v1050_v57  ;;  %v81_v63 = vld [vmem:[%s1515_s0 + $0x18] sm:$0xff] }
  0x17   :  { %132 = vmatpush.msra.mxu1 %v942_v39  ;;  %191 = vmatpush.msra.mxu3 %v954_v41  ;;  %1541 = vst [vmem:[#allocation8_spill] sm:$0xff] %v1062_v59 }
  0x18   :  { %104 = vmatpush.msra.mxu0 %v961_v42  ;;  %163 = vmatpush.msra.mxu2 %v973_v44  ;;  %1542 = vst [vmem:[#allocation9_spill] sm:$0xff] %v1074_v61 }
  0x19   :  { %133 = vmatpush.msra.mxu1 %v966_v43  ;;  %192 = vmatpush.msra.mxu3 %v978_v45 }
  0x1a   :  { %105 = vmatpush.msra.mxu0 %v985_v46  ;;  %164 = vmatpush.msra.mxu2 %v997_v48 }
  0x1b   :  { %134 = vmatpush.msra.mxu1 %v990_v47  ;;  %193 = vmatpush.msra.mxu3 %v1002_v49 }
  0x1c   :  { %106 = vmatpush.msra.mxu0 %v1009_v50  ;;  %165 = vmatpush.msra.mxu2 %v1021_v52 }
  0x1d   :  { %135 = vmatpush.msra.mxu1 %v1014_v51  ;;  %194 = vmatpush.msra.mxu3 %v1026_v53 }
  0x1e   :  { %107 = vmatpush.msra.mxu0 %v1033_v54  ;;  %166 = vmatpush.msra.mxu2 %v1045_v56 }
  0x1f   :  { %136 = vmatpush.msra.mxu1 %v1038_v55  ;;  %195 = vmatpush.msra.mxu3 %v1050_v57  ;;  %v1091_v57 = vld [vmem:[%s1514_s1] sm:$0xff] }
  0x20   :  { %108 = vmatpush.msra.mxu0 %v1057_v58  ;;  %167 = vmatpush.msra.mxu2 %v1069_v60  ;;  %v1096_v55 = vld [vmem:[%s1514_s1 + $0x80] sm:$0xff] }
  0x21   :  { %137 = vmatpush.msra.mxu1 %v1062_v59  ;;  %196 = vmatpush.msra.mxu3 %v1074_v61  ;;  %1543 = vst [vmem:[#allocation10_spill] sm:$0xff] %v1096_v55  ;;  %v78_v59 = vld [vmem:[%s1515_s0] sm:$0xff]  ;;  %v79_v61 = vld [vmem:[%s1515_s0 + $0x8] sm:$0xff] }
  0x22   :  { %168 = vmatmul.f32.vlgmr.msra.gmra.mxu2 %v80_v62  ;;  %197 = vmatmul.f32.vlgmr.msra.gmra.mxu3 %v81_v63  ;;  %v84_v62 = vld [vmem:[%s1515_s0 + $0x30] sm:$0xff]  ;;  %v83_v63 = vld [vmem:[%s1515_s0 + $0x28] sm:$0xff] }
  0x23   :  { %285 = vmatpush.msrb.mxu2 %v713_v0  ;;  %314 = vmatpush.msrb.mxu3 %v723_v2 }
  0x24   :  { %109 = vmatpush.msra.mxu0 %v1091_v57  ;;  %138 = vmatpush.msra.mxu1 %v1096_v55 }
  0x25   :  { %286 = vmatpush.msrb.mxu2 %v718_v1  ;;  %110 = vmatmul.f32.vlgmr.msra.gmra.mxu0 %v78_v59  ;;  %v85_v59 = vld [vmem:[%s1515_s0 + $0x38] sm:$0xff] }
  0x26   :  { %139 = vmatmul.f32.vlgmr.msra.gmra.mxu1 %v79_v61  ;;  %227 = vmatpush.msrb.mxu0 %v730_v3  ;;  %v82_v61 = vld [vmem:[%s1515_s0 + $0x20] sm:$0xff] }
  0x27   :  { %256 = vmatpush.msrb.mxu1 %v735_v4  ;;  %287 = vmatpush.msrb.mxu2 %v740_v5 }
  0x28   :  { %315 = vmatpush.msrb.mxu3 %v747_v6  ;;  %228 = vmatpush.msrb.mxu0 %v752_v7 }
  0x29   :  { %257 = vmatpush.msrb.mxu1 %v757_v8  ;;  %288 = vmatpush.msrb.mxu2 %v776_v11 }
  0x2a   :  { %316 = vmatpush.msrb.mxu3 %v764_v9  ;;  %171 = vmatmul.f32.gmra.mxu2 %v84_v62  ;;  %v88_v62 = vld [vmem:[%s1515_s0 + $0x50] sm:$0xff] }
  0x2b   :  { %229 = vmatpush.msrb.mxu0 %v769_v10  ;;  %258 = vmatpush.msrb.mxu1 %v781_v12 }
  0x2c   :  { %289 = vmatpush.msrb.mxu2 %v805_v16  ;;  %317 = vmatpush.msrb.mxu3 %v786_v13 }
  0x2d   :  { %200 = vmatmul.f32.gmra.mxu3 %v85_v59  ;;  %230 = vmatpush.msrb.mxu0 %v793_v14  ;;  %v89_v59 = vld [vmem:[%s1515_s0 + $0x58] sm:$0xff] }
  0x2e   :  { %259 = vmatpush.msrb.mxu1 %v798_v15  ;;  %290 = vmatpush.msrb.mxu2 %v829_v20 }
  0x2f   :  { %318 = vmatpush.msrb.mxu3 %v810_v17  ;;  %113 = vmatmul.f32.gmra.mxu0 %v82_v61  ;;  %v86_v61 = vld [vmem:[%s1515_s0 + $0x40] sm:$0xff] }
  0x30   :  { %142 = vmatmul.f32.gmra.mxu1 %v83_v63  ;;  %231 = vmatpush.msrb.mxu0 %v817_v18  ;;  %v87_v63 = vld [vmem:[%s1515_s0 + $0x48] sm:$0xff] }
  0x31   :  { %260 = vmatpush.msrb.mxu1 %v822_v19  ;;  %291 = vmatpush.msrb.mxu2 %v853_v24 }
  0x32   :  { %319 = vmatpush.msrb.mxu3 %v834_v21  ;;  %232 = vmatpush.msrb.mxu0 %v841_v22 }
  0x33   :  { %261 = vmatpush.msrb.mxu1 %v846_v23  ;;  %292 = vmatpush.msrb.mxu2 %v877_v28 }
  0x34   :  { %320 = vmatpush.msrb.mxu3 %v858_v25  ;;  %174 = vmatmul.f32.gmra.mxu2 %v88_v62  ;;  %v92_v62 = vld [vmem:[%s1515_s0 + $0x70] sm:$0xff] }
  0x35   :  { %233 = vmatpush.msrb.mxu0 %v865_v26  ;;  %262 = vmatpush.msrb.mxu1 %v870_v27 }
  0x36   :  { %293 = vmatpush.msrb.mxu2 %v901_v32  ;;  %321 = vmatpush.msrb.mxu3 %v882_v29 }
  0x37   :  { %203 = vmatmul.f32.gmra.mxu3 %v89_v59  ;;  %234 = vmatpush.msrb.mxu0 %v889_v30  ;;  %v93_v59 = vld [vmem:[%s1515_s0 + $0x78] sm:$0xff] }
  0x38   :  { %263 = vmatpush.msrb.mxu1 %v894_v31  ;;  %294 = vmatpush.msrb.mxu2 %v925_v36 }
  0x39   :  { %322 = vmatpush.msrb.mxu3 %v906_v33  ;;  %116 = vmatmul.f32.gmra.mxu0 %v86_v61  ;;  %v90_v61 = vld [vmem:[%s1515_s0 + $0x60] sm:$0xff] }
  0x3a   :  { %145 = vmatmul.f32.gmra.mxu1 %v87_v63  ;;  %235 = vmatpush.msrb.mxu0 %v913_v34  ;;  %v91_v63 = vld [vmem:[%s1515_s0 + $0x68] sm:$0xff] }
  0x3b   :  { %264 = vmatpush.msrb.mxu1 %v918_v35  ;;  %295 = vmatpush.msrb.mxu2 %v949_v40 }
  0x3c   :  { %323 = vmatpush.msrb.mxu3 %v930_v37  ;;  %236 = vmatpush.msrb.mxu0 %v937_v38 }
  0x3d   :  { %265 = vmatpush.msrb.mxu1 %v942_v39  ;;  %296 = vmatpush.msrb.mxu2 %v973_v44 }
  0x3e   :  { %324 = vmatpush.msrb.mxu3 %v954_v41  ;;  %177 = vmatmul.f32.gmra.mxu2 %v92_v62  ;;  %v643_v62 = vld [vmem:[%s1515_s0 + $0x90] sm:$0xff] }
  0x3f   :  { %237 = vmatpush.msrb.mxu0 %v961_v42  ;;  %266 = vmatpush.msrb.mxu1 %v966_v43 }
  0x40   :  { %297 = vmatpush.msrb.mxu2 %v997_v48  ;;  %325 = vmatpush.msrb.mxu3 %v978_v45 }
  0x41   :  { %206 = vmatmul.f32.gmra.mxu3 %v93_v59  ;;  %238 = vmatpush.msrb.mxu0 %v985_v46  ;;  %v1544_v59 = vld [vmem:[#allocation6_spill] sm:$0xff] }
  0x42   :  { %267 = vmatpush.msrb.mxu1 %v990_v47  ;;  %298 = vmatpush.msrb.mxu2 %v1021_v52 }
  0x43   :  { %326 = vmatpush.msrb.mxu3 %v1002_v49  ;;  %119 = vmatmul.f32.gmra.mxu0 %v90_v61  ;;  %v1545_v61 = vld [vmem:[#allocation7_spill] sm:$0xff] }
  0x44   :  { %148 = vmatmul.f32.gmra.mxu1 %v91_v63  ;;  %239 = vmatpush.msrb.mxu0 %v1009_v50  ;;  %v1546_v63 = vld [vmem:[#allocation8_spill] sm:$0xff] }
  0x45   :  { %268 = vmatpush.msrb.mxu1 %v1014_v51  ;;  %299 = vmatpush.msrb.mxu2 %v1045_v56 }
  0x46   :  { %327 = vmatpush.msrb.mxu3 %v1026_v53  ;;  %240 = vmatpush.msrb.mxu0 %v1033_v54  ;;  %v644_v53 = vld [vmem:[%s1515_s0 + $0x98] sm:$0xff] }
  0x47   :  { %269 = vmatpush.msrb.mxu1 %v1544_v59  ;;  %300 = vmatpush.msrb.mxu2 %v1069_v60  ;;  %v1547_v54 = vld [vmem:[#allocation9_spill] sm:$0xff]  ;;  %v641_v59 = vld [vmem:[%s1515_s0 + $0x80] sm:$0xff] }
  0x48   :  { %328 = vmatpush.msrb.mxu3 %v1545_v61  ;;  %241 = vmatpush.msrb.mxu0 %v1057_v58 }
  0x49   :  { %270 = vmatpush.msrb.mxu1 %v1546_v63  ;;  %301 = vmatmul.f32.vlgmr.msrb.gmra.mxu2 %v643_v62  ;;  %v642_v62 = vld [vmem:[%s1515_s0 + $0x88] sm:$0xff] }
  0x4a   :  { %329 = vmatpush.msrb.mxu3 %v1547_v54  ;;  %422 = vmatpush.msra.mxu2 %v713_v0 }
  0x4b   :  { %242 = vmatpush.msrb.mxu0 %v1091_v57  ;;  %271 = vmatpush.msrb.mxu1 %v1096_v55  ;;  %v647_v55 = vld [vmem:[%s1515_s0 + $0xb0] sm:$0xff] }
  0x4c   :  { %330 = vmatmul.f32.vlgmr.msrb.gmra.mxu3 %v644_v53  ;;  %423 = vmatpush.msra.mxu2 %v718_v1  ;;  %v648_v53 = vld [vmem:[%s1515_s0 + $0xb8] sm:$0xff] }
  0x4d   :  { %451 = vmatpush.msra.mxu3 %v723_v2  ;;  %243 = vmatmul.f32.vlgmr.msrb.gmra.mxu0 %v641_v59  ;;  %v645_v59 = vld [vmem:[%s1515_s0 + $0xa0] sm:$0xff] }
  0x4e   :  { %272 = vmatmul.f32.vlgmr.msrb.gmra.mxu1 %v642_v62  ;;  %364 = vmatpush.msra.mxu0 %v730_v3  ;;  %v651_v62 = vld [vmem:[%s1515_s0 + $0xd0] sm:$0xff] }
  0x4f   :  { %393 = vmatpush.msra.mxu1 %v735_v4  ;;  %424 = vmatpush.msra.mxu2 %v740_v5 }
  0x50   :  { %452 = vmatpush.msra.mxu3 %v747_v6  ;;  %365 = vmatpush.msra.mxu0 %v752_v7 }
  0x51   :  { %394 = vmatpush.msra.mxu1 %v757_v8  ;;  %425 = vmatpush.msra.mxu2 %v776_v11 }
  0x52   :  { %453 = vmatpush.msra.mxu3 %v764_v9  ;;  %304 = vmatmul.f32.gmra.mxu2 %v647_v55  ;;  %v646_v55 = vld [vmem:[%s1515_s0 + $0xa8] sm:$0xff] }
  0x53   :  { %366 = vmatpush.msra.mxu0 %v769_v10  ;;  %395 = vmatpush.msra.mxu1 %v781_v12 }
  0x54   :  { %426 = vmatpush.msra.mxu2 %v805_v16  ;;  %454 = vmatpush.msra.mxu3 %v786_v13 }
  0x55   :  { %333 = vmatmul.f32.gmra.mxu3 %v648_v53  ;;  %367 = vmatpush.msra.mxu0 %v793_v14  ;;  %v652_v53 = vld [vmem:[%s1515_s0 + $0xd8] sm:$0xff] }
  0x56   :  { %396 = vmatpush.msra.mxu1 %v798_v15  ;;  %427 = vmatpush.msra.mxu2 %v829_v20 }
  0x57   :  { %455 = vmatpush.msra.mxu3 %v810_v17  ;;  %246 = vmatmul.f32.gmra.mxu0 %v645_v59  ;;  %v649_v59 = vld [vmem:[%s1515_s0 + $0xc0] sm:$0xff] }
  0x58   :  { %275 = vmatmul.f32.gmra.mxu1 %v646_v55  ;;  %368 = vmatpush.msra.mxu0 %v817_v18  ;;  %v650_v55 = vld [vmem:[%s1515_s0 + $0xc8] sm:$0xff] }
  0x59   :  { %397 = vmatpush.msra.mxu1 %v822_v19  ;;  %428 = vmatpush.msra.mxu2 %v853_v24 }
  0x5a   :  { %456 = vmatpush.msra.mxu3 %v834_v21  ;;  %369 = vmatpush.msra.mxu0 %v841_v22 }
  0x5b   :  { %398 = vmatpush.msra.mxu1 %v846_v23  ;;  %429 = vmatpush.msra.mxu2 %v877_v28 }
  0x5c   :  { %457 = vmatpush.msra.mxu3 %v858_v25  ;;  %307 = vmatmul.f32.gmra.mxu2 %v651_v62  ;;  %v655_v62 = vld [vmem:[%s1515_s0 + $0xf0] sm:$0xff] }
  0x5d   :  { %370 = vmatpush.msra.mxu0 %v865_v26  ;;  %399 = vmatpush.msra.mxu1 %v870_v27 }
  0x5e   :  { %430 = vmatpush.msra.mxu2 %v901_v32  ;;  %458 = vmatpush.msra.mxu3 %v882_v29 }
  0x5f   :  { %336 = vmatmul.f32.gmra.mxu3 %v652_v53  ;;  %371 = vmatpush.msra.mxu0 %v889_v30  ;;  %v656_v53 = vld [vmem:[%s1515_s0 + $0xf8] sm:$0xff] }
  0x60   :  { %400 = vmatpush.msra.mxu1 %v894_v31  ;;  %431 = vmatpush.msra.mxu2 %v925_v36 }
  0x61   :  { %459 = vmatpush.msra.mxu3 %v906_v33  ;;  %249 = vmatmul.f32.gmra.mxu0 %v649_v59  ;;  %v653_v59 = vld [vmem:[%s1515_s0 + $0xe0] sm:$0xff] }
  0x62   :  { %278 = vmatmul.f32.gmra.mxu1 %v650_v55  ;;  %372 = vmatpush.msra.mxu0 %v913_v34  ;;  %v654_v55 = vld [vmem:[%s1515_s0 + $0xe8] sm:$0xff] }
  0x63   :  { %401 = vmatpush.msra.mxu1 %v918_v35  ;;  %432 = vmatpush.msra.mxu2 %v949_v40 }
  0x64   :  { %460 = vmatpush.msra.mxu3 %v930_v37  ;;  %373 = vmatpush.msra.mxu0 %v937_v38 }
  0x65   :  { %402 = vmatpush.msra.mxu1 %v942_v39  ;;  %433 = vmatpush.msra.mxu2 %v973_v44 }
  0x66   :  { %461 = vmatpush.msra.mxu3 %v954_v41  ;;  %310 = vmatmul.f32.gmra.mxu2 %v655_v62  ;;  %v1548_v62 = vld [vmem:[#allocation4_spill] sm:$0xff] }
  0x67   :  { %374 = vmatpush.msra.mxu0 %v961_v42  ;;  %403 = vmatpush.msra.mxu1 %v966_v43 }
  0x68   :  { %434 = vmatpush.msra.mxu2 %v997_v48  ;;  %462 = vmatpush.msra.mxu3 %v978_v45 }
  0x69   :  { %339 = vmatmul.f32.gmra.mxu3 %v656_v53  ;;  %375 = vmatpush.msra.mxu0 %v985_v46  ;;  %v1549_v53 = vld [vmem:[#allocation5_spill] sm:$0xff]  ;;  %v1550_v46 = vld [vmem:[#allocation6_spill] sm:$0xff] }
  0x6a   :  { %404 = vmatpush.msra.mxu1 %v990_v47  ;;  %435 = vmatpush.msra.mxu2 %v1021_v52  ;;  %v659_v47 = vld [vmem:[%s1515_s0 + $0x110] sm:$0xff] }
  0x6b   :  { %463 = vmatpush.msra.mxu3 %v1002_v49  ;;  %252 = vmatmul.f32.gmra.mxu0 %v653_v59  ;;  %v660_v59 = vld [vmem:[%s1515_s0 + $0x118] sm:$0xff] }
  0x6c   :  { %281 = vmatmul.f32.gmra.mxu1 %v654_v55  ;;  %376 = vmatpush.msra.mxu0 %v1009_v50  ;;  %v657_v55 = vld [vmem:[%s1515_s0 + $0x100] sm:$0xff] }
  0x6d   :  { %405 = vmatpush.msra.mxu1 %v1014_v51  ;;  %436 = vmatpush.msra.mxu2 %v1045_v56 }
  0x6e   :  { %464 = vmatpush.msra.mxu3 %v1548_v62  ;;  %377 = vmatpush.msra.mxu0 %v1549_v53 }
  0x6f   :  { %406 = vmatpush.msra.mxu1 %v1550_v46  ;;  %437 = vmatpush.msra.mxu2 %v1069_v60 }
  0x70   :  { %465 = vmatpush.msra.mxu3 %v1545_v61  ;;  %378 = vmatpush.msra.mxu0 %v1057_v58  ;;  %v1551_v61 = vld [vmem:[#allocation10_spill] sm:$0xff] }
  0x71   :  { %407 = vmatpush.msra.mxu1 %v1546_v63  ;;  %438 = vmatmul.f32.vlgmr.msra.gmra.mxu2 %v659_v47  ;;  %v658_v47 = vld [vmem:[%s1515_s0 + $0x108] sm:$0xff] }
  0x72   :  { %466 = vmatpush.msra.mxu3 %v1547_v54  ;;  %559 = vmatpush.msrb.mxu2 %v713_v0  ;;  %v663_v0 = vld [vmem:[%s1515_s0 + $0x130] sm:$0xff] }
  0x73   :  { %379 = vmatpush.msra.mxu0 %v1091_v57  ;;  %408 = vmatpush.msra.mxu1 %v1551_v61 }
  0x74   :  { %467 = vmatmul.f32.vlgmr.msra.gmra.mxu3 %v660_v59  ;;  %560 = vmatpush.msrb.mxu2 %v718_v1  ;;  %v664_v1 = vld [vmem:[%s1515_s0 + $0x138] sm:$0xff] }
  0x75   :  { %588 = vmatpush.msrb.mxu3 %v723_v2  ;;  %380 = vmatmul.f32.vlgmr.msra.gmra.mxu0 %v657_v55  ;;  %v661_v2 = vld [vmem:[%s1515_s0 + $0x120] sm:$0xff] }
  0x76   :  { %409 = vmatmul.f32.vlgmr.msra.gmra.mxu1 %v658_v47  ;;  %501 = vmatpush.msrb.mxu0 %v730_v3  ;;  %v662_v3 = vld [vmem:[%s1515_s0 + $0x128] sm:$0xff] }
  0x77   :  { %530 = vmatpush.msrb.mxu1 %v735_v4  ;;  %561 = vmatpush.msrb.mxu2 %v740_v5  ;;  %v667_v4 = vld [vmem:[%s1515_s0 + $0x150] sm:$0xff]  ;;  %v668_v5 = vld [vmem:[%s1515_s0 + $0x158] sm:$0xff] }
  0x78   :  { %589 = vmatpush.msrb.mxu3 %v747_v6  ;;  %502 = vmatpush.msrb.mxu0 %v752_v7  ;;  %v665_v6 = vld [vmem:[%s1515_s0 + $0x140] sm:$0xff]  ;;  %v666_v7 = vld [vmem:[%s1515_s0 + $0x148] sm:$0xff] }
  0x79   :  { %531 = vmatpush.msrb.mxu1 %v757_v8  ;;  %562 = vmatpush.msrb.mxu2 %v776_v11  ;;  %v671_v8 = vld [vmem:[%s1515_s0 + $0x170] sm:$0xff]  ;;  %v1552_v11 = vld [vmem:[#allocation2_spill] sm:$0xff] }
  0x7a   :  { %590 = vmatpush.msrb.mxu3 %v764_v9  ;;  %441 = vmatmul.f32.gmra.mxu2 %v663_v0  ;;  %v672_v9 = vld [vmem:[%s1515_s0 + $0x178] sm:$0xff] }
  0x7b   :  { %503 = vmatpush.msrb.mxu0 %v769_v10  ;;  %532 = vmatpush.msrb.mxu1 %v781_v12  ;;  %v669_v10 = vld [vmem:[%s1515_s0 + $0x160] sm:$0xff]  ;;  %v670_v12 = vld [vmem:[%s1515_s0 + $0x168] sm:$0xff] }
  0x7c   :  { %563 = vmatpush.msrb.mxu2 %v805_v16  ;;  %591 = vmatpush.msrb.mxu3 %v786_v13  ;;  %v1553_v13 = vld [vmem:[#allocation3_spill] sm:$0xff]  ;;  %v676_v16 = vld [vmem:[%s1515_s0 + $0x198] sm:$0xff] }
  0x7d   :  { %470 = vmatmul.f32.gmra.mxu3 %v664_v1  ;;  %504 = vmatpush.msrb.mxu0 %v793_v14  ;;  %v675_v14 = vld [vmem:[%s1515_s0 + $0x190] sm:$0xff] }
  0x7e   :  { %533 = vmatpush.msrb.mxu1 %v798_v15  ;;  %564 = vmatpush.msrb.mxu2 %v829_v20  ;;  %v1554_v15 = vld [vmem:[#allocation7_spill] sm:$0xff]  ;;  %v680_v20 = vld [vmem:[%s1515_s0 + $0x1b8] sm:$0xff] }
  0x7f   :  { %592 = vmatpush.msrb.mxu3 %v810_v17  ;;  %383 = vmatmul.f32.gmra.mxu0 %v661_v2  ;;  %v673_v17 = vld [vmem:[%s1515_s0 + $0x180] sm:$0xff] }
  0x80   :  { %412 = vmatmul.f32.gmra.mxu1 %v662_v3  ;;  %505 = vmatpush.msrb.mxu0 %v817_v18  ;;  %v674_v18 = vld [vmem:[%s1515_s0 + $0x188] sm:$0xff] }
  0x81   :  { %534 = vmatpush.msrb.mxu1 %v822_v19  ;;  %565 = vmatpush.msrb.mxu2 %v853_v24  ;;  %v679_v19 = vld [vmem:[%s1515_s0 + $0x1b0] sm:$0xff] }
  0x82   :  { %593 = vmatpush.msrb.mxu3 %v834_v21  ;;  %506 = vmatpush.msrb.mxu0 %v841_v22  ;;  %v677_v21 = vld [vmem:[%s1515_s0 + $0x1a0] sm:$0xff]  ;;  %v678_v22 = vld [vmem:[%s1515_s0 + $0x1a8] sm:$0xff] }
  0x83   :  { %535 = vmatpush.msrb.mxu1 %v846_v23  ;;  %566 = vmatpush.msrb.mxu2 %v877_v28  ;;  %v683_v28 = vld [vmem:[%s1515_s0 + $0x1d0] sm:$0xff] }
  0x84   :  { %594 = vmatpush.msrb.mxu3 %v858_v25  ;;  %444 = vmatmul.f32.gmra.mxu2 %v667_v4 }
  0x85   :  { %507 = vmatpush.msrb.mxu0 %v865_v26  ;;  %536 = vmatpush.msrb.mxu1 %v870_v27 }
  0x86   :  { %567 = vmatpush.msrb.mxu2 %v901_v32  ;;  %595 = vmatpush.msrb.mxu3 %v882_v29  ;;  %v681_v32 = vld [vmem:[%s1515_s0 + $0x1c0] sm:$0xff] }
  0x87   :  { %473 = vmatmul.f32.gmra.mxu3 %v668_v5  ;;  %508 = vmatpush.msrb.mxu0 %v889_v30  ;;  %v684_v30 = vld [vmem:[%s1515_s0 + $0x1d8] sm:$0xff] }
  0x88   :  { %537 = vmatpush.msrb.mxu1 %v894_v31  ;;  %568 = vmatpush.msrb.mxu2 %v925_v36 }
  0x89   :  { %596 = vmatpush.msrb.mxu3 %v906_v33  ;;  %386 = vmatmul.f32.gmra.mxu0 %v665_v6  ;;  %v682_v33 = vld [vmem:[%s1515_s0 + $0x1c8] sm:$0xff] }
  0x8a   :  { %415 = vmatmul.f32.gmra.mxu1 %v666_v7  ;;  %509 = vmatpush.msrb.mxu0 %v913_v34 }
  0x8b   :  { %538 = vmatpush.msrb.mxu1 %v918_v35  ;;  %569 = vmatpush.msrb.mxu2 %v949_v40 }
  0x8c   :  { %597 = vmatpush.msrb.mxu3 %v930_v37  ;;  %510 = vmatpush.msrb.mxu0 %v937_v38  ;;  %v687_v37 = vld [vmem:[%s1515_s0 + $0x1f0] sm:$0xff] }
  0x8d   :  { %539 = vmatpush.msrb.mxu1 %v942_v39  ;;  %570 = vmatpush.msrb.mxu2 %v973_v44  ;;  %v688_v39 = vld [vmem:[%s1515_s0 + $0x1f8] sm:$0xff] }
  0x8e   :  { %598 = vmatpush.msrb.mxu3 %v954_v41  ;;  %447 = vmatmul.f32.gmra.mxu2 %v671_v8 }
  0x8f   :  { %511 = vmatpush.msrb.mxu0 %v961_v42  ;;  %540 = vmatpush.msrb.mxu1 %v966_v43  ;;  %v685_v42 = vld [vmem:[%s1515_s0 + $0x1e0] sm:$0xff]  ;;  %v686_v43 = vld [vmem:[%s1515_s0 + $0x1e8] sm:$0xff] }
  0x90   :  { %571 = vmatpush.msrb.mxu2 %v997_v48  ;;  %599 = vmatpush.msrb.mxu3 %v978_v45 }
  0x91   :  { %476 = vmatmul.f32.gmra.mxu3 %v672_v9  ;;  %512 = vmatpush.msrb.mxu0 %v1552_v11 }
  0x92   :  { %541 = vmatpush.msrb.mxu1 %v1553_v13  ;;  %572 = vmatpush.msrb.mxu2 %v1021_v52 }
  0x93   :  { %600 = vmatpush.msrb.mxu3 %v1002_v49  ;;  %389 = vmatmul.f32.gmra.mxu0 %v669_v10 }
  0x94   :  { %418 = vmatmul.f32.gmra.mxu1 %v670_v12  ;;  %513 = vmatpush.msrb.mxu0 %v1009_v50 }
  0x95   :  { %542 = vmatpush.msrb.mxu1 %v1014_v51  ;;  %573 = vmatpush.msrb.mxu2 %v1045_v56 }
  0x96   :  { %601 = vmatpush.msrb.mxu3 %v1548_v62  ;;  %514 = vmatpush.msrb.mxu0 %v1549_v53 }
  0x97   :  { %543 = vmatpush.msrb.mxu1 %v1550_v46  ;;  %574 = vmatpush.msrb.mxu2 %v1069_v60 }
  0x98   :  { %602 = vmatpush.msrb.mxu3 %v1554_v15  ;;  %515 = vmatpush.msrb.mxu0 %v1057_v58 }
  0x99   :  { %544 = vmatpush.msrb.mxu1 %v1546_v63  ;;  %575 = vmatmul.f32.vlgmr.msrb.gmra.mxu2 %v675_v14 }
  0x9a   :  { %603 = vmatpush.msrb.mxu3 %v1547_v54  ;;  %516 = vmatpush.msrb.mxu0 %v1091_v57 }
  0x9b   :  { %545 = vmatpush.msrb.mxu1 %v1551_v61  ;;  %604 = vmatmul.f32.vlgmr.msrb.gmra.mxu3 %v676_v16 }
  0x9c   :  { %517 = vmatmul.f32.vlgmr.msrb.gmra.mxu0 %v673_v17  ;;  %546 = vmatmul.f32.vlgmr.msrb.gmra.mxu1 %v674_v18 }
  0xa1   :  { %578 = vmatmul.f32.gmra.mxu2 %v679_v19 }
  0xa2   :  { %v111_v23 = vpop.f32.mrf.mxu0 }
  0xa3   :  { %607 = vmatmul.f32.gmra.mxu3 %v680_v20  ;;  %v140_v24 = vpop.f32.mrf.mxu1 }
  0xa4   :  { %520 = vmatmul.f32.gmra.mxu0 %v677_v21  ;;  %549 = vmatmul.f32.gmra.mxu1 %v678_v22  ;;  %v141_v25 = vadd.f32 %v140_v24, %v111_v23 }
  0xa5   :  { %v169_v26 = vpop.f32.mrf.mxu2  ;;  %v198_v27 = vpop.f32.mrf.mxu3 }
  0xa6   :  { %v170_v29 = vadd.f32 %v169_v26, %v141_v25 }
  0xa8   :  { %v1460_v31 = vadd.f32 %v198_v27, %v170_v29 }
  0xa9   :  { %581 = vmatmul.f32.gmra.mxu2 %v683_v28 }
  0xab   :  { %610 = vmatmul.f32.gmra.mxu3 %v684_v30 }
  0xac   :  { %523 = vmatmul.f32.gmra.mxu0 %v681_v32  ;;  %552 = vmatmul.f32.gmra.mxu1 %v682_v33  ;;  %v114_v34 = vpop.f32.mrf.mxu0 }
  0xad   :  { %v143_v35 = vpop.f32.mrf.mxu1  ;;  %v172_v36 = vpop.f32.mrf.mxu2 }
  0xae   :  { %v144_v38 = vadd.f32 %v143_v35, %v114_v34 }
  0xb0   :  { %v173_v40 = vadd.f32 %v172_v36, %v144_v38  ;;  %v201_v41 = vpop.f32.mrf.mxu3 }
  0xb1   :  { %584 = vmatmul.f32.gmra.mxu2 %v687_v37 }
  0xb2   :  { %v1480_v44 = vadd.f32 %v201_v41, %v173_v40 }
  0xb3   :  { %613 = vmatmul.f32.gmra.mxu3 %v688_v39 }
  0xb4   :  { %526 = vmatmul.f32.gmra.mxu0 %v685_v42  ;;  %555 = vmatmul.f32.gmra.mxu1 %v686_v43 }
  0xb6   :  { %v117_v45 = vpop.f32.mrf.mxu0 }
  0xb7   :  { %v146_v46 = vpop.f32.mrf.mxu1  ;;  %v175_v48 = vpop.f32.mrf.mxu2 }
  0xb8   :  { %v147_v49 = vadd.f32 %v146_v46, %v117_v45 }
  0xba   :  { %v176_v50 = vadd.f32 %v175_v48, %v147_v49  ;;  %v204_v51 = vpop.f32.mrf.mxu3  ;;  %v689_v49 = vld [vmem:[%s1516_s2] ss:$0 sm:$0xff] }
  0xbc   :  { %v1482_v52 = vadd.f32 %v204_v51, %v176_v50 }
  0xc0   :  { %v120_v54 = vpop.f32.mrf.mxu0 }
  0xc1   :  { %v149_v56 = vpop.f32.mrf.mxu1  ;;  %v178_v57 = vpop.f32.mrf.mxu2 }
  0xc2   :  { %v150_v58 = vadd.f32 %v149_v56, %v120_v54 }
  0xc4   :  { %v179_v60 = vadd.f32 %v178_v57, %v150_v58  ;;  %v207_v61 = vpop.f32.mrf.mxu3 }
  0xc6   :  { %v1484_v63 = vadd.f32 %v207_v61, %v179_v60 }
  0xca   :  { %v244_v62 = vpop.f32.mrf.mxu0 }
  0xcb   :  { %v273_v53 = vpop.f32.mrf.mxu1 }
  0xcc   :  { %v302_v59 = vpop.f32.mrf.mxu2  ;;  %v274_v24 = vadd.f32 %v273_v53, %v244_v62 }
  0xce   :  { %v303_v29 = vadd.f32 %v302_v59, %v274_v24 }
  0xcf   :  { %v331_v55 = vpop.f32.mrf.mxu3 }
  0xd0   :  { %v332_v32 = vadd.f32 %v331_v55, %v303_v29 }
  0xd2   :  { %v343_v40 = vmax.f32 %v1460_v31, %v332_v32 }
  0xd4   :  { %v247_v47 = vpop.f32.mrf.mxu0 }
  0xd5   :  { %v276_v0 = vpop.f32.mrf.mxu1  ;;  %v305_v1 = vpop.f32.mrf.mxu2 }
  0xd6   :  { %v277_v33 = vadd.f32 %v276_v0, %v247_v47 }
  0xd8   :  { %v334_v2 = vpop.f32.mrf.mxu3  ;;  %v306_v41 = vadd.f32 %v305_v1, %v277_v33 }
  0xda   :  { %v335_v50 = vadd.f32 %v334_v2, %v306_v41 }
  0xdc   :  { %v344_v53 = vmax.f32 %v1480_v44, %v335_v50 }
  0xde   :  { %v250_v3 = vpop.f32.mrf.mxu0 }
  0xdf   :  { %v279_v4 = vpop.f32.mrf.mxu1  ;;  %v308_v5 = vpop.f32.mrf.mxu2 }
  0xe0   :  { %v280_v51 = vadd.f32 %v279_v4, %v250_v3 }
  0xe2   :  { %v337_v6 = vpop.f32.mrf.mxu3  ;;  %v309_v59 = vadd.f32 %v308_v5, %v280_v51 }
  0xe4   :  { %v338_v3 = vadd.f32 %v337_v6, %v309_v59 }
  0xe8   :  { %v253_v7 = vpop.f32.mrf.mxu0 }
  0xe9   :  { %v282_v8 = vpop.f32.mrf.mxu1  ;;  %v1486_v9 = vpop.f32.mrf.mxu2 }
  0xea   :  { %v283_v4 = vadd.f32 %v282_v8, %v253_v7 }
  0xec   :  { %v1488_v10 = vpop.f32.mrf.mxu3 }
  0xf2   :  { %v381_v11 = vpop.f32.mrf.mxu0 }
  0xf3   :  { %v410_v12 = vpop.f32.mrf.mxu1 }
  0xf4   :  { %v439_v13 = vpop.f32.mrf.mxu2  ;;  %v411_v27 = vadd.f32 %v410_v12, %v381_v11 }
  0xf6   :  { %v440_v30 = vadd.f32 %v439_v13, %v411_v27 }
  0xf7   :  { %v468_v14 = vpop.f32.mrf.mxu3 }
  0xf8   :  { %v469_v37 = vadd.f32 %v468_v14, %v440_v30 }
  0xfa   :  { %v480_v45 = vmax.f32 %v343_v40, %v469_v37 }
  0xfc   :  { %v384_v15 = vpop.f32.mrf.mxu0 }
  0xfd   :  { %v413_v16 = vpop.f32.mrf.mxu1  ;;  %v442_v17 = vpop.f32.mrf.mxu2 }
  0xfe   :  { %v414_v38 = vadd.f32 %v413_v16, %v384_v15 }
 0x100   :  { %v471_v18 = vpop.f32.mrf.mxu3  ;;  %v443_v46 = vadd.f32 %v442_v17, %v414_v38 }
 0x102   :  { %v472_v60 = vadd.f32 %v471_v18, %v443_v46  ;;  %v345_v18 = vmax.f32 %v1482_v52, %v338_v3 }
 0x104   :  { %v481_v1 = vmax.f32 %v344_v53, %v472_v60 }
 0x106   :  { %v387_v19 = vpop.f32.mrf.mxu0 }
 0x107   :  { %v416_v20 = vpop.f32.mrf.mxu1  ;;  %v445_v21 = vpop.f32.mrf.mxu2 }
 0x108   :  { %v417_v61 = vadd.f32 %v416_v20, %v387_v19  ;;  %v312_v19 = vadd.f32 %v1486_v9, %v283_v4 }
 0x10a   :  { %v474_v22 = vpop.f32.mrf.mxu3  ;;  %v446_v11 = vadd.f32 %v445_v21, %v417_v61  ;;  %v341_v7 = vadd.f32 %v1488_v10, %v312_v19 }
 0x10c   :  { %v475_v16 = vadd.f32 %v474_v22, %v446_v11  ;;  %v346_v32 = vmax.f32 %v1484_v63, %v341_v7 }
 0x10e   :  { %v482_v27 = vmax.f32 %v345_v18, %v475_v16 }
 0x110   :  { %v390_v23 = vpop.f32.mrf.mxu0 }
 0x111   :  { %v419_v25 = vpop.f32.mrf.mxu1  ;;  %v448_v26 = vpop.f32.mrf.mxu2 }
 0x112   :  { %v420_v17 = vadd.f32 %v419_v25, %v390_v23 }
 0x114   :  { %v1490_v28 = vpop.f32.mrf.mxu3  ;;  %v449_v29 = vadd.f32 %v448_v26, %v420_v17 }
 0x116   :  { %v478_v52 = vadd.f32 %v1490_v28, %v449_v29 }
 0x119   :  { %v518_v34 = vpop.f32.mrf.mxu0  ;;  %v547_v35 = vpop.f32.mrf.mxu1 }
 0x11a   :  { %v548_v36 = vadd.f32 %v547_v35, %v518_v34  ;;  %v483_v35 = vmax.f32 %v346_v32, %v478_v52 }
 0x11c   :  { %v576_v39 = vpop.f32.mrf.mxu2 }
 0x11d   :  { %v577_v42 = vadd.f32 %v576_v39, %v548_v36 }
 0x11e   :  { %v605_v43 = vpop.f32.mrf.mxu3 }
 0x11f   :  { %v606_v48 = vadd.f32 %v605_v43, %v577_v42 }
 0x121   :  { %v617_v54 = vmax.f32 %v480_v45, %v606_v48  ;;  %v521_v56 = vpop.f32.mrf.mxu0  ;;  %v550_v57 = vpop.f32.mrf.mxu1 }
 0x122   :  { %v551_v58 = vadd.f32 %v550_v57, %v521_v56 }
 0x123   :  { %v625_v62 = vadd.f32 %v689_v49, %v617_v54 }
 0x124   :  { %v579_v31 = vpop.f32.mrf.mxu2 }
 0x125   :  { %v629_v55 = vmax.f32 %v625_v62, 0.0  ;;  %v580_v47 = vadd.f32 %v579_v31, %v551_v58 }
 0x126   :  { %v608_v0 = vpop.f32.mrf.mxu3 }
 0x127   :  { %633 = vst [vmem:[%s1517_s3] sm:$0xff] %v629_v55  ;;  %v609_v2 = vadd.f32 %v608_v0, %v580_v47 }
 0x129   :  { %v618_v12 = vmax.f32 %v481_v1, %v609_v2  ;;  %v524_v13 = vpop.f32.mrf.mxu0  ;;  %v553_v14 = vpop.f32.mrf.mxu1 }
 0x12a   :  { %v554_v15 = vadd.f32 %v553_v14, %v524_v13 }
 0x12b   :  { %v626_v44 = vadd.f32 %v689_v49, %v618_v12 }
 0x12c   :  { %v582_v5 = vpop.f32.mrf.mxu2 }
 0x12d   :  { %v630_v20 = vmax.f32 %v626_v44, 0.0  ;;  %v583_v21 = vadd.f32 %v582_v5, %v554_v15 }
 0x12e   :  { %v611_v24 = vpop.f32.mrf.mxu3 }
 0x12f   :  { %634 = vst [vmem:[%s1517_s3 + $0x8] sm:$0xff] %v630_v20  ;;  %v612_v6 = vadd.f32 %v611_v24, %v583_v21 }
 0x131   :  { %v619_v8 = vmax.f32 %v482_v27, %v612_v6  ;;  %v527_v22 = vpop.f32.mrf.mxu0  ;;  %v556_v23 = vpop.f32.mrf.mxu1 }
 0x132   :  { %v557_v25 = vadd.f32 %v556_v23, %v527_v22 }
 0x133   :  { %v627_v30 = vadd.f32 %v689_v49, %v619_v8 }
 0x134   :  { %v585_v9 = vpop.f32.mrf.mxu2 }
 0x135   :  { %v631_v33 = vmax.f32 %v627_v30, 0.0  ;;  %v586_v34 = vadd.f32 %v585_v9, %v557_v25 }
 0x136   :  { %v614_v26 = vpop.f32.mrf.mxu3 }
 0x137   :  { %635 = vst [vmem:[%s1517_s3 + $0x10] sm:$0xff] %v631_v33  ;;  %v615_v36 = vadd.f32 %v614_v26, %v586_v34 }
 0x139   :  { %v620_v10 = vmax.f32 %v483_v35, %v615_v36 }
 0x13b   :  { %v628_v37 = vadd.f32 %v689_v49, %v620_v10 }
 0x13d   :  { %v632_v38 = vmax.f32 %v628_v37, 0.0 }
 0x13f   :  { %636 = vst [vmem:[%s1517_s3 + $0x18] sm:$0xff] %v632_v38 }

// kernel: forward.6
= control target key start
LH: loop header
LB: loop body
LE: loop exit
PB: predicated region body
PF: predicated region fallthrough
CT: control target
= control target key end

     0   :  { %s1195_s1 = inlined_call_operand.vmem [shape: f32[1664,128], index: 1, kind: input, shape index: {}]   ;;  %s1196_s0 = inlined_call_operand.vmem [shape: f32[1,8,1664], index: 0, kind: input, shape index: {}]   ;;  %s1197_s2 = inlined_call_operand.vmem [shape: f32[1,128], index: 2, kind: input, shape index: {}]   ;;  %s1198_s3 = inlined_call_operand.vmem [shape: f32[8,128], index: 3, kind: output, shape index: {}]  }
   0x1   :  { %v29_v0 = vld [vmem:[%s1195_s1 + $0x78] sm:$0xff]  ;;  %v28_v2 = vld [vmem:[%s1195_s1 + $0x70] sm:$0xff]  ;;  %v27_v6 = vld [vmem:[%s1195_s1 + $0x68] sm:$0xff] }
   0x2   :  { %v61_v1 = vld [vmem:[%s1195_s1 + $0x178] sm:$0xff]  ;;  %239 = vmatpush.msra.mxu0 %v29_v0  ;;  %v60_v4 = vld [vmem:[%s1195_s1 + $0x170] sm:$0xff]  ;;  %v59_v8 = vld [vmem:[%s1195_s1 + $0x168] sm:$0xff] }
   0x3   :  { %279 = vmatpush.msra.mxu2 %v61_v1  ;;  %v45_v3 = vld [vmem:[%s1195_s1 + $0xf8] sm:$0xff]  ;;  %v44_v7 = vld [vmem:[%s1195_s1 + $0xf0] sm:$0xff]  ;;  %v43_v10 = vld [vmem:[%s1195_s1 + $0xe8] sm:$0xff] }
   0x4   :  { %v77_v5 = vld [vmem:[%s1195_s1 + $0x1f8] sm:$0xff]  ;;  %259 = vmatpush.msra.mxu1 %v45_v3  ;;  %240 = vmatpush.msra.mxu0 %v28_v2  ;;  %v76_v9 = vld [vmem:[%s1195_s1 + $0x1f0] sm:$0xff]  ;;  %v26_v11 = vld [vmem:[%s1195_s1 + $0x60] sm:$0xff] }
   0x5   :  { %299 = vmatpush.msra.mxu3 %v77_v5  ;;  %280 = vmatpush.msra.mxu2 %v60_v4  ;;  %v58_v12 = vld [vmem:[%s1195_s1 + $0x160] sm:$0xff]  ;;  %v75_v13 = vld [vmem:[%s1195_s1 + $0x1e8] sm:$0xff]  ;;  %v25_v16 = vld [vmem:[%s1195_s1 + $0x58] sm:$0xff] }
   0x6   :  { %260 = vmatpush.msra.mxu1 %v44_v7  ;;  %241 = vmatpush.msra.mxu0 %v27_v6  ;;  %v42_v14 = vld [vmem:[%s1195_s1 + $0xe0] sm:$0xff]  ;;  %v57_v17 = vld [vmem:[%s1195_s1 + $0x158] sm:$0xff]  ;;  %v24_v20 = vld [vmem:[%s1195_s1 + $0x50] sm:$0xff] }
   0x7   :  { %300 = vmatpush.msra.mxu3 %v76_v9  ;;  %281 = vmatpush.msra.mxu2 %v59_v8  ;;  %v74_v15 = vld [vmem:[%s1195_s1 + $0x1e0] sm:$0xff]  ;;  %v41_v18 = vld [vmem:[%s1195_s1 + $0xd8] sm:$0xff]  ;;  %v56_v21 = vld [vmem:[%s1195_s1 + $0x150] sm:$0xff] }
   0x8   :  { %261 = vmatpush.msra.mxu1 %v43_v10  ;;  %242 = vmatpush.msra.mxu0 %v26_v11  ;;  %v73_v19 = vld [vmem:[%s1195_s1 + $0x1d8] sm:$0xff]  ;;  %v40_v22 = vld [vmem:[%s1195_s1 + $0xd0] sm:$0xff]  ;;  %v23_v24 = vld [vmem:[%s1195_s1 + $0x48] sm:$0xff] }
   0x9   :  { %301 = vmatpush.msra.mxu3 %v75_v13  ;;  %282 = vmatpush.msra.mxu2 %v58_v12  ;;  %v72_v23 = vld [vmem:[%s1195_s1 + $0x1d0] sm:$0xff]  ;;  %v55_v25 = vld [vmem:[%s1195_s1 + $0x148] sm:$0xff]  ;;  %v22_v28 = vld [vmem:[%s1195_s1 + $0x40] sm:$0xff] }
   0xa   :  { %262 = vmatpush.msra.mxu1 %v42_v14  ;;  %243 = vmatpush.msra.mxu0 %v25_v16  ;;  %v39_v26 = vld [vmem:[%s1195_s1 + $0xc8] sm:$0xff]  ;;  %v54_v29 = vld [vmem:[%s1195_s1 + $0x140] sm:$0xff]  ;;  %v21_v32 = vld [vmem:[%s1195_s1 + $0x38] sm:$0xff] }
   0xb   :  { %302 = vmatpush.msra.mxu3 %v74_v15  ;;  %283 = vmatpush.msra.mxu2 %v57_v17  ;;  %v71_v27 = vld [vmem:[%s1195_s1 + $0x1c8] sm:$0xff]  ;;  %v38_v30 = vld [vmem:[%s1195_s1 + $0xc0] sm:$0xff]  ;;  %v53_v33 = vld [vmem:[%s1195_s1 + $0x138] sm:$0xff] }
   0xc   :  { %263 = vmatpush.msra.mxu1 %v41_v18  ;;  %244 = vmatpush.msra.mxu0 %v24_v20  ;;  %v70_v31 = vld [vmem:[%s1195_s1 + $0x1c0] sm:$0xff]  ;;  %v37_v34 = vld [vmem:[%s1195_s1 + $0xb8] sm:$0xff]  ;;  %v20_v36 = vld [vmem:[%s1195_s1 + $0x30] sm:$0xff] }
   0xd   :  { %303 = vmatpush.msra.mxu3 %v73_v19  ;;  %284 = vmatpush.msra.mxu2 %v56_v21  ;;  %v69_v35 = vld [vmem:[%s1195_s1 + $0x1b8] sm:$0xff]  ;;  %v52_v37 = vld [vmem:[%s1195_s1 + $0x130] sm:$0xff]  ;;  %v19_v40 = vld [vmem:[%s1195_s1 + $0x28] sm:$0xff] }
   0xe   :  { %264 = vmatpush.msra.mxu1 %v40_v22  ;;  %245 = vmatpush.msra.mxu0 %v23_v24  ;;  %v36_v38 = vld [vmem:[%s1195_s1 + $0xb0] sm:$0xff]  ;;  %v51_v41 = vld [vmem:[%s1195_s1 + $0x128] sm:$0xff]  ;;  %v18_v44 = vld [vmem:[%s1195_s1 + $0x20] sm:$0xff] }
   0xf   :  { %304 = vmatpush.msra.mxu3 %v72_v23  ;;  %285 = vmatpush.msra.mxu2 %v55_v25  ;;  %v68_v39 = vld [vmem:[%s1195_s1 + $0x1b0] sm:$0xff]  ;;  %v35_v42 = vld [vmem:[%s1195_s1 + $0xa8] sm:$0xff]  ;;  %v50_v45 = vld [vmem:[%s1195_s1 + $0x120] sm:$0xff] }
  0x10   :  { %265 = vmatpush.msra.mxu1 %v39_v26  ;;  %246 = vmatpush.msra.mxu0 %v22_v28  ;;  %v67_v43 = vld [vmem:[%s1195_s1 + $0x1a8] sm:$0xff]  ;;  %v34_v46 = vld [vmem:[%s1195_s1 + $0xa0] sm:$0xff]  ;;  %v17_v48 = vld [vmem:[%s1195_s1 + $0x18] sm:$0xff] }
  0x11   :  { %305 = vmatpush.msra.mxu3 %v71_v27  ;;  %286 = vmatpush.msra.mxu2 %v54_v29  ;;  %v66_v47 = vld [vmem:[%s1195_s1 + $0x1a0] sm:$0xff]  ;;  %v49_v49 = vld [vmem:[%s1195_s1 + $0x118] sm:$0xff]  ;;  %v16_v52 = vld [vmem:[%s1195_s1 + $0x10] sm:$0xff] }
  0x12   :  { %266 = vmatpush.msra.mxu1 %v38_v30  ;;  %247 = vmatpush.msra.mxu0 %v21_v32  ;;  %v33_v50 = vld [vmem:[%s1195_s1 + $0x98] sm:$0xff]  ;;  %v48_v53 = vld [vmem:[%s1195_s1 + $0x110] sm:$0xff]  ;;  %v15_v56 = vld [vmem:[%s1195_s1 + $0x8] sm:$0xff] }
  0x13   :  { %306 = vmatpush.msra.mxu3 %v70_v31  ;;  %287 = vmatpush.msra.mxu2 %v53_v33  ;;  %v65_v51 = vld [vmem:[%s1195_s1 + $0x198] sm:$0xff]  ;;  %v32_v54 = vld [vmem:[%s1195_s1 + $0x90] sm:$0xff]  ;;  %v47_v57 = vld [vmem:[%s1195_s1 + $0x108] sm:$0xff] }
  0x14   :  { %267 = vmatpush.msra.mxu1 %v37_v34  ;;  %248 = vmatpush.msra.mxu0 %v20_v36  ;;  %v64_v55 = vld [vmem:[%s1195_s1 + $0x190] sm:$0xff]  ;;  %v31_v58 = vld [vmem:[%s1195_s1 + $0x88] sm:$0xff]  ;;  %v14_v60 = vld [vmem:[%s1195_s1] sm:$0xff] }
  0x15   :  { %307 = vmatpush.msra.mxu3 %v69_v35  ;;  %288 = vmatpush.msra.mxu2 %v52_v37  ;;  %v63_v59 = vld [vmem:[%s1195_s1 + $0x188] sm:$0xff]  ;;  %v46_v61 = vld [vmem:[%s1195_s1 + $0x100] sm:$0xff]  ;;  %v93_v62 = vld [vmem:[%s1195_s1 + $0x278] sm:$0xff] }
  0x16   :  { %268 = vmatpush.msra.mxu1 %v36_v38  ;;  %249 = vmatpush.msra.mxu0 %v19_v40  ;;  %v125_v63 = vld [vmem:[%s1195_s1 + $0x378] sm:$0xff]  ;;  %v30_v0 = vld [vmem:[%s1195_s1 + $0x80] sm:$0xff]  ;;  %v92_v2 = vld [vmem:[%s1195_s1 + $0x270] sm:$0xff] }
  0x17   :  { %308 = vmatpush.msra.mxu3 %v68_v39  ;;  %289 = vmatpush.msra.mxu2 %v51_v41  ;;  %v62_v1 = vld [vmem:[%s1195_s1 + $0x180] sm:$0xff]  ;;  %v109_v3 = vld [vmem:[%s1195_s1 + $0x2f8] sm:$0xff]  ;;  %v124_v4 = vld [vmem:[%s1195_s1 + $0x370] sm:$0xff] }
  0x18   :  { %269 = vmatpush.msra.mxu1 %v35_v42  ;;  %250 = vmatpush.msra.mxu0 %v18_v44  ;;  %v141_v5 = vld [vmem:[%s1195_s1 + $0x3f8] sm:$0xff]  ;;  %v91_v6 = vld [vmem:[%s1195_s1 + $0x268] sm:$0xff]  ;;  %v108_v7 = vld [vmem:[%s1195_s1 + $0x2f0] sm:$0xff] }
  0x19   :  { %309 = vmatpush.msra.mxu3 %v67_v43  ;;  %290 = vmatpush.msra.mxu2 %v50_v45  ;;  %v123_v8 = vld [vmem:[%s1195_s1 + $0x368] sm:$0xff]  ;;  %v140_v9 = vld [vmem:[%s1195_s1 + $0x3f0] sm:$0xff]  ;;  %v90_v10 = vld [vmem:[%s1195_s1 + $0x260] sm:$0xff] }
  0x1a   :  { %270 = vmatpush.msra.mxu1 %v34_v46  ;;  %251 = vmatpush.msra.mxu0 %v17_v48  ;;  %v107_v11 = vld [vmem:[%s1195_s1 + $0x2e8] sm:$0xff]  ;;  %v122_v12 = vld [vmem:[%s1195_s1 + $0x360] sm:$0xff]  ;;  %v89_v14 = vld [vmem:[%s1195_s1 + $0x258] sm:$0xff] }
  0x1b   :  { %310 = vmatpush.msra.mxu3 %v66_v47  ;;  %291 = vmatpush.msra.mxu2 %v49_v49  ;;  %v139_v13 = vld [vmem:[%s1195_s1 + $0x3e8] sm:$0xff]  ;;  %v106_v15 = vld [vmem:[%s1195_s1 + $0x2e0] sm:$0xff]  ;;  %v121_v16 = vld [vmem:[%s1195_s1 + $0x358] sm:$0xff] }
  0x1c   :  { %271 = vmatpush.msra.mxu1 %v33_v50  ;;  %252 = vmatpush.msra.mxu0 %v16_v52  ;;  %v138_v17 = vld [vmem:[%s1195_s1 + $0x3e0] sm:$0xff]  ;;  %v88_v18 = vld [vmem:[%s1195_s1 + $0x250] sm:$0xff]  ;;  %v105_v19 = vld [vmem:[%s1195_s1 + $0x2d8] sm:$0xff] }
  0x1d   :  { %311 = vmatpush.msra.mxu3 %v65_v51  ;;  %292 = vmatpush.msra.mxu2 %v48_v53  ;;  %v120_v20 = vld [vmem:[%s1195_s1 + $0x350] sm:$0xff]  ;;  %v137_v21 = vld [vmem:[%s1195_s1 + $0x3d8] sm:$0xff]  ;;  %v87_v22 = vld [vmem:[%s1195_s1 + $0x248] sm:$0xff] }
  0x1e   :  { %272 = vmatpush.msra.mxu1 %v32_v54  ;;  %253 = vmatpush.msra.mxu0 %v15_v56  ;;  %v104_v23 = vld [vmem:[%s1195_s1 + $0x2d0] sm:$0xff]  ;;  %v119_v24 = vld [vmem:[%s1195_s1 + $0x348] sm:$0xff]  ;;  %v86_v26 = vld [vmem:[%s1195_s1 + $0x240] sm:$0xff] }
  0x1f   :  { %312 = vmatpush.msra.mxu3 %v64_v55  ;;  %293 = vmatpush.msra.mxu2 %v47_v57  ;;  %v136_v25 = vld [vmem:[%s1195_s1 + $0x3d0] sm:$0xff]  ;;  %v103_v27 = vld [vmem:[%s1195_s1 + $0x2c8] sm:$0xff]  ;;  %v118_v28 = vld [vmem:[%s1195_s1 + $0x340] sm:$0xff] }
  0x20   :  { %273 = vmatpush.msra.mxu1 %v31_v58  ;;  %254 = vmatpush.msra.mxu0 %v14_v60  ;;  %v135_v29 = vld [vmem:[%s1195_s1 + $0x3c8] sm:$0xff]  ;;  %v85_v30 = vld [vmem:[%s1195_s1 + $0x238] sm:$0xff]  ;;  %v102_v31 = vld [vmem:[%s1195_s1 + $0x2c0] sm:$0xff] }
  0x21   :  { %313 = vmatpush.msra.mxu3 %v63_v59  ;;  %294 = vmatpush.msra.mxu2 %v46_v61  ;;  %v117_v32 = vld [vmem:[%s1195_s1 + $0x338] sm:$0xff]  ;;  %v134_v33 = vld [vmem:[%s1195_s1 + $0x3c0] sm:$0xff]  ;;  %v84_v34 = vld [vmem:[%s1195_s1 + $0x230] sm:$0xff] }
  0x22   :  { %319 = vmatpush.msrb.mxu0 %v93_v62  ;;  %274 = vmatpush.msra.mxu1 %v30_v0  ;;  %v101_v35 = vld [vmem:[%s1195_s1 + $0x2b8] sm:$0xff]  ;;  %v116_v36 = vld [vmem:[%s1195_s1 + $0x330] sm:$0xff]  ;;  %v83_v38 = vld [vmem:[%s1195_s1 + $0x228] sm:$0xff] }
  0x23   :  { %359 = vmatpush.msrb.mxu2 %v125_v63  ;;  %314 = vmatpush.msra.mxu3 %v62_v1  ;;  %v133_v37 = vld [vmem:[%s1195_s1 + $0x3b8] sm:$0xff]  ;;  %v100_v39 = vld [vmem:[%s1195_s1 + $0x2b0] sm:$0xff]  ;;  %v115_v40 = vld [vmem:[%s1195_s1 + $0x328] sm:$0xff] }
  0x24   :  { %320 = vmatpush.msrb.mxu0 %v92_v2  ;;  %339 = vmatpush.msrb.mxu1 %v109_v3  ;;  %v132_v41 = vld [vmem:[%s1195_s1 + $0x3b0] sm:$0xff]  ;;  %v82_v42 = vld [vmem:[%s1195_s1 + $0x220] sm:$0xff]  ;;  %v99_v43 = vld [vmem:[%s1195_s1 + $0x2a8] sm:$0xff] }
  0x25   :  { %360 = vmatpush.msrb.mxu2 %v124_v4  ;;  %379 = vmatpush.msrb.mxu3 %v141_v5  ;;  %v114_v44 = vld [vmem:[%s1195_s1 + $0x320] sm:$0xff]  ;;  %v131_v45 = vld [vmem:[%s1195_s1 + $0x3a8] sm:$0xff]  ;;  %v81_v46 = vld [vmem:[%s1195_s1 + $0x218] sm:$0xff] }
  0x26   :  { %321 = vmatpush.msrb.mxu0 %v91_v6  ;;  %340 = vmatpush.msrb.mxu1 %v108_v7  ;;  %v98_v47 = vld [vmem:[%s1195_s1 + $0x2a0] sm:$0xff]  ;;  %v113_v48 = vld [vmem:[%s1195_s1 + $0x318] sm:$0xff]  ;;  %v80_v50 = vld [vmem:[%s1195_s1 + $0x210] sm:$0xff] }
  0x27   :  { %361 = vmatpush.msrb.mxu2 %v123_v8  ;;  %380 = vmatpush.msrb.mxu3 %v140_v9  ;;  %v130_v49 = vld [vmem:[%s1195_s1 + $0x3a0] sm:$0xff]  ;;  %v97_v51 = vld [vmem:[%s1195_s1 + $0x298] sm:$0xff]  ;;  %v112_v52 = vld [vmem:[%s1195_s1 + $0x310] sm:$0xff] }
  0x28   :  { %322 = vmatpush.msrb.mxu0 %v90_v10  ;;  %341 = vmatpush.msrb.mxu1 %v107_v11  ;;  %v129_v53 = vld [vmem:[%s1195_s1 + $0x398] sm:$0xff]  ;;  %v79_v54 = vld [vmem:[%s1195_s1 + $0x208] sm:$0xff]  ;;  %v96_v55 = vld [vmem:[%s1195_s1 + $0x290] sm:$0xff] }
  0x29   :  { %362 = vmatpush.msrb.mxu2 %v122_v12  ;;  %381 = vmatpush.msrb.mxu3 %v139_v13  ;;  %v111_v56 = vld [vmem:[%s1195_s1 + $0x308] sm:$0xff]  ;;  %v128_v57 = vld [vmem:[%s1195_s1 + $0x390] sm:$0xff]  ;;  %v78_v59 = vld [vmem:[%s1195_s1 + $0x200] sm:$0xff] }
  0x2a   :  { %323 = vmatpush.msrb.mxu0 %v89_v14  ;;  %342 = vmatpush.msrb.mxu1 %v106_v15  ;;  %v224_v58 = vld [vmem:[%s1196_s0 + $0x10] sm:$0xff]  ;;  %v95_v60 = vld [vmem:[%s1195_s1 + $0x288] sm:$0xff]  ;;  %v110_v61 = vld [vmem:[%s1195_s1 + $0x300] sm:$0xff] }
  0x2b   :  { %363 = vmatpush.msrb.mxu2 %v121_v16  ;;  %382 = vmatpush.msrb.mxu3 %v138_v17  ;;  %v127_v62 = vld [vmem:[%s1195_s1 + $0x388] sm:$0xff]  ;;  %v222_v63 = vld [vmem:[%s1196_s0] sm:$0xff]  ;;  %v225_v0 = vld [vmem:[%s1196_s0 + $0x18] sm:$0xff] }
  0x2c   :  { %324 = vmatpush.msrb.mxu0 %v88_v18  ;;  %343 = vmatpush.msrb.mxu1 %v105_v19  ;;  %v157_v1 = vld [vmem:[%s1195_s1 + $0x478] sm:$0xff]  ;;  %v94_v3 = vld [vmem:[%s1195_s1 + $0x280] sm:$0xff]  ;;  %v223_v5 = vld [vmem:[%s1196_s0 + $0x8] sm:$0xff] }
  0x2d   :  { %364 = vmatpush.msrb.mxu2 %v120_v20  ;;  %383 = vmatpush.msrb.mxu3 %v137_v21  ;;  %v189_v2 = vld [vmem:[%s1195_s1 + $0x578] sm:$0xff]  ;;  %v126_v4 = vld [vmem:[%s1195_s1 + $0x380] sm:$0xff]  ;;  %v156_v6 = vld [vmem:[%s1195_s1 + $0x470] sm:$0xff] }
  0x2e   :  { %325 = vmatpush.msrb.mxu0 %v87_v22  ;;  %344 = vmatpush.msrb.mxu1 %v104_v23  ;;  %v173_v7 = vld [vmem:[%s1195_s1 + $0x4f8] sm:$0xff]  ;;  %v188_v8 = vld [vmem:[%s1195_s1 + $0x570] sm:$0xff]  ;;  %v155_v10 = vld [vmem:[%s1195_s1 + $0x468] sm:$0xff] }
  0x2f   :  { %365 = vmatpush.msrb.mxu2 %v119_v24  ;;  %384 = vmatpush.msrb.mxu3 %v136_v25  ;;  %v205_v9 = vld [vmem:[%s1195_s1 + $0x5f8] sm:$0xff]  ;;  %v172_v11 = vld [vmem:[%s1195_s1 + $0x4f0] sm:$0xff]  ;;  %v187_v12 = vld [vmem:[%s1195_s1 + $0x568] sm:$0xff] }
  0x30   :  { %326 = vmatpush.msrb.mxu0 %v86_v26  ;;  %345 = vmatpush.msrb.mxu1 %v103_v27  ;;  %v204_v13 = vld [vmem:[%s1195_s1 + $0x5f0] sm:$0xff]  ;;  %v154_v15 = vld [vmem:[%s1195_s1 + $0x460] sm:$0xff]  ;;  %v171_v16 = vld [vmem:[%s1195_s1 + $0x4e8] sm:$0xff] }
  0x31   :  { %366 = vmatpush.msrb.mxu2 %v118_v28  ;;  %385 = vmatpush.msrb.mxu3 %v135_v29  ;;  %v228_v14 = vld [vmem:[%s1196_s0 + $0x30] sm:$0xff]  ;;  %v186_v17 = vld [vmem:[%s1195_s1 + $0x560] sm:$0xff]  ;;  %v203_v18 = vld [vmem:[%s1195_s1 + $0x5e8] sm:$0xff] }
  0x32   :  { %327 = vmatpush.msrb.mxu0 %v85_v30  ;;  %346 = vmatpush.msrb.mxu1 %v102_v31  ;;  %v226_v19 = vld [vmem:[%s1196_s0 + $0x20] sm:$0xff]  ;;  %v229_v20 = vld [vmem:[%s1196_s0 + $0x38] sm:$0xff]  ;;  %v227_v25 = vld [vmem:[%s1196_s0 + $0x28] sm:$0xff] }
  0x33   :  { %367 = vmatpush.msrb.mxu2 %v117_v32  ;;  %386 = vmatpush.msrb.mxu3 %v134_v33  ;;  %v153_v21 = vld [vmem:[%s1195_s1 + $0x458] sm:$0xff]  ;;  %v170_v22 = vld [vmem:[%s1195_s1 + $0x4e0] sm:$0xff]  ;;  %v152_v26 = vld [vmem:[%s1195_s1 + $0x450] sm:$0xff] }
  0x34   :  { %328 = vmatpush.msrb.mxu0 %v84_v34  ;;  %347 = vmatpush.msrb.mxu1 %v101_v35  ;;  %v185_v23 = vld [vmem:[%s1195_s1 + $0x558] sm:$0xff]  ;;  %v202_v24 = vld [vmem:[%s1195_s1 + $0x5e0] sm:$0xff]  ;;  %v184_v28 = vld [vmem:[%s1195_s1 + $0x550] sm:$0xff] }
  0x35   :  { %368 = vmatpush.msrb.mxu2 %v116_v36  ;;  %387 = vmatpush.msrb.mxu3 %v133_v37  ;;  %v169_v27 = vld [vmem:[%s1195_s1 + $0x4d8] sm:$0xff]  ;;  %v151_v30 = vld [vmem:[%s1195_s1 + $0x448] sm:$0xff]  ;;  %v168_v31 = vld [vmem:[%s1195_s1 + $0x4d0] sm:$0xff] }
  0x36   :  { %329 = vmatpush.msrb.mxu0 %v83_v38  ;;  %348 = vmatpush.msrb.mxu1 %v100_v39  ;;  %v201_v29 = vld [vmem:[%s1195_s1 + $0x5d8] sm:$0xff]  ;;  %v183_v32 = vld [vmem:[%s1195_s1 + $0x548] sm:$0xff]  ;;  %v200_v33 = vld [vmem:[%s1195_s1 + $0x5d0] sm:$0xff] }
  0x37   :  { %369 = vmatpush.msrb.mxu2 %v115_v40  ;;  %388 = vmatpush.msrb.mxu3 %v132_v41  ;;  %v150_v34 = vld [vmem:[%s1195_s1 + $0x440] sm:$0xff]  ;;  %v167_v35 = vld [vmem:[%s1195_s1 + $0x4c8] sm:$0xff]  ;;  %v149_v38 = vld [vmem:[%s1195_s1 + $0x438] sm:$0xff] }
  0x38   :  { %330 = vmatpush.msrb.mxu0 %v82_v42  ;;  %349 = vmatpush.msrb.mxu1 %v99_v43  ;;  %v182_v36 = vld [vmem:[%s1195_s1 + $0x540] sm:$0xff]  ;;  %v199_v37 = vld [vmem:[%s1195_s1 + $0x5c8] sm:$0xff]  ;;  %v181_v40 = vld [vmem:[%s1195_s1 + $0x538] sm:$0xff] }
  0x39   :  { %370 = vmatpush.msrb.mxu2 %v114_v44  ;;  %389 = vmatpush.msrb.mxu3 %v131_v45  ;;  %v166_v39 = vld [vmem:[%s1195_s1 + $0x4c0] sm:$0xff]  ;;  %v148_v42 = vld [vmem:[%s1195_s1 + $0x430] sm:$0xff]  ;;  %v165_v43 = vld [vmem:[%s1195_s1 + $0x4b8] sm:$0xff] }
  0x3a   :  { %331 = vmatpush.msrb.mxu0 %v81_v46  ;;  %350 = vmatpush.msrb.mxu1 %v98_v47  ;;  %v198_v41 = vld [vmem:[%s1195_s1 + $0x5c0] sm:$0xff]  ;;  %v180_v44 = vld [vmem:[%s1195_s1 + $0x530] sm:$0xff]  ;;  %v197_v45 = vld [vmem:[%s1195_s1 + $0x5b8] sm:$0xff] }
  0x3b   :  { %371 = vmatpush.msrb.mxu2 %v113_v48  ;;  %390 = vmatpush.msrb.mxu3 %v130_v49  ;;  %v147_v46 = vld [vmem:[%s1195_s1 + $0x428] sm:$0xff]  ;;  %v164_v47 = vld [vmem:[%s1195_s1 + $0x4b0] sm:$0xff] }
  0x3c   :  { %332 = vmatpush.msrb.mxu0 %v80_v50  ;;  %351 = vmatpush.msrb.mxu1 %v97_v51  ;;  %v179_v48 = vld [vmem:[%s1195_s1 + $0x528] sm:$0xff]  ;;  %v196_v49 = vld [vmem:[%s1195_s1 + $0x5b0] sm:$0xff]  ;;  %v146_v50 = vld [vmem:[%s1195_s1 + $0x420] sm:$0xff] }
  0x3d   :  { %372 = vmatpush.msrb.mxu2 %v112_v52  ;;  %391 = vmatpush.msrb.mxu3 %v129_v53  ;;  %v163_v51 = vld [vmem:[%s1195_s1 + $0x4a8] sm:$0xff]  ;;  %v178_v52 = vld [vmem:[%s1195_s1 + $0x520] sm:$0xff] }
  0x3e   :  { %333 = vmatpush.msrb.mxu0 %v79_v54  ;;  %352 = vmatpush.msrb.mxu1 %v96_v55  ;;  %v195_v53 = vld [vmem:[%s1195_s1 + $0x5a8] sm:$0xff]  ;;  %v145_v54 = vld [vmem:[%s1195_s1 + $0x418] sm:$0xff]  ;;  %v162_v55 = vld [vmem:[%s1195_s1 + $0x4a0] sm:$0xff] }
  0x3f   :  { %373 = vmatpush.msrb.mxu2 %v111_v56  ;;  %392 = vmatpush.msrb.mxu3 %v128_v57  ;;  %v177_v56 = vld [vmem:[%s1195_s1 + $0x518] sm:$0xff]  ;;  %v194_v57 = vld [vmem:[%s1195_s1 + $0x5a0] sm:$0xff] }
  0x40   :  { %295 = vmatmul.f32.vlgmr.msra.gmra.mxu2 %v224_v58  ;;  %334 = vmatpush.msrb.mxu0 %v78_v59  ;;  %v144_v58 = vld [vmem:[%s1195_s1 + $0x410] sm:$0xff]  ;;  %v161_v59 = vld [vmem:[%s1195_s1 + $0x498] sm:$0xff] }
  0x41   :  { %353 = vmatpush.msrb.mxu1 %v95_v60  ;;  %374 = vmatpush.msrb.mxu2 %v110_v61  ;;  %v176_v60 = vld [vmem:[%s1195_s1 + $0x510] sm:$0xff]  ;;  %v193_v61 = vld [vmem:[%s1195_s1 + $0x598] sm:$0xff] }
  0x42   :  { %393 = vmatpush.msrb.mxu3 %v127_v62  ;;  %255 = vmatmul.f32.vlgmr.msra.gmra.mxu0 %v222_v63  ;;  %v143_v62 = vld [vmem:[%s1195_s1 + $0x408] sm:$0xff]  ;;  %v160_v63 = vld [vmem:[%s1195_s1 + $0x490] sm:$0xff] }
  0x43   :  { %315 = vmatmul.f32.vlgmr.msra.gmra.mxu3 %v225_v0  ;;  %399 = vmatpush.msra.mxu0 %v157_v1  ;;  %v175_v0 = vld [vmem:[%s1195_s1 + $0x508] sm:$0xff]  ;;  %v192_v1 = vld [vmem:[%s1195_s1 + $0x590] sm:$0xff] }
  0x44   :  { %439 = vmatpush.msra.mxu2 %v189_v2  ;;  %354 = vmatpush.msrb.mxu1 %v94_v3  ;;  %v142_v2 = vld [vmem:[%s1195_s1 + $0x400] sm:$0xff]  ;;  %v159_v3 = vld [vmem:[%s1195_s1 + $0x488] sm:$0xff] }
  0x45   :  { %394 = vmatpush.msrb.mxu3 %v126_v4  ;;  %275 = vmatmul.f32.vlgmr.msra.gmra.mxu1 %v223_v5  ;;  %v174_v4 = vld [vmem:[%s1195_s1 + $0x500] sm:$0xff]  ;;  %v191_v5 = vld [vmem:[%s1195_s1 + $0x588] sm:$0xff] }
  0x46   :  { %400 = vmatpush.msra.mxu0 %v156_v6  ;;  %419 = vmatpush.msra.mxu1 %v173_v7  ;;  %v230_v6 = vld [vmem:[%s1196_s0 + $0x40] sm:$0xff]  ;;  %v232_v7 = vld [vmem:[%s1196_s0 + $0x50] sm:$0xff] }
  0x47   :  { %440 = vmatpush.msra.mxu2 %v188_v8  ;;  %459 = vmatpush.msra.mxu3 %v205_v9  ;;  %v221_v8 = vld [vmem:[%s1195_s1 + $0x678] sm:$0xff]  ;;  %v158_v9 = vld [vmem:[%s1195_s1 + $0x480] sm:$0xff] }
  0x48   :  { %401 = vmatpush.msra.mxu0 %v155_v10  ;;  %420 = vmatpush.msra.mxu1 %v172_v11  ;;  %v190_v10 = vld [vmem:[%s1195_s1 + $0x580] sm:$0xff]  ;;  %v231_v11 = vld [vmem:[%s1196_s0 + $0x48] sm:$0xff] }
  0x49   :  { %441 = vmatpush.msra.mxu2 %v187_v12  ;;  %460 = vmatpush.msra.mxu3 %v204_v13  ;;  %v233_v12 = vld [vmem:[%s1196_s0 + $0x58] sm:$0xff]  ;;  %v220_v13 = vld [vmem:[%s1195_s1 + $0x670] sm:$0xff] }
  0x4a   :  { %375 = vmatmul.f32.vlgmr.msrb.gmra.mxu2 %v228_v14  ;;  %402 = vmatpush.msra.mxu0 %v154_v15  ;;  %v219_v14 = vld [vmem:[%s1195_s1 + $0x668] sm:$0xff]  ;;  %v218_v15 = vld [vmem:[%s1195_s1 + $0x660] sm:$0xff] }
  0x4b   :  { %421 = vmatpush.msra.mxu1 %v171_v16  ;;  %442 = vmatpush.msra.mxu2 %v186_v17  ;;  %v217_v16 = vld [vmem:[%s1195_s1 + $0x658] sm:$0xff]  ;;  %v216_v17 = vld [vmem:[%s1195_s1 + $0x650] sm:$0xff] }
  0x4c   :  { %461 = vmatpush.msra.mxu3 %v203_v18  ;;  %335 = vmatmul.f32.vlgmr.msrb.gmra.mxu0 %v226_v19  ;;  %v215_v18 = vld [vmem:[%s1195_s1 + $0x648] sm:$0xff]  ;;  %v214_v19 = vld [vmem:[%s1195_s1 + $0x640] sm:$0xff] }
  0x4d   :  { %395 = vmatmul.f32.vlgmr.msrb.gmra.mxu3 %v229_v20  ;;  %403 = vmatpush.msra.mxu0 %v153_v21  ;;  %v213_v20 = vld [vmem:[%s1195_s1 + $0x638] sm:$0xff]  ;;  %v212_v21 = vld [vmem:[%s1195_s1 + $0x630] sm:$0xff] }
  0x4e   :  { %422 = vmatpush.msra.mxu1 %v170_v22  ;;  %443 = vmatpush.msra.mxu2 %v185_v23  ;;  %v211_v22 = vld [vmem:[%s1195_s1 + $0x628] sm:$0xff]  ;;  %v210_v23 = vld [vmem:[%s1195_s1 + $0x620] sm:$0xff] }
  0x4f   :  { %462 = vmatpush.msra.mxu3 %v202_v24  ;;  %355 = vmatmul.f32.vlgmr.msrb.gmra.mxu1 %v227_v25  ;;  %v209_v24 = vld [vmem:[%s1195_s1 + $0x618] sm:$0xff]  ;;  %v208_v25 = vld [vmem:[%s1195_s1 + $0x610] sm:$0xff] }
  0x50   :  { %404 = vmatpush.msra.mxu0 %v152_v26  ;;  %423 = vmatpush.msra.mxu1 %v169_v27  ;;  %v207_v26 = vld [vmem:[%s1195_s1 + $0x608] sm:$0xff]  ;;  %v206_v27 = vld [vmem:[%s1195_s1 + $0x600] sm:$0xff] }
  0x51   :  { %444 = vmatpush.msra.mxu2 %v184_v28  ;;  %463 = vmatpush.msra.mxu3 %v201_v29  ;;  %v234_v28 = vld [vmem:[%s1196_s0 + $0x60] sm:$0xff] }
  0x52   :  { %405 = vmatpush.msra.mxu0 %v151_v30  ;;  %424 = vmatpush.msra.mxu1 %v168_v31  ;;  %v505_v29 = vld [vmem:[%s1197_s2] ss:$0 sm:$0xff] }
  0x53   :  { %445 = vmatpush.msra.mxu2 %v183_v32  ;;  %464 = vmatpush.msra.mxu3 %v200_v33 }
  0x54   :  { %406 = vmatpush.msra.mxu0 %v150_v34  ;;  %425 = vmatpush.msra.mxu1 %v167_v35 }
  0x55   :  { %446 = vmatpush.msra.mxu2 %v182_v36  ;;  %465 = vmatpush.msra.mxu3 %v199_v37 }
  0x56   :  { %407 = vmatpush.msra.mxu0 %v149_v38  ;;  %426 = vmatpush.msra.mxu1 %v166_v39 }
  0x57   :  { %447 = vmatpush.msra.mxu2 %v181_v40  ;;  %466 = vmatpush.msra.mxu3 %v198_v41 }
  0x58   :  { %408 = vmatpush.msra.mxu0 %v148_v42  ;;  %427 = vmatpush.msra.mxu1 %v165_v43 }
  0x59   :  { %448 = vmatpush.msra.mxu2 %v180_v44  ;;  %467 = vmatpush.msra.mxu3 %v197_v45 }
  0x5a   :  { %409 = vmatpush.msra.mxu0 %v147_v46  ;;  %428 = vmatpush.msra.mxu1 %v164_v47 }
  0x5b   :  { %449 = vmatpush.msra.mxu2 %v179_v48  ;;  %468 = vmatpush.msra.mxu3 %v196_v49 }
  0x5c   :  { %410 = vmatpush.msra.mxu0 %v146_v50  ;;  %429 = vmatpush.msra.mxu1 %v163_v51 }
  0x5d   :  { %450 = vmatpush.msra.mxu2 %v178_v52  ;;  %469 = vmatpush.msra.mxu3 %v195_v53 }
  0x5e   :  { %411 = vmatpush.msra.mxu0 %v145_v54  ;;  %430 = vmatpush.msra.mxu1 %v162_v55 }
  0x5f   :  { %451 = vmatpush.msra.mxu2 %v177_v56  ;;  %470 = vmatpush.msra.mxu3 %v194_v57 }
  0x60   :  { %412 = vmatpush.msra.mxu0 %v144_v58  ;;  %431 = vmatpush.msra.mxu1 %v161_v59 }
  0x61   :  { %452 = vmatpush.msra.mxu2 %v176_v60  ;;  %471 = vmatpush.msra.mxu3 %v193_v61 }
  0x62   :  { %413 = vmatpush.msra.mxu0 %v143_v62  ;;  %432 = vmatpush.msra.mxu1 %v160_v63 }
  0x63   :  { %453 = vmatpush.msra.mxu2 %v175_v0  ;;  %472 = vmatpush.msra.mxu3 %v192_v1 }
  0x64   :  { %414 = vmatpush.msra.mxu0 %v142_v2  ;;  %433 = vmatpush.msra.mxu1 %v159_v3 }
  0x65   :  { %454 = vmatpush.msra.mxu2 %v174_v4  ;;  %473 = vmatpush.msra.mxu3 %v191_v5 }
  0x66   :  { %415 = vmatmul.f32.vlgmr.msra.gmra.mxu0 %v230_v6  ;;  %455 = vmatmul.f32.vlgmr.msra.gmra.mxu2 %v232_v7 }
  0x67   :  { %479 = vmatpush.msrb.mxu0 %v221_v8  ;;  %434 = vmatpush.msra.mxu1 %v158_v9 }
  0x68   :  { %474 = vmatpush.msra.mxu3 %v190_v10  ;;  %435 = vmatmul.f32.vlgmr.msra.gmra.mxu1 %v231_v11 }
  0x69   :  { %475 = vmatmul.f32.vlgmr.msra.gmra.mxu3 %v233_v12  ;;  %480 = vmatpush.msrb.mxu0 %v220_v13 }
  0x6b   :  { %481 = vmatpush.msrb.mxu0 %v219_v14 }
  0x6d   :  { %482 = vmatpush.msrb.mxu0 %v218_v15 }
  0x6f   :  { %483 = vmatpush.msrb.mxu0 %v217_v16 }
  0x71   :  { %484 = vmatpush.msrb.mxu0 %v216_v17 }
  0x73   :  { %485 = vmatpush.msrb.mxu0 %v215_v18 }
  0x75   :  { %486 = vmatpush.msrb.mxu0 %v214_v19 }
  0x77   :  { %487 = vmatpush.msrb.mxu0 %v213_v20 }
  0x79   :  { %488 = vmatpush.msrb.mxu0 %v212_v21 }
  0x7b   :  { %489 = vmatpush.msrb.mxu0 %v211_v22 }
  0x7d   :  { %490 = vmatpush.msrb.mxu0 %v210_v23 }
  0x7f   :  { %491 = vmatpush.msrb.mxu0 %v209_v24 }
  0x81   :  { %492 = vmatpush.msrb.mxu0 %v208_v25 }
  0x83   :  { %493 = vmatpush.msrb.mxu0 %v207_v26 }
  0x85   :  { %494 = vmatpush.msrb.mxu0 %v206_v27 }
  0x86   :  { %495 = vmatmul.f32.vlgmr.msrb.gmra.mxu0 %v234_v28 }
  0xbf   :  { %v256_v30 = vpop.f32.mrf.mxu0 }
  0xc0   :  { %v257_v31 = vadd.f32 %v505_v29, %v256_v30 }
  0xc2   :  { %v276_v32 = vpop.f32.mrf.mxu1 }
  0xc3   :  { %v277_v33 = vadd.f32 %v276_v32, %v257_v31  ;;  %v296_v34 = vpop.f32.mrf.mxu2 }
  0xc5   :  { %v297_v35 = vadd.f32 %v296_v34, %v277_v33 }
  0xc6   :  { %v316_v36 = vpop.f32.mrf.mxu3 }
  0xc7   :  { %v317_v37 = vadd.f32 %v316_v36, %v297_v35 }
  0xc9   :  { %v336_v38 = vpop.f32.mrf.mxu0 }
  0xca   :  { %v337_v39 = vadd.f32 %v336_v38, %v317_v37 }
  0xcc   :  { %v356_v40 = vpop.f32.mrf.mxu1 }
  0xcd   :  { %v357_v41 = vadd.f32 %v356_v40, %v337_v39  ;;  %v376_v42 = vpop.f32.mrf.mxu2 }
  0xcf   :  { %v377_v43 = vadd.f32 %v376_v42, %v357_v41 }
  0xd0   :  { %v396_v44 = vpop.f32.mrf.mxu3 }
  0xd1   :  { %v397_v46 = vadd.f32 %v396_v44, %v377_v43 }
  0xe3   :  { %v416_v45 = vpop.f32.mrf.mxu0 }
  0xe4   :  { %v417_v47 = vadd.f32 %v416_v45, %v397_v46 }
  0xe5   :  { %v436_v48 = vpop.f32.mrf.mxu1 }
  0xe6   :  { %v437_v50 = vadd.f32 %v436_v48, %v417_v47 }
  0xe9   :  { %v456_v49 = vpop.f32.mrf.mxu2 }
  0xea   :  { %v457_v51 = vadd.f32 %v456_v49, %v437_v50 }
  0xec   :  { %v476_v52 = vpop.f32.mrf.mxu3 }
  0xed   :  { %v477_v53 = vadd.f32 %v476_v52, %v457_v51 }
 0x103   :  { %v496_v54 = vpop.f32.mrf.mxu0 }
 0x104   :  { %v497_v55 = vadd.f32 %v496_v54, %v477_v53 }
 0x106   :  { %v499_v56 = vmax.f32 %v497_v55, 0.0 }
 0x108   :  { %500 = vst [vmem:[%s1198_s3] sm:$0xff] %v499_v56 }

// kernel: forward.7
= control target key start
LH: loop header
LB: loop body
LE: loop exit
PB: predicated region body
PF: predicated region fallthrough
CT: control target
= control target key end

     0   :  { %s441_s0 = inlined_call_operand.vmem [shape: f32[1,2,512], index: 0, kind: input, shape index: {}]   ;;  %s442_s1 = inlined_call_operand.vmem [shape: f32[512,128], index: 1, kind: input, shape index: {}]   ;;  %s443_s2 = inlined_call_operand.vmem [shape: f32[1,128], index: 2, kind: input, shape index: {}]   ;;  %s444_s3 = inlined_call_operand.hbm [shape: f32[2,128], index: 3, kind: output, shape index: {}]  }
   0x1   :  { %v62_v0 = vld [vmem:[%s442_s1 + $0x178] sm:$0xff]  ;;  %v61_v2 = vld [vmem:[%s442_s1 + $0x170] sm:$0xff]  ;;  %v60_v6 = vld [vmem:[%s442_s1 + $0x168] sm:$0xff] }
   0x2   :  { %v30_v1 = vld [vmem:[%s442_s1 + $0x78] sm:$0xff]  ;;  %134 = vmatpush.msra.mxu2 %v62_v0  ;;  %v29_v4 = vld [vmem:[%s442_s1 + $0x70] sm:$0xff]  ;;  %v28_v8 = vld [vmem:[%s442_s1 + $0x68] sm:$0xff] }
   0x3   :  { %94 = vmatpush.msra.mxu0 %v30_v1  ;;  %v78_v3 = vld [vmem:[%s442_s1 + $0x1f8] sm:$0xff]  ;;  %v77_v7 = vld [vmem:[%s442_s1 + $0x1f0] sm:$0xff]  ;;  %v76_v10 = vld [vmem:[%s442_s1 + $0x1e8] sm:$0xff] }
   0x4   :  { %v46_v5 = vld [vmem:[%s442_s1 + $0xf8] sm:$0xff]  ;;  %154 = vmatpush.msra.mxu3 %v78_v3  ;;  %135 = vmatpush.msra.mxu2 %v61_v2  ;;  %v45_v9 = vld [vmem:[%s442_s1 + $0xf0] sm:$0xff]  ;;  %v59_v11 = vld [vmem:[%s442_s1 + $0x160] sm:$0xff] }
   0x5   :  { %114 = vmatpush.msra.mxu1 %v46_v5  ;;  %95 = vmatpush.msra.mxu0 %v29_v4  ;;  %v27_v12 = vld [vmem:[%s442_s1 + $0x60] sm:$0xff]  ;;  %v44_v13 = vld [vmem:[%s442_s1 + $0xe8] sm:$0xff]  ;;  %v58_v16 = vld [vmem:[%s442_s1 + $0x158] sm:$0xff] }
   0x6   :  { %155 = vmatpush.msra.mxu3 %v77_v7  ;;  %136 = vmatpush.msra.mxu2 %v60_v6  ;;  %v75_v14 = vld [vmem:[%s442_s1 + $0x1e0] sm:$0xff]  ;;  %v26_v17 = vld [vmem:[%s442_s1 + $0x58] sm:$0xff]  ;;  %v57_v20 = vld [vmem:[%s442_s1 + $0x150] sm:$0xff] }
   0x7   :  { %115 = vmatpush.msra.mxu1 %v45_v9  ;;  %96 = vmatpush.msra.mxu0 %v28_v8  ;;  %v43_v15 = vld [vmem:[%s442_s1 + $0xe0] sm:$0xff]  ;;  %v74_v18 = vld [vmem:[%s442_s1 + $0x1d8] sm:$0xff]  ;;  %v25_v21 = vld [vmem:[%s442_s1 + $0x50] sm:$0xff] }
   0x8   :  { %156 = vmatpush.msra.mxu3 %v76_v10  ;;  %137 = vmatpush.msra.mxu2 %v59_v11  ;;  %v42_v19 = vld [vmem:[%s442_s1 + $0xd8] sm:$0xff]  ;;  %v73_v22 = vld [vmem:[%s442_s1 + $0x1d0] sm:$0xff]  ;;  %v56_v24 = vld [vmem:[%s442_s1 + $0x148] sm:$0xff] }
   0x9   :  { %116 = vmatpush.msra.mxu1 %v44_v13  ;;  %97 = vmatpush.msra.mxu0 %v27_v12  ;;  %v41_v23 = vld [vmem:[%s442_s1 + $0xd0] sm:$0xff]  ;;  %v24_v25 = vld [vmem:[%s442_s1 + $0x48] sm:$0xff]  ;;  %v55_v28 = vld [vmem:[%s442_s1 + $0x140] sm:$0xff] }
   0xa   :  { %157 = vmatpush.msra.mxu3 %v75_v14  ;;  %138 = vmatpush.msra.mxu2 %v58_v16  ;;  %v72_v26 = vld [vmem:[%s442_s1 + $0x1c8] sm:$0xff]  ;;  %v23_v29 = vld [vmem:[%s442_s1 + $0x40] sm:$0xff]  ;;  %v54_v32 = vld [vmem:[%s442_s1 + $0x138] sm:$0xff] }
   0xb   :  { %117 = vmatpush.msra.mxu1 %v43_v15  ;;  %98 = vmatpush.msra.mxu0 %v26_v17  ;;  %v40_v27 = vld [vmem:[%s442_s1 + $0xc8] sm:$0xff]  ;;  %v71_v30 = vld [vmem:[%s442_s1 + $0x1c0] sm:$0xff]  ;;  %v22_v33 = vld [vmem:[%s442_s1 + $0x38] sm:$0xff] }
   0xc   :  { %158 = vmatpush.msra.mxu3 %v74_v18  ;;  %139 = vmatpush.msra.mxu2 %v57_v20  ;;  %v39_v31 = vld [vmem:[%s442_s1 + $0xc0] sm:$0xff]  ;;  %v70_v34 = vld [vmem:[%s442_s1 + $0x1b8] sm:$0xff]  ;;  %v53_v36 = vld [vmem:[%s442_s1 + $0x130] sm:$0xff] }
   0xd   :  { %118 = vmatpush.msra.mxu1 %v42_v19  ;;  %99 = vmatpush.msra.mxu0 %v25_v21  ;;  %v38_v35 = vld [vmem:[%s442_s1 + $0xb8] sm:$0xff]  ;;  %v21_v37 = vld [vmem:[%s442_s1 + $0x30] sm:$0xff]  ;;  %v52_v40 = vld [vmem:[%s442_s1 + $0x128] sm:$0xff] }
   0xe   :  { %159 = vmatpush.msra.mxu3 %v73_v22  ;;  %140 = vmatpush.msra.mxu2 %v56_v24  ;;  %v69_v38 = vld [vmem:[%s442_s1 + $0x1b0] sm:$0xff]  ;;  %v20_v41 = vld [vmem:[%s442_s1 + $0x28] sm:$0xff]  ;;  %v51_v44 = vld [vmem:[%s442_s1 + $0x120] sm:$0xff] }
   0xf   :  { %119 = vmatpush.msra.mxu1 %v41_v23  ;;  %100 = vmatpush.msra.mxu0 %v24_v25  ;;  %v37_v39 = vld [vmem:[%s442_s1 + $0xb0] sm:$0xff]  ;;  %v68_v42 = vld [vmem:[%s442_s1 + $0x1a8] sm:$0xff]  ;;  %v19_v45 = vld [vmem:[%s442_s1 + $0x20] sm:$0xff] }
  0x10   :  { %160 = vmatpush.msra.mxu3 %v72_v26  ;;  %141 = vmatpush.msra.mxu2 %v55_v28  ;;  %v36_v43 = vld [vmem:[%s442_s1 + $0xa8] sm:$0xff]  ;;  %v79_v46 = vld [vmem:[%s441_s0] sm:$0xff]  ;;  %v50_v49 = vld [vmem:[%s442_s1 + $0x118] sm:$0xff] }
  0x11   :  { %120 = vmatpush.msra.mxu1 %v40_v27  ;;  %101 = vmatpush.msra.mxu0 %v23_v29  ;;  %v67_v47 = vld [vmem:[%s442_s1 + $0x1a0] sm:$0xff]  ;;  %85 = vst [vmem:[#allocation1] ss:$4 sm:$0xff] %v79_v46  ;;  %v18_v50 = vld [vmem:[%s442_s1 + $0x18] sm:$0xff] }
  0x12   :  { %161 = vmatpush.msra.mxu3 %v71_v30  ;;  %142 = vmatpush.msra.mxu2 %v54_v32  ;;  %v35_v48 = vld [vmem:[%s442_s1 + $0xa0] sm:$0xff] }
  0x13   :  { %121 = vmatpush.msra.mxu1 %v39_v31  ;;  %102 = vmatpush.msra.mxu0 %v22_v33 }
  0x14   :  { %162 = vmatpush.msra.mxu3 %v70_v34  ;;  %143 = vmatpush.msra.mxu2 %v53_v36 }
  0x15   :  { %122 = vmatpush.msra.mxu1 %v38_v35  ;;  %103 = vmatpush.msra.mxu0 %v21_v37 }
  0x16   :  { %163 = vmatpush.msra.mxu3 %v69_v38  ;;  %144 = vmatpush.msra.mxu2 %v52_v40 }
  0x17   :  { %123 = vmatpush.msra.mxu1 %v37_v39  ;;  %104 = vmatpush.msra.mxu0 %v20_v41 }
  0x18   :  { %164 = vmatpush.msra.mxu3 %v68_v42 }
  0x19   :  { %124 = vmatpush.msra.mxu1 %v36_v43 }
  0x1a   :  { %8 = vsyncpa [#allocation3], 0  ;;  %145 = vmatpush.msra.mxu2 %v51_v44  ;;  %105 = vmatpush.msra.mxu0 %v19_v45  ;;  %v66_v51 = vld [vmem:[%s442_s1 + $0x198] sm:$0xff]  ;;  %v49_v53 = vld [vmem:[%s442_s1 + $0x110] sm:$0xff]  ;;  %s219_s7 = smov [#allocation2]   ;;  %s182_s10 = sshll.u32 %s444_s3, 4  ;;  %s183_s10 = int_to_ptr.hbm [resolvable:$true] %s182_s10 }
  0x1b   :  { %v34_v52 = vld [vmem:[%s442_s1 + $0x98] sm:$0xff]  ;;  %165 = vmatpush.msra.mxu3 %v67_v47  ;;  %125 = vmatpush.msra.mxu1 %v35_v48  ;;  %v17_v54 = vld [vmem:[%s442_s1 + $0x10] sm:$0xff]  ;;  %v48_v57 = vld [vmem:[%s442_s1 + $0x108] sm:$0xff]  ;;  %s180_s8 = sshll.u32 %s219_s7, 4  ;;  %s181_s8 = int_to_ptr.vmem [resolvable:$true] %s180_s8 }
  0x1c   :  { %146 = vmatpush.msra.mxu2 %v50_v49  ;;  %106 = vmatpush.msra.mxu0 %v18_v50  ;;  %v65_v55 = vld [vmem:[%s442_s1 + $0x190] sm:$0xff]  ;;  %v16_v58 = vld [vmem:[%s442_s1 + $0x8] sm:$0xff]  ;;  %v47_v61 = vld [vmem:[%s442_s1 + $0x100] sm:$0xff] }
  0x1d   :  { %v33_v56 = vld [vmem:[%s442_s1 + $0x90] sm:$0xff]  ;;  %166 = vmatpush.msra.mxu3 %v66_v51  ;;  %126 = vmatpush.msra.mxu1 %v34_v52  ;;  %v64_v59 = vld [vmem:[%s442_s1 + $0x188] sm:$0xff]  ;;  %v15_v62 = vld [vmem:[%s442_s1] sm:$0xff] }
  0x1e   :  { %147 = vmatpush.msra.mxu2 %v49_v53  ;;  %107 = vmatpush.msra.mxu0 %v17_v54  ;;  %v32_v60 = vld [vmem:[%s442_s1 + $0x88] sm:$0xff]  ;;  %v88_v63 = vld.sshfl [vmem:[#allocation1 + $0x10] sm:$0xff pattern:$0x73625140]  ;;  %v63_v0 = vld [vmem:[%s442_s1 + $0x180] sm:$0xff] }
  0x1f   :  { %167 = vmatpush.msra.mxu3 %v65_v55  ;;  %127 = vmatpush.msra.mxu1 %v33_v56  ;;  %v86_v1 = vld.sshfl [vmem:[#allocation1] sm:$0xff pattern:$0x73625140]  ;;  %v89_v2 = vld.sshfl [vmem:[#allocation1 + $0x18] sm:$0xff pattern:$0x73625140] }
  0x20   :  { %148 = vmatpush.msra.mxu2 %v48_v57  ;;  %108 = vmatpush.msra.mxu0 %v16_v58  ;;  %v31_v3 = vld [vmem:[%s442_s1 + $0x80] sm:$0xff]  ;;  %v87_v4 = vld.sshfl [vmem:[#allocation1 + $0x8] sm:$0xff pattern:$0x73625140] }
  0x21   :  { %168 = vmatpush.msra.mxu3 %v64_v59  ;;  %128 = vmatpush.msra.mxu1 %v32_v60  ;;  %v192_v5 = vld [vmem:[%s443_s2] ss:$0 sm:$0xff] }
  0x22   :  { %149 = vmatpush.msra.mxu2 %v47_v61  ;;  %109 = vmatpush.msra.mxu0 %v15_v62 }
  0x23   :  { %150 = vmatmul.f32.vlgmr.msra.gmra.mxu2 %v88_v63  ;;  %169 = vmatpush.msra.mxu3 %v63_v0 }
  0x24   :  { %110 = vmatmul.f32.vlgmr.msra.gmra.mxu0 %v86_v1  ;;  %170 = vmatmul.f32.vlgmr.msra.gmra.mxu3 %v89_v2 }
  0x25   :  { %129 = vmatpush.msra.mxu1 %v31_v3 }
  0x26   :  { %130 = vmatmul.f32.vlgmr.msra.gmra.mxu1 %v87_v4 }
  0xa1   :  { %v111_v6 = vpop.f32.mrf.mxu0 }
  0xa2   :  { %v112_v7 = vadd.f32 %v192_v5, %v111_v6 }
  0xa3   :  { %v131_v8 = vpop.f32.mrf.mxu1 }
  0xa4   :  { %v132_v9 = vadd.f32 %v131_v8, %v112_v7 }
  0xa6   :  { %v151_v10 = vpop.f32.mrf.mxu2 }
  0xa7   :  { %v152_v11 = vadd.f32 %v151_v10, %v132_v9  ;;  %v171_v12 = vpop.f32.mrf.mxu3 }
  0xa9   :  { %v172_v13 = vadd.f32 %v171_v12, %v152_v11 }
  0xab   :  { %174 = vst [vmem:[#allocation2] sm:$0x3] %v172_v13 }
  0xac   :  { %185 = dma.vmem_to_hbm [thread:$0]  %s181_s8, 32, %s183_s10, [#allocation3]  }
  0xad   :  { %217 = dma.done.wait [#allocation3], 32  }
  0xae   :  { %218 = vsyncadd [#allocation3], 4294967264 }
  0xaf   :  { %190 = vsyncpa [#allocation3], 1 }

</bundles_post_ra>
